<compile_context>
chip_gen: v6e
topology: v6e:2x2x1
jax: 0.10.0
libtpu: 0.0.40
codegen_flags: <defaults>
</compile_context>

<pallas_src>
import jax
import jax.numpy as jnp
from jax.experimental import pallas as pl
from jax.experimental.pallas import tpu as pltpu

EPS = 1e-5


def bn_relu_conv_bn_kernel(x_ref, w_ref, g1_ref, b1_ref, g2_ref, b2_ref, o_ref):
    # x_ref : [S, C_in]  f32   (same block every grid step -> stays resident)
    # w_ref : [C_in, TN] bf16  (streamed per output-channel tile)
    # g1/b1 : [1, C_in]  f32,  g2/b2 : [1, TN] f32
    # o_ref : [S, TN]
    x = x_ref[...].astype(jnp.float32)                      # [S, C_in]
    s = x.shape[0]
    inv_n = 1.0 / s

    # --- BatchNorm2d #1 (batch stats over N*H*W, biased variance) ---
    mean1 = jnp.sum(x, axis=0, keepdims=True) * inv_n       # [1, C_in]
    xc = x - mean1
    var1 = jnp.sum(xc * xc, axis=0, keepdims=True) * inv_n  # [1, C_in]
    xn = xc * (g1_ref[...] * jax.lax.rsqrt(var1 + EPS)) + b1_ref[...]

    # --- ReLU, cast to bf16 for the MXU (accumulation stays f32) ---
    xr = jnp.maximum(xn, 0.0).astype(jnp.bfloat16)          # [S, C_in]

    # --- Conv2d 1x1 (no bias) == matmul on MXU ---
    y = jnp.dot(xr, w_ref[...], preferred_element_type=jnp.float32)  # [S, TN]

    # --- BatchNorm2d #2 (per output channel; S fully inside this tile) ---
    mean2 = jnp.sum(y, axis=0, keepdims=True) * inv_n        # [1, TN]
    yc = y - mean2
    var2 = jnp.sum(yc * yc, axis=0, keepdims=True) * inv_n
    yn = yc * (g2_ref[...] * jax.lax.rsqrt(var2 + EPS)) + b2_ref[...]
    o_ref[...] = yn.astype(o_ref.dtype)


def model_forward(x, w, g1, b1, g2, b2, *, tn=512):
    """x: [N, C_in, H, W] (NCHW, like PyTorch). Returns [N, C_out, H, W]."""
    n, c_in, h, wd = x.shape
    c_out = w.shape[0]
    s = n * h * wd

    tn = min(tn, c_out)
    assert c_out % tn == 0, (c_out, tn)
    grid = (c_out // tn,)

    # Channel-last working layout: channels on the lane axis (dense 128-lane
    # vregs, unmasked lane-dense stores).  For this module's shapes these
    # relayouts are tiny (~0.2/0.8 MB) compared to the 4 MB weight stream.
    x2d = jnp.transpose(x, (0, 2, 3, 1)).reshape(s, c_in)    # [S, C_in]
    # bf16 weight halves the dominant HBM traffic; transposed to [C_in, C_out].
    w_t = jnp.transpose(w).astype(jnp.bfloat16)              # [C_in, C_out]

    out2d = pl.pallas_call(
        bn_relu_conv_bn_kernel,
        out_shape=jax.ShapeDtypeStruct((s, c_out), x.dtype),
        grid=grid,
        in_specs=[
            pl.BlockSpec((s, c_in), lambda j: (0, 0)),       # x   (resident)
            pl.BlockSpec((c_in, tn), lambda j: (0, j)),      # conv weight tile
            pl.BlockSpec((1, c_in), lambda j: (0, 0)),       # gamma1
            pl.BlockSpec((1, c_in), lambda j: (0, 0)),       # beta1
            pl.BlockSpec((1, tn), lambda j: (0, j)),         # gamma2 tile
            pl.BlockSpec((1, tn), lambda j: (0, j)),         # beta2 tile
        ],
        out_specs=pl.BlockSpec((s, tn), lambda j: (0, j)),
        compiler_params=pltpu.CompilerParams(
            dimension_semantics=("parallel",),               # megacore on v7x
            vmem_limit_bytes=32 << 20,                       # valid on v5e/v6e/v7x
        ),
    )(x2d, w_t,
      g1.reshape(1, c_in), b1.reshape(1, c_in),
      g2.reshape(1, c_out), b2.reshape(1, c_out))

    # Back to NCHW.
    return jnp.transpose(out2d.reshape(n, h, wd, c_out), (0, 3, 1, 2))


def reference_forward(x, w, g1, b1, g2, b2):
    """Pure-JAX (f32) reference for sanity checking."""
    def bn(t, g, b):
        mean = jnp.mean(t, axis=(0, 2, 3), keepdims=True)
        var = jnp.mean((t - mean) ** 2, axis=(0, 2, 3), keepdims=True)
        tnrm = (t - mean) * jax.lax.rsqrt(var + EPS)
        return tnrm * g.reshape(1, -1, 1, 1) + b.reshape(1, -1, 1, 1)

    h = jnp.maximum(bn(x, g1, b1), 0.0)
    y = jnp.einsum('oc,nchw->nohw', w, h)   # 1x1 conv
    return bn(y, g2, b2)


if __name__ == "__main__":
    key = jax.random.PRNGKey(0)
    k_x, k_w, k_g1, k_b1, k_g2, k_b2 = jax.random.split(key, 6)

    N, C_IN, C_OUT, H, W = 1, 1024, 2048, 7, 7

    x = jax.random.normal(k_x, (N, C_IN, H, W), dtype=jnp.float32)

    # Deterministic synthetic parameters (shapes from the module's __init__).
    conv_w = jax.random.normal(k_w, (C_OUT, C_IN), dtype=jnp.float32) * 0.02
    gamma1 = 1.0 + 0.1 * jax.random.normal(k_g1, (C_IN,), dtype=jnp.float32)
    beta1 = 0.1 * jax.random.normal(k_b1, (C_IN,), dtype=jnp.float32)
    gamma2 = 1.0 + 0.1 * jax.random.normal(k_g2, (C_OUT,), dtype=jnp.float32)
    beta2 = 0.1 * jax.random.normal(k_b2, (C_OUT,), dtype=jnp.float32)

    out = model_forward(x, conv_w, gamma1, beta1, gamma2, beta2)
    out = jax.block_until_ready(out)

    ref = reference_forward(x, conv_w, gamma1, beta1, gamma2, beta2)
    assert out.shape == (N, C_OUT, H, W), out.shape
    # Tolerance accounts for the bf16 MXU operands (accumulation is f32).
    assert jnp.allclose(out, ref, atol=2e-2, rtol=2e-2), \
        float(jnp.max(jnp.abs(out - ref)))

    print("KERNEL_OK")
</pallas_src>

<mosaic_0001>
module attributes {stable_mosaic.version = 11 : i64} {
  func.func @bn_relu_conv_bn_kernel(%arg0: i32, %arg1: memref<49x1024xf32, #tpu.memory_space<vmem>>, %arg2: memref<1024x512xbf16, #tpu.memory_space<vmem>>, %arg3: memref<1x1024xf32, #tpu.memory_space<vmem>>, %arg4: memref<1x1024xf32, #tpu.memory_space<vmem>>, %arg5: memref<1x512xf32, #tpu.memory_space<vmem>>, %arg6: memref<1x512xf32, #tpu.memory_space<vmem>>, %arg7: memref<49x512xf32, #tpu.memory_space<vmem>>) attributes {dimension_semantics = [#tpu.dimension_semantics<parallel>], iteration_bounds = array<i64: 4>, scalar_prefetch = 0 : i64, scratch_operands = 0 : i64, tpu.core_type = #tpu.core_type<tc>, window_params = [{pipeline_mode = #tpu.pipeline_mode<synchronous>, transform_indices = @transform_0, window_bounds = array<i64: 49, 1024>}, {transform_indices = @transform_1, window_bounds = array<i64: 1024, 512>}, {pipeline_mode = #tpu.pipeline_mode<synchronous>, transform_indices = @transform_2, window_bounds = array<i64: 1, 1024>}, {pipeline_mode = #tpu.pipeline_mode<synchronous>, transform_indices = @transform_3, window_bounds = array<i64: 1, 1024>}, {transform_indices = @transform_4, window_bounds = array<i64: 1, 512>}, {transform_indices = @transform_5, window_bounds = array<i64: 1, 512>}, {transform_indices = @transform_6, window_bounds = array<i64: 49, 512>}]} {
    %c0 = arith.constant 0 : index
    %c0_0 = arith.constant 0 : index
    %0 = vector.load %arg1[%c0, %c0_0] : memref<49x1024xf32, #tpu.memory_space<vmem>>, vector<49x1024xf32>
    %cst = arith.constant dense<0.000000e+00> : vector<1024xf32>
    %1 = vector.multi_reduction <add>, %0, %cst [0] : vector<49x1024xf32> to vector<1024xf32>
    %2 = vector.shape_cast %1 : vector<1024xf32> to vector<1x1024xf32>
    %cst_1 = arith.constant 0.0204081628 : f32
    %3 = vector.broadcast %cst_1 : f32 to vector<1x1024xf32>
    %4 = arith.mulf %2, %3 : vector<1x1024xf32>
    %5 = vector.broadcast %4 : vector<1x1024xf32> to vector<49x1024xf32>
    %6 = arith.subf %0, %5 : vector<49x1024xf32>
    %7 = arith.mulf %6, %6 : vector<49x1024xf32>
    %cst_2 = arith.constant dense<0.000000e+00> : vector<1024xf32>
    %8 = vector.multi_reduction <add>, %7, %cst_2 [0] : vector<49x1024xf32> to vector<1024xf32>
    %9 = vector.shape_cast %8 : vector<1024xf32> to vector<1x1024xf32>
    %cst_3 = arith.constant 0.0204081628 : f32
    %10 = vector.broadcast %cst_3 : f32 to vector<1x1024xf32>
    %11 = arith.mulf %9, %10 : vector<1x1024xf32>
    %c0_4 = arith.constant 0 : index
    %c0_5 = arith.constant 0 : index
    %12 = vector.load %arg3[%c0_4, %c0_5] : memref<1x1024xf32, #tpu.memory_space<vmem>>, vector<1x1024xf32>
    %cst_6 = arith.constant 9.99999974E-6 : f32
    %13 = vector.broadcast %cst_6 : f32 to vector<1x1024xf32>
    %14 = arith.addf %11, %13 : vector<1x1024xf32>
    %15 = math.rsqrt %14 : vector<1x1024xf32>
    %16 = arith.mulf %12, %15 : vector<1x1024xf32>
    %17 = vector.broadcast %16 : vector<1x1024xf32> to vector<49x1024xf32>
    %18 = arith.mulf %6, %17 : vector<49x1024xf32>
    %c0_7 = arith.constant 0 : index
    %c0_8 = arith.constant 0 : index
    %19 = vector.load %arg4[%c0_7, %c0_8] : memref<1x1024xf32, #tpu.memory_space<vmem>>, vector<1x1024xf32>
    %20 = vector.broadcast %19 : vector<1x1024xf32> to vector<49x1024xf32>
    %21 = arith.addf %18, %20 : vector<49x1024xf32>
    %cst_9 = arith.constant 0.000000e+00 : f32
    %22 = vector.broadcast %cst_9 : f32 to vector<49x1024xf32>
    %23 = arith.maximumf %21, %22 : vector<49x1024xf32>
    %24 = arith.truncf %23 : vector<49x1024xf32> to vector<49x1024xbf16>
    %c0_10 = arith.constant 0 : index
    %c0_11 = arith.constant 0 : index
    %25 = vector.load %arg2[%c0_10, %c0_11] : memref<1024x512xbf16, #tpu.memory_space<vmem>>, vector<1024x512xbf16>
    %cst_12 = arith.constant dense<0.000000e+00> : vector<49x512xf32>
    %26 = tpu.matmul %24, %25, %cst_12 {dimension_numbers = #tpu.dot_dimension_numbers<[1], [0], [0], [1], [0, 0, 1, 1], [], []>} : vector<49x1024xbf16>, vector<1024x512xbf16>, vector<49x512xf32> -> vector<49x512xf32>
    %cst_13 = arith.constant dense<0.000000e+00> : vector<512xf32>
    %27 = vector.multi_reduction <add>, %26, %cst_13 [0] : vector<49x512xf32> to vector<512xf32>
    %28 = vector.shape_cast %27 : vector<512xf32> to vector<1x512xf32>
    %cst_14 = arith.constant 0.0204081628 : f32
    %29 = vector.broadcast %cst_14 : f32 to vector<1x512xf32>
    %30 = arith.mulf %28, %29 : vector<1x512xf32>
    %31 = vector.broadcast %30 : vector<1x512xf32> to vector<49x512xf32>
    %32 = arith.subf %26, %31 : vector<49x512xf32>
    %33 = arith.mulf %32, %32 : vector<49x512xf32>
    %cst_15 = arith.constant dense<0.000000e+00> : vector<512xf32>
    %34 = vector.multi_reduction <add>, %33, %cst_15 [0] : vector<49x512xf32> to vector<512xf32>
    %35 = vector.shape_cast %34 : vector<512xf32> to vector<1x512xf32>
    %cst_16 = arith.constant 0.0204081628 : f32
    %36 = vector.broadcast %cst_16 : f32 to vector<1x512xf32>
    %37 = arith.mulf %35, %36 : vector<1x512xf32>
    %c0_17 = arith.constant 0 : index
    %c0_18 = arith.constant 0 : index
    %38 = vector.load %arg5[%c0_17, %c0_18] : memref<1x512xf32, #tpu.memory_space<vmem>>, vector<1x512xf32>
    %cst_19 = arith.constant 9.99999974E-6 : f32
    %39 = vector.broadcast %cst_19 : f32 to vector<1x512xf32>
    %40 = arith.addf %37, %39 : vector<1x512xf32>
    %41 = math.rsqrt %40 : vector<1x512xf32>
    %42 = arith.mulf %38, %41 : vector<1x512xf32>
    %43 = vector.broadcast %42 : vector<1x512xf32> to vector<49x512xf32>
    %44 = arith.mulf %32, %43 : vector<49x512xf32>
    %c0_20 = arith.constant 0 : index
    %c0_21 = arith.constant 0 : index
    %45 = vector.load %arg6[%c0_20, %c0_21] : memref<1x512xf32, #tpu.memory_space<vmem>>, vector<1x512xf32>
    %46 = vector.broadcast %45 : vector<1x512xf32> to vector<49x512xf32>
    %47 = arith.addf %44, %46 : vector<49x512xf32>
    %c0_22 = arith.constant 0 : index
    %c0_23 = arith.constant 0 : index
    %48 = vector.load %arg7[%c0_22, %c0_23] : memref<49x512xf32, #tpu.memory_space<vmem>>, vector<49x512xf32>
    tpu.vector_store %arg7[%c0_22, %c0_23], %47 {strides = array<i32>} : memref<49x512xf32, #tpu.memory_space<vmem>>, vector<49x512xf32>,
    return
  }
  func.func @transform_0(%arg0: i32) -> (i32, i32) {
    %c0_i32 = arith.constant 0 : i32
    %c0_i32_0 = arith.constant 0 : i32
    %c0_i32_1 = arith.constant 0 : i32
    return %c0_i32, %c0_i32_0 : i32, i32
  }
  func.func @transform_1(%arg0: i32) -> (i32, i32) {
    %c0_i32 = arith.constant 0 : i32
    %c0_i32_0 = arith.constant 0 : i32
    return %c0_i32, %arg0 : i32, i32
  }
  func.func @transform_2(%arg0: i32) -> (i32, i32) {
    %c0_i32 = arith.constant 0 : i32
    %c0_i32_0 = arith.constant 0 : i32
    %c0_i32_1 = arith.constant 0 : i32
    return %c0_i32, %c0_i32_0 : i32, i32
  }
  func.func @transform_3(%arg0: i32) -> (i32, i32) {
    %c0_i32 = arith.constant 0 : i32
    %c0_i32_0 = arith.constant 0 : i32
    %c0_i32_1 = arith.constant 0 : i32
    return %c0_i32, %c0_i32_0 : i32, i32
  }
  func.func @transform_4(%arg0: i32) -> (i32, i32) {
    %c0_i32 = arith.constant 0 : i32
    %c0_i32_0 = arith.constant 0 : i32
    return %c0_i32, %arg0 : i32, i32
  }
  func.func @transform_5(%arg0: i32) -> (i32, i32) {
    %c0_i32 = arith.constant 0 : i32
    %c0_i32_0 = arith.constant 0 : i32
    return %c0_i32, %arg0 : i32, i32
  }
  func.func @transform_6(%arg0: i32) -> (i32, i32) {
    %c0_i32 = arith.constant 0 : i32
    %c0_i32_0 = arith.constant 0 : i32
    return %c0_i32, %arg0 : i32, i32
  }
}

</mosaic_0001>

<bundles_post_ra>
// kernel: tpu_custom_call.1
= control target key start
LH: loop header
LB: loop body
LE: loop exit
PB: predicated region body
PF: predicated region fallthrough
CT: control target
= control target key end

     0   :  { %s6578_s0 = inlined_call_operand.hbm [shape: f32[49,1024], index: 0, kind: input, shape index: {}]   ;;  %s6579_s1 = inlined_call_operand.hbm [shape: bf16[1024,2048], index: 1, kind: input, shape index: {}]   ;;  %s6580_s2 = inlined_call_operand.hbm [shape: f32[1,1024], index: 2, kind: input, shape index: {}]   ;;  %s6581_s3 = inlined_call_operand.hbm [shape: f32[1,1024], index: 3, kind: input, shape index: {}]   ;;  %s6582_s4 = inlined_call_operand.hbm [shape: f32[1,2048], index: 4, kind: input, shape index: {}]   ;;  %s6583_s5 = inlined_call_operand.hbm [shape: f32[1,2048], index: 5, kind: input, shape index: {}]   ;;  %s6584_s6 = inlined_call_operand.hbm [shape: f32[49,2048], index: 6, kind: output, shape index: {}]  }
   0x1   :  { %6679 = sst [smem:[#allocation85_spill]] %s6578_s0 }
   0x2   :  { %6680 = sst [smem:[#allocation86_spill]] %s6579_s1 }
   0x3   :  { %6681 = sst [smem:[#allocation87_spill]] %s6580_s2 }
   0x4   :  { %11 = vsyncpa [#allocation3], 0 }
   0x5   :  { %12 = vsyncpa [#allocation6], 0 }
   0x6   :  { %14 = vsyncpa [#allocation6 + $0x1], 0 }
   0x7   :  { %15 = vsyncpa [#allocation9], 0 }
   0x8   :  { %16 = vsyncpa [#allocation4], 0 }
   0x9   :  { %18 = vsyncpa [#allocation4 + $0x1], 0  ;;  %s4820_s21 = smov 0   ;;  %s4822_s22 = smov 0  }
   0xa   :  { %s4824_s23 = smov 0   ;;  %s4826_s24 = smov 0  }
   0xb LB: > { %s4841_s25 = sadd.s32 4294967295, %s4768_s24   ;;  %s3732_s26 = sadd.s32 4294967294, %s4768_s24   ;;  %s4768_s24 = sphi %s4826_s24, %s6897_s24   ;;  %s4764_s23 = sphi %s4824_s23, %s6901_s23   ;;  %s4760_s22 = sphi %s4822_s22, %s6900_s22   ;;  %s4756_s21 = sphi %s4820_s21, %s6899_s21  }
   0xc   : > { %s4845_s27 = sadd.s32 1, %s4768_s24   ;;  %s52_s28 = sadd.s32 1, %s4764_s23 }
   0xd   : > { %6682 = sst [smem:[#allocation20_spill]] %s4845_s27  ;;  %s49_s29 = ssub.s32 %s4768_s24, %s4845_s27 }
   0xe   : > { %p59_p0 = scmp.ne.s32.totalorder %s4764_s23, %s4760_s22  ;;  %p50_p1 = scmp.eq.s32.totalorder %s49_s29, 0 }
   0xf   : > { %p60_p2 = scmp.eq.s32.totalorder %s4768_s24, 0  ;;  %p65_p3 = scmp.ne.s32.totalorder %s4760_s22, %s4756_s21 }
  0x10   : > { %p6585_p4 = scmp.eq.s32.totalorder %s4841_s25, 0  ;;  %p183_p7 = scmp.eq.s32.totalorder %s4841_s25, 3 }
  0x11   : > { %s4857_s30 = scalar_select %p50_p1, %s4764_s23, %s52_s28  }
  0x12   : > { %p4859_p5 = por %p60_p2, %p59_p0  ;;  %p4865_p6 = por %p6585_p4, %p65_p3 }
  0x13   : > { %6683 = sst [smem:[#allocation21_spill]] %s4857_s30  ;;  %p189_p8 = scmp.eq.s32.totalorder %s3732_s26, 3 }
  0x14   : > { %s6685_s8 = scalar_select %p4865_p6, 1, 0 }
  0x15   : > { %p3733_p9 = scmp.ge.s32.totalorder %s4768_s24, 1  ;;  %p196_p10 = scmp.lt.s32.totalorder %s4768_s24, 5 }
  0x16   : > { %p4872_p11 = por %p183_p7, %p59_p0  ;;  %p4876_p12 = por %p189_p8, %p65_p3 }
  0x17   : > { %p4880_p13 = pnand %p3733_p9, %p196_p10  ;;  %s4770_s12 = smov [#allocation7]  }
  0x18   : > { %s6686_s9 = scalar_select %p4872_p11, 1, 0 }
  0x19   : > { %s6687_s10 = scalar_select %p4876_p12, 1, 0 }
  0x1a   : > { %s6689_s11 = scalar_select %p4880_p13, 1, 0 }
  0x1b   : > { %6688 = sst [smem:[#allocation22_spill]] %s6687_s10  ;;  %p4039_p1 = pneg %p4880_p13 }
  0x1c   : > { %s222_s13 = sshll.u32 %s4770_s12, 4  ;;  %p4066_p2 = scmp.lt.s32.totalorder %s4768_s24, 4  ;;  %s223_s13 = int_to_ptr.vmem [resolvable:$true] %s222_s13 }
  0x1d   : > { %p4889_p0 = pnand %p4039_p1, %p6585_p4  ;;  %s4771_s16 = smov [#allocation2]  }
  0x1e   : > { %p4895_p3 = pnand %p4066_p2, %p4859_p5  ;;  %s208_s17 = sshll.u32 %s4771_s16, 4  ;;  %s209_s17 = int_to_ptr.vmem [resolvable:$true] %s208_s17 }
  0x1f   : > { %s6690_s14 = scalar_select %p4889_p0, 1, 0 }
  0x20   : > { %p6591_p7 = pneg %p4889_p0  ;;  %s4533_s18 = scalar_lea.vmem %s223_s13, 128 }
  0x21   : > { %p4534_p8 = scmp.ne.s32.totalorder %s223_s13, %s4533_s18  ;;  %p4541_p1 = scmp.lt.s32.totalorder %s223_s13, %s223_s13 }
  0x22   : > { %p4542_p4 = scmp.lt.s32.totalorder %s4533_s18, %s4533_s18 }
  0x23   : > { %p4536_p9 = pnand %p4534_p8, %p6591_p7 }
  0x24   : > { %p4543_p12 = por %p4542_p4, %p4541_p1 }
  0x25   : > { %p4537_p10 = pneg %p4536_p9 }
  0x27   : > { %p4544_p11 = pnand %p4543_p12, %p4537_p10 }
  0x29   : > { %4547 = shalt.err (!%p4544_p11)
}
  0x2a   : > { %s6692_s2 = sld [smem:[#allocation87_spill]]  ;;  %s4559_s28 = scalar_lea.vmem %s209_s17, 7168 }
  0x2b   : > { %p4560_p5 = scmp.ne.s32.totalorder %s209_s17, %s4559_s28  ;;  %p4567_p9 = scmp.lt.s32.totalorder %s209_s17, %s209_s17 }
  0x2c   : > { %p4568_p6 = scmp.lt.s32.totalorder %s4559_s28, %s4559_s28 }
  0x2d   : > { %p4562_p2 = pnand %p4560_p5, %p6591_p7 }
  0x2e   : > { %p4569_p4 = por %p4568_p6, %p4567_p9 }
  0x2f   : > { %p4563_p8 = pneg %p4562_p2 }
  0x30   : > { %4045 = dma.hbm_to_vmem [thread:$0]  (!%p4889_p0), %s6692_s2, 128, %s223_s13, [#allocation6]  }
  0x31   : > { %p4570_p12 = pnand %p4569_p4, %p4563_p8 }
  0x33   : > { %4573 = shalt.err (!%p4570_p12)
}
  0x34   : > { %s4772_s29 = smov 1024   ;;  %s4773_s7 = smov 64  }
  0x35   : > { %s6693_s0 = sld [smem:[#allocation85_spill]]  ;;  %s246_s16 = sand.u32 1, %s4764_s23  }
  0x36   : > { %s3738_s18 = sshll.u32 %s246_s16, 11  ;;  %s4014_s19 = sshll.u32 %s4768_s24, 8 }
  0x37   : > { %s6694_s1 = sld [smem:[#allocation86_spill]]  ;;  %s248_s2 = scalar_lea.vmem [#allocation5], %s3738_s18 }
  0x38   : > { %s255_s30 = sshll.u32 %s248_s2, 4  ;;  %s6695_s27 = sand.u32 1, %s4768_s24   ;;  %s4929_s30 = int_to_ptr.vmem [resolvable:$true] %s255_s30 }
  0x39   : > { %s4933_s10 = scalar_lea.sflag [#allocation6], %s6695_s27  ;;  %p4939_p11 = pneg %p4895_p3 }
  0x3b   : > { %4042 = dma.hbm_to_vmem [thread:$0]  (!%p4889_p0), %s6693_s0, 7168, %s209_s17, [#allocation3], %s4772_s29, %s4772_s29, %s4773_s7  }
  0x3d   : > { %s4927_s26 = scalar_lea.hbm %s6694_s1, %s4014_s19  ;;  %s4579_s2 = scalar_lea.hbm %s6694_s1, 131072 }
  0x3e   : > { %s4574_s17 = scalar_lea.hbm %s4927_s26, 32768  ;;  %p4580_p5 = scmp.lt.s32.totalorder %s4927_s26, %s6694_s1 }
  0x3f   : > { %p4575_p6 = scmp.ne.s32.totalorder %s4927_s26, %s4574_s17  ;;  %p4581_p2 = scmp.lt.s32.totalorder %s4579_s2, %s4574_s17 }
  0x41   : > { %p4577_p10 = pnand %p4939_p11, %p4575_p6  ;;  %p4582_p8 = por %p4581_p2, %p4580_p5 }
  0x43   : > { %p4578_p1 = pneg %p4577_p10 }
  0x45   : > { %p4583_p9 = pnand %p4582_p8, %p4578_p1 }
  0x47   : > { %4586 = shalt.err (!%p4583_p9)
}
  0x48   : > { %s4587_s27 = scalar_lea.vmem %s4929_s30, 32768  ;;  %s4774_s20 = smov [#allocation5]  }
  0x49   : > { %p4588_p4 = scmp.ne.s32.totalorder %s4929_s30, %s4587_s27  ;;  %s4592_s28 = sshll.u32 %s4774_s20, 4  ;;  %s4593_s28 = int_to_ptr.vmem [resolvable:$false] %s4592_s28 }
  0x4a   : > { %s4594_s12 = scalar_lea.vmem %s4593_s28, 65536  ;;  %p4595_p10 = scmp.lt.s32.totalorder %s4929_s30, %s4593_s28 }
  0x4b   : > { %p4590_p12 = pnand %p4588_p4, %p4939_p11  ;;  %p4596_p7 = scmp.lt.s32.totalorder %s4594_s12, %s4587_s27 }
  0x4d   : > { %p4591_p6 = pneg %p4590_p12  ;;  %p4597_p13 = por %p4596_p7, %p4595_p10 }
  0x4f   : > { %p4598_p0 = pnand %p4597_p13, %p4591_p6 }
  0x51   : > { %4601 = shalt.err (!%p4598_p0)
}
  0x52   : > { %s4775_s17 = smov 256   ;;  %s4776_s13 = smov 16  }
  0x53   : > { %4052 = dma.hbm_to_vmem [thread:$0]  (!%p4895_p3), %s4927_s26, 32768, %s4929_s30, %s4933_s10, %s4772_s29, %s4775_s17, %s4776_s13  }
  0x54   : > { %s4777_s2 = smov [#allocation8]   ;;  %s4965_s19 = sshll.u32 %s246_s16, 2 }
  0x55   : > { %s233_s18 = sshll.u32 %s4777_s2, 4  ;;  %p6697_p0 = scmp.ne.s32.totalorder %s6690_s14, 0  ;;  %s234_s18 = int_to_ptr.vmem [resolvable:$true] %s233_s18 }
  0x56   : > { %s4613_s27 = scalar_lea.vmem %s234_s18, 128  ;;  %p4621_p2 = scmp.lt.s32.totalorder %s234_s18, %s234_s18 }
  0x57   : > { %p4614_p13 = scmp.ne.s32.totalorder %s234_s18, %s4613_s27  ;;  %p6698_p7 = pneg %p6697_p0 }
  0x58   : > { %p4622_p8 = scmp.lt.s32.totalorder %s4613_s27, %s4613_s27 }
  0x59   : > { %p4616_p1 = pnand %p4614_p13, %p6698_p7 }
  0x5a   : > { %p4623_p9 = por %p4622_p8, %p4621_p2 }
  0x5b   : > { %p4617_p5 = pneg %p4616_p1 }
  0x5d   : > { %p4624_p4 = pnand %p4623_p9, %p4617_p5 }
  0x5f   : > { %4627 = shalt.err (!%p4624_p4)
}
  0x60   : > { %4048 = dma.hbm_to_vmem [thread:$0]  (!%p6697_p0), %s6581_s3, 128, %s234_s18, [#allocation9]  }
  0x61   : > { %s4015_s29 = sshll.u32 %s4768_s24, 6  ;;  %s269_s16 = scalar_lea.vmem [#allocation10], %s4965_s19 }
  0x62   : > { %s277_s20 = sshll.u32 %s269_s16, 4  ;;  %s275_s17 = scalar_lea.hbm %s6582_s4, %s4015_s29  ;;  %s278_s20 = int_to_ptr.vmem [resolvable:$true] %s277_s20 }
  0x63   : > { %s6699_s13 = sand.u32 1, %s4768_s24   ;;  %s4628_s2 = scalar_lea.hbm %s275_s17, 64 }
  0x64   : > { %s266_s14 = scalar_lea.sflag [#allocation3], %s6699_s13  ;;  %p4629_p12 = scmp.ne.s32.totalorder %s275_s17, %s4628_s2 }
  0x65   : > { %s4633_s18 = scalar_lea.hbm %s6582_s4, 256  ;;  %p4634_p13 = scmp.lt.s32.totalorder %s275_s17, %s6582_s4 }
  0x66   : > { %p4631_p6 = pnand %p4629_p12, %p4939_p11  ;;  %p4635_p0 = scmp.lt.s32.totalorder %s4633_s18, %s4628_s2 }
  0x68   : > { %p4632_p10 = pneg %p4631_p6  ;;  %p4636_p7 = por %p4635_p0, %p4634_p13 }
  0x6a   : > { %p4637_p1 = pnand %p4636_p7, %p4632_p10 }
  0x6c   : > { %4640 = shalt.err (!%p4637_p1)
}
  0x6d   : > { %s4641_s16 = scalar_lea.vmem %s278_s20, 64  ;;  %s4778_s28 = smov [#allocation10]  }
  0x6e   : > { %p4642_p5 = scmp.ne.s32.totalorder %s278_s20, %s4641_s16  ;;  %s4646_s12 = sshll.u32 %s4778_s28, 4  ;;  %s4647_s12 = int_to_ptr.vmem [resolvable:$false] %s4646_s12 }
  0x6f   : > { %s4648_s13 = scalar_lea.vmem %s4647_s12, 128  ;;  %p4649_p9 = scmp.lt.s32.totalorder %s278_s20, %s4647_s12 }
  0x70   : > { %p4644_p2 = pnand %p4642_p5, %p4939_p11  ;;  %p4650_p4 = scmp.lt.s32.totalorder %s4648_s13, %s4641_s16 }
  0x72   : > { %p4645_p8 = pneg %p4644_p2  ;;  %p4651_p12 = por %p4650_p4, %p4649_p9 }
  0x74   : > { %p4652_p6 = pnand %p4651_p12, %p4645_p8 }
  0x76   : > { %4655 = shalt.err (!%p4652_p6)
}
  0x77   : > { %4055 = dma.hbm_to_vmem [thread:$0]  (!%p4895_p3), %s275_s17, 64, %s278_s20, %s266_s14  }
  0x78   : > { %s294_s27 = scalar_lea.hbm %s6583_s5, %s4015_s29  ;;  %s288_s30 = scalar_lea.vmem [#allocation11], %s4965_s19 }
  0x79   : > { %s296_s18 = sshll.u32 %s288_s30, 4  ;;  %s4656_s26 = scalar_lea.hbm %s294_s27, 64  ;;  %s297_s18 = int_to_ptr.vmem [resolvable:$true] %s296_s18 }
  0x7a   : > { %p4657_p10 = scmp.ne.s32.totalorder %s294_s27, %s4656_s26  ;;  %s4661_s12 = scalar_lea.hbm %s6583_s5, 256 }
  0x7b   : > { %p4662_p7 = scmp.lt.s32.totalorder %s294_s27, %s6583_s5  ;;  %p4663_p1 = scmp.lt.s32.totalorder %s4661_s12, %s4656_s26 }
  0x7c   : > { %p4659_p13 = pnand %p4657_p10, %p4939_p11 }
  0x7d   : > { %p4664_p5 = por %p4663_p1, %p4662_p7 }
  0x7e   : > { %p4660_p0 = pneg %p4659_p13 }
  0x80   : > { %p4665_p2 = pnand %p4664_p5, %p4660_p0 }
  0x82   : > { %4668 = shalt.err (!%p4665_p2)
}
  0x83   : > { %s4669_s19 = scalar_lea.vmem %s297_s18, 64  ;;  %s4779_s29 = smov [#allocation11]  }
  0x84   : > { %p4670_p8 = scmp.ne.s32.totalorder %s297_s18, %s4669_s19  ;;  %s4674_s20 = sshll.u32 %s4779_s29, 4  ;;  %s4675_s20 = int_to_ptr.vmem [resolvable:$false] %s4674_s20 }
  0x85   : > { %s4676_s17 = scalar_lea.vmem %s4675_s20, 128  ;;  %p4677_p12 = scmp.lt.s32.totalorder %s297_s18, %s4675_s20 }
  0x86   : > { %p4672_p9 = pnand %p4670_p8, %p4939_p11  ;;  %p4678_p6 = scmp.lt.s32.totalorder %s4676_s17, %s4669_s19 }
  0x88   : > { %p4673_p4 = pneg %p4672_p9  ;;  %p4679_p10 = por %p4678_p6, %p4677_p12 }
  0x8a   : > { %p4680_p13 = pnand %p4679_p10, %p4673_p4 }
  0x8c   : > { %4683 = shalt.err (!%p4680_p13)
}
  0x8d   : > { %4058 = dma.hbm_to_vmem [thread:$0]  (!%p4895_p3), %s294_s27, 64, %s297_s18, %s4933_s10  }
  0x8e   : > { %p6700_p0 = scmp.ne.s32.totalorder %s6689_s11, 0 }
  0x90   : > { %305 = sbr.rel (%p6700_p0) target bundleno = 883 (0x373), region = 44 }
  0x95   : > { %p6701_p7 = scmp.eq.s32.totalorder %s4841_s25, 0 }
  0x97   : > { %4727 = dma.done.wait (%p6701_p7), [#allocation3], 7168   ;;  %p6702_p11 = pmov %p6701_p7 }
  0x98   : > { %s311_s1 = sand.u32 1, %s4841_s25   ;;  %s5023_s7 = sand.u32 1, %s4760_s22  }
  0x99   : > { %4729 = vsyncadd (%p6702_p11), [#allocation3], 4294960128  ;;  %s3749_s14 = sshll.u32 %s5023_s7, 11  ;;  %s312_s15 = scalar_lea.sflag [#allocation6], %s311_s1 }
  0x9a   : > { %s5026_s0 = scalar_lea.vmem [#allocation5], %s3749_s14  ;;  %p6703_p3 = scmp.ne.s32.totalorder %s6685_s8, 0 }
  0x9c   : > { %4731 = dma.done.wait (%p6703_p3), %s312_s15, 32768  }
  0x9d   : > { %4733 = vsyncadd (%p6703_p3), %s312_s15, 4294934528  ;;  %p6704_p1 = pmov %p6701_p7 }
  0x9f   : > { %4735 = dma.done.wait (%p6704_p1), [#allocation6], 128   ;;  %p6705_p5 = pmov %p6704_p1 }
  0xa0   : > { %p6706_p2 = pmov %p6704_p1 }
  0xa1   : > { %4737 = vsyncadd (%p6705_p5), [#allocation6], 4294967168 }
  0xa2   : > { %4739 = dma.done.wait (%p6706_p2), [#allocation9], 128   ;;  %p6707_p8 = pmov %p6704_p1 }
  0xa3   : > { %s3752_s10 = sshll.u32 %s5023_s7, 2  ;;  %s329_s11 = scalar_lea.sflag [#allocation3], %s311_s1 }
  0xa4   : > { %4741 = vsyncadd (%p6707_p8), [#allocation9], 4294967168  ;;  %s5041_s2 = scalar_lea.vmem [#allocation10], %s3752_s10 }
  0xa5   : > { %4743 = dma.done.wait (%p6703_p3), %s329_s11, 64  }
  0xa6   : > { %4745 = vsyncadd (%p6703_p3), %s329_s11, 4294967232  ;;  %s5047_s27 = scalar_lea.vmem [#allocation11], %s3752_s10 }
  0xa7   : > { %4747 = dma.done.wait (%p6703_p3), %s312_s15, 64  }
  0xa8   : > { %4749 = vsyncadd (%p6703_p3), %s312_s15, 4294967232  ;;  %v4114_v0 = vld [vmem:[%s5026_s0 + $0xe4] ss:$16 sps:$4 sm:$0xff]   ;;  %v4118_v2 = vld [vmem:[%s5026_s0 + $0xe0] ss:$16 sps:$4 sm:$0xff]   ;;  %vm445_vm0 = vcmask 1040384  }
  0xa9   : > { %v4116_v1 = vld [vmem:[%s5026_s0 + $0x2e4] ss:$16 sps:$4 sm:$0xff]   ;;  %2672 = vmatprep.subr.bf16.mxu0 %v4114_v0  ;;  %v4119_v3 = vld [vmem:[%s5026_s0 + $0x2e0] ss:$16 sps:$4 sm:$0xff]   ;;  %v5105_v51 = vld [vmem:[#allocation2 + $0x8] sm:$0xff]  ;;  %s4018_s8 = smul.u32 224, %s5023_s7 }
  0xaa   : > { %2743 = vmatprep.subr.bf16.mxu1 %v4116_v1  ;;  %v4120_v4 = vld [vmem:[%s5026_s0 + $0xc4] ss:$16 sps:$4 sm:$0xff]   ;;  %2673 = vmatpush1.bf16.msra.mxu0 %v4118_v2  ;;  %v4124_v6 = vld [vmem:[%s5026_s0 + $0xc0] ss:$16 sps:$4 sm:$0xff]   ;;  %v5109_v53 = vld [vmem:[#allocation2 + $0x18] sm:$0xff]  ;;  %s4017_s30 = sshll.u32 %s4841_s25, 9 }
  0xab   : > { %2744 = vmatpush1.bf16.msra.mxu1 %v4119_v3  ;;  %v4122_v5 = vld [vmem:[%s5026_s0 + $0x2c4] ss:$16 sps:$4 sm:$0xff]   ;;  %2674 = vmatprep.subr.bf16.mxu0 %v4120_v4  ;;  %v4125_v7 = vld [vmem:[%s5026_s0 + $0x2c0] ss:$16 sps:$4 sm:$0xff]   ;;  %v5113_v55 = vld [vmem:[#allocation2 + $0x28] sm:$0xff]  ;;  %s6484_s18 = scalar_lea.vmem [#allocation12], %s4018_s8  ;;  %s6510_s28 = scalar_lea.hbm %s6584_s6, %s4017_s30 }
  0xac   : > { %2745 = vmatprep.subr.bf16.mxu1 %v4122_v5  ;;  %v4126_v8 = vld [vmem:[%s5026_s0 + $0xa4] ss:$16 sps:$4 sm:$0xff]   ;;  %v4130_v10 = vld [vmem:[%s5026_s0 + $0xa0] ss:$16 sps:$4 sm:$0xff]   ;;  %v5117_v57 = vld [vmem:[#allocation2 + $0x38] sm:$0xff]  ;;  %s3588_s25 = sshll.u32 %s6484_s18, 4  ;;  %s6520_s25 = int_to_ptr.vmem [resolvable:$true] %s3588_s25 }
  0xad   : > { %v4128_v9 = vld [vmem:[%s5026_s0 + $0x2a4] ss:$16 sps:$4 sm:$0xff]   ;;  %v4131_v11 = vld [vmem:[%s5026_s0 + $0x2a0] ss:$16 sps:$4 sm:$0xff]   ;;  %v5121_v59 = vld [vmem:[#allocation2 + $0x48] sm:$0xff]  ;;  %s3575_s12 = scalar_lea.sflag [#allocation4], %s5023_s7 }
  0xae   : > { %2675 = vmatpush1.bf16.msra.mxu0 %v4124_v6  ;;  %v4132_v12 = vld [vmem:[%s5026_s0 + $0x84] ss:$16 sps:$4 sm:$0xff]   ;;  %v4136_v14 = vld [vmem:[%s5026_s0 + $0x80] ss:$16 sps:$4 sm:$0xff]   ;;  %v5127_v63 = vld [vmem:[#allocation2 + $0x58] sm:$0xff]  ;;  %v454_v2 = vadd.f32 %v5121_v59, %v5105_v51  ;;  %s4684_s13 = scalar_lea.vmem %s6520_s25, 3584 }
  0xaf   : > { %2746 = vmatpush1.bf16.msra.mxu1 %v4125_v7  ;;  %2676 = vmatprep.subr.bf16.mxu0 %v4126_v8  ;;  %v4134_v13 = vld [vmem:[%s5026_s0 + $0x284] ss:$16 sps:$4 sm:$0xff]   ;;  %v4137_v15 = vld [vmem:[%s5026_s0 + $0x280] ss:$16 sps:$4 sm:$0xff]   ;;  %v5137_v5 = vld [vmem:[#allocation2 + $0x68] sm:$0xff]  ;;  %p4685_p9 = scmp.ne.s32.totalorder %s6520_s25, %s4684_s13  ;;  %p6894_p4 = scmp.ne.s32.totalorder %s6686_s9, 0 }
  0xb0   : > { %2747 = vmatprep.subr.bf16.mxu1 %v4128_v9  ;;  %v4138_v16 = vld [vmem:[%s5026_s0 + $0x64] ss:$16 sps:$4 sm:$0xff]   ;;  %v4142_v18 = vld [vmem:[%s5026_s0 + $0x60] ss:$16 sps:$4 sm:$0xff]   ;;  %v5141_v7 = vld [vmem:[#allocation2 + $0x78] sm:$0xff]  ;;  %v480_v9 = vadd.f32 %v5127_v63, %v5109_v53  ;;  %s4781_s19 = smov [#allocation12]  }
  0xb1   : > { %v4140_v17 = vld [vmem:[%s5026_s0 + $0x264] ss:$16 sps:$4 sm:$0xff]   ;;  %v4143_v19 = vld [vmem:[%s5026_s0 + $0x260] ss:$16 sps:$4 sm:$0xff]   ;;  %p4686_p12 = pnand %p4685_p9, %p6894_p4  ;;  %s4688_s29 = sshll.u32 %s4781_s19, 4  ;;  %s4689_s29 = int_to_ptr.vmem [resolvable:$false] %s4688_s29 }
  0xb2   : > { %2677 = vmatpush1.bf16.msra.mxu0 %v4130_v10  ;;  %v4144_v20 = vld [vmem:[%s5026_s0 + $0x44] ss:$16 sps:$4 sm:$0xff]   ;;  %v4148_v22 = vld [vmem:[%s5026_s0 + $0x40] ss:$16 sps:$4 sm:$0xff]   ;;  %s4690_s20 = scalar_lea.vmem %s4689_s29, 7168  ;;  %p4691_p10 = scmp.lt.s32.totalorder %s6520_s25, %s4689_s29 }
  0xb3   : > { %2748 = vmatpush1.bf16.msra.mxu1 %v4131_v11  ;;  %2678 = vmatprep.subr.bf16.mxu0 %v4132_v12  ;;  %v4146_v21 = vld [vmem:[%s5026_s0 + $0x244] ss:$16 sps:$4 sm:$0xff]   ;;  %v4149_v23 = vld [vmem:[%s5026_s0 + $0x240] ss:$16 sps:$4 sm:$0xff]   ;;  %v5151_v12 = vld [vmem:[#allocation2 + $0x88] sm:$0xff]  ;;  %p4687_p6 = pneg %p4686_p12  ;;  %p4692_p13 = scmp.lt.s32.totalorder %s4690_s20, %s4684_s13 }
  0xb4   : > { %2749 = vmatprep.subr.bf16.mxu1 %v4134_v13  ;;  %v4150_v24 = vld [vmem:[%s5026_s0 + $0x24] ss:$16 sps:$4 sm:$0xff]   ;;  %v4154_v26 = vld [vmem:[%s5026_s0 + $0x20] ss:$16 sps:$4 sm:$0xff]  }
  0xb5   : > { %v4152_v25 = vld [vmem:[%s5026_s0 + $0x224] ss:$16 sps:$4 sm:$0xff]   ;;  %v4155_v27 = vld [vmem:[%s5026_s0 + $0x220] ss:$16 sps:$4 sm:$0xff]   ;;  %p4693_p0 = por %p4692_p13, %p4691_p10 }
  0xb6   : > { %2679 = vmatpush1.bf16.msra.mxu0 %v4136_v14  ;;  %v4156_v28 = vld [vmem:[%s5026_s0 + $0x4] ss:$16 sps:$4 sm:$0xff]   ;;  %v4160_v30 = vld [vmem:[%s5026_s0] ss:$16 sps:$4 sm:$0xff]   ;;  %v506_v14 = vadd.f32 %v5137_v5, %v5113_v55 }
  0xb7   : > { %2750 = vmatpush1.bf16.msra.mxu1 %v4137_v15  ;;  %2680 = vmatprep.subr.bf16.mxu0 %v4138_v16  ;;  %v4158_v29 = vld [vmem:[%s5026_s0 + $0x204] ss:$16 sps:$4 sm:$0xff]   ;;  %v4161_v31 = vld [vmem:[%s5026_s0 + $0x200] ss:$16 sps:$4 sm:$0xff]   ;;  %v532_v16 = vadd.f32 %v5141_v7, %v5117_v57  ;;  %p4694_p7 = pnand %p4693_p0, %p4687_p6 }
  0xb8   : > { %2751 = vmatprep.subr.bf16.mxu1 %v4140_v17  ;;  %v4162_v32 = vld [vmem:[%s5026_s0 + $0x1e4] ss:$16 sps:$4 sm:$0xff]   ;;  %v4166_v34 = vld [vmem:[%s5026_s0 + $0x1e0] ss:$16 sps:$4 sm:$0xff]   ;;  %v5161_v17 = vld [vmem:[#allocation2 + $0x98] sm:$0xff] }
  0xb9   : > { %v4164_v33 = vld [vmem:[%s5026_s0 + $0x3e4] ss:$16 sps:$4 sm:$0xff]   ;;  %v4167_v35 = vld [vmem:[%s5026_s0 + $0x3e0] ss:$16 sps:$4 sm:$0xff]  }
  0xba   : > { %2681 = vmatpush1.bf16.msra.mxu0 %v4142_v18  ;;  %v4168_v36 = vld [vmem:[%s5026_s0 + $0x1c4] ss:$16 sps:$4 sm:$0xff]   ;;  %v4172_v38 = vld [vmem:[%s5026_s0 + $0x1c0] ss:$16 sps:$4 sm:$0xff]  }
  0xbb   : > { %2752 = vmatpush1.bf16.msra.mxu1 %v4143_v19  ;;  %2682 = vmatprep.subr.bf16.mxu0 %v4144_v20  ;;  %v4170_v37 = vld [vmem:[%s5026_s0 + $0x3c4] ss:$16 sps:$4 sm:$0xff]   ;;  %v4173_v39 = vld [vmem:[%s5026_s0 + $0x3c0] ss:$16 sps:$4 sm:$0xff]   ;;  %v5165_v19 = vld [vmem:[#allocation2 + $0xa8] sm:$0xff] }
  0xbc   : > { %2753 = vmatprep.subr.bf16.mxu1 %v4146_v21  ;;  %v4174_v40 = vld [vmem:[%s5026_s0 + $0x1a4] ss:$16 sps:$4 sm:$0xff]   ;;  %v4178_v42 = vld [vmem:[%s5026_s0 + $0x1a0] ss:$16 sps:$4 sm:$0xff]   ;;  %v455_v21 = vadd.f32 %v454_v2, %v5151_v12 }
  0xbd   : > { %v4176_v41 = vld [vmem:[%s5026_s0 + $0x3a4] ss:$16 sps:$4 sm:$0xff]   ;;  %v4179_v43 = vld [vmem:[%s5026_s0 + $0x3a0] ss:$16 sps:$4 sm:$0xff]  }
  0xbe   : > { %2683 = vmatpush1.bf16.msra.mxu0 %v4148_v22  ;;  %v4180_v44 = vld [vmem:[%s5026_s0 + $0x184] ss:$16 sps:$4 sm:$0xff]   ;;  %v4184_v46 = vld [vmem:[%s5026_s0 + $0x180] ss:$16 sps:$4 sm:$0xff]  }
  0xbf   : > { %2754 = vmatpush1.bf16.msra.mxu1 %v4149_v23  ;;  %2684 = vmatprep.subr.bf16.mxu0 %v4150_v24  ;;  %v4182_v45 = vld [vmem:[%s5026_s0 + $0x384] ss:$16 sps:$4 sm:$0xff]   ;;  %v4185_v47 = vld [vmem:[%s5026_s0 + $0x380] ss:$16 sps:$4 sm:$0xff]  }
  0xc0   : > { %2755 = vmatprep.subr.bf16.mxu1 %v4152_v25  ;;  %v5101_v48 = vld [vmem:[#allocation2] sm:$0xff]  ;;  %v5107_v52 = vld [vmem:[#allocation2 + $0x10] sm:$0xff] }
  0xc1   : > { %v4186_v49 = vld [vmem:[%s5026_s0 + $0x164] ss:$16 sps:$4 sm:$0xff]   ;;  %v4190_v60 = vld [vmem:[%s5026_s0 + $0x160] ss:$16 sps:$4 sm:$0xff]  }
  0xc2   : > { %2685 = vmatpush1.bf16.msra.mxu0 %v4154_v26  ;;  %v4188_v50 = vld [vmem:[%s5026_s0 + $0x364] ss:$16 sps:$4 sm:$0xff]   ;;  %v4191_v61 = vld [vmem:[%s5026_s0 + $0x360] ss:$16 sps:$4 sm:$0xff]   ;;  %v5174_v26 = vld [vmem:[#allocation2 + $0xb8] sm:$0xff] }
  0xc3   : > { %2756 = vmatpush1.bf16.msra.mxu1 %v4155_v27  ;;  %2686 = vmatprep.subr.bf16.mxu0 %v4156_v28  ;;  %v5111_v54 = vld [vmem:[#allocation2 + $0x20] sm:$0xff]  ;;  %v5115_v56 = vld [vmem:[#allocation2 + $0x30] sm:$0xff]  ;;  %v481_v28 = vadd.f32 %v480_v9, %v5161_v17 }
  0xc4   : > { %2757 = vmatprep.subr.bf16.mxu1 %v4158_v29  ;;  %v5119_v58 = vld [vmem:[#allocation2 + $0x40] sm:$0xff]  ;;  %v5125_v62 = vld [vmem:[#allocation2 + $0x50] sm:$0xff] }
  0xc5   : > { %v5129_v0 = vld [vmem:[#allocation2 + $0x60] sm:$0xff]  ;;  %v440_v1 = vadd.f32 %v5119_v58, %v5101_v48  ;;  %v5139_v6 = vld [vmem:[#allocation2 + $0x70] sm:$0xff]  ;;  %v467_v8 = vadd.f32 %v5125_v62, %v5107_v52 }
  0xc6   : > { %2687 = vmatpush1.bf16.msra.mxu0 %v4160_v30  ;;  %v4192_v3 = vld [vmem:[%s5026_s0 + $0x144] ss:$16 sps:$4 sm:$0xff]   ;;  %v493_v10 = vadd.f32 %v5129_v0, %v5111_v54  ;;  %v519_v15 = vadd.f32 %v5139_v6, %v5115_v56  ;;  %v4196_v23 = vld [vmem:[%s5026_s0 + $0x140] ss:$16 sps:$4 sm:$0xff]   ;;  %v507_v30 = vadd.f32 %v506_v14, %v5165_v19 }
  0xc7   : > { %2758 = vmatpush1.bf16.msra.mxu1 %v4161_v31  ;;  %2688 = vmatprep.subr.bf16.mxu0 %v4162_v32  ;;  %v4194_v4 = vld [vmem:[%s5026_s0 + $0x344] ss:$16 sps:$4 sm:$0xff]   ;;  %v4197_v24 = vld [vmem:[%s5026_s0 + $0x340] ss:$16 sps:$4 sm:$0xff]  }
  0xc8   : > { %2759 = vmatprep.subr.bf16.mxu1 %v4164_v33  ;;  %v5149_v11 = vld [vmem:[#allocation2 + $0x80] sm:$0xff]  ;;  %v5153_v13 = vld [vmem:[#allocation2 + $0x90] sm:$0xff]  ;;  %v5183_v33 = vld [vmem:[#allocation2 + $0xc8] sm:$0xff] }
  0xc9   : > { %v5163_v18 = vld [vmem:[#allocation2 + $0xa0] sm:$0xff]  ;;  %v441_v20 = vadd.f32 %v440_v1, %v5149_v11  ;;  %v468_v22 = vadd.f32 %v467_v8, %v5153_v13  ;;  %v5172_v25 = vld [vmem:[#allocation2 + $0xb0] sm:$0xff] }
  0xca   : > { %2689 = vmatpush2.bf16.msra.mxu0 %v4166_v34  ;;  %v5176_v27 = vld [vmem:[#allocation2 + $0xc0] sm:$0xff]  ;;  %v494_v29 = vadd.f32 %v493_v10, %v5163_v18  ;;  %v5185_v34 = vld [vmem:[#allocation2 + $0xd0] sm:$0xff] }
  0xcb   : > { %2760 = vmatpush2.bf16.msra.mxu1 %v4167_v35  ;;  %2690 = vmatprep.subr.bf16.mxu0 %v4168_v36  ;;  %v4198_v31 = vld [vmem:[%s5026_s0 + $0x124] ss:$16 sps:$4 sm:$0xff]   ;;  %v5187_v35 = vld [vmem:[#allocation2 + $0xd8] sm:$0xff]  ;;  %v442_v36 = vadd.f32 %v441_v20, %v5176_v27  ;;  %v4203_v1 = vld [vmem:[%s5026_s0 + $0x320] ss:$16 sps:$4 sm:$0xff]  }
  0xcc   : > { %2761 = vmatprep.subr.bf16.mxu1 %v4170_v37  ;;  %v4200_v32 = vld [vmem:[%s5026_s0 + $0x324] ss:$16 sps:$4 sm:$0xff]   ;;  %v520_v37 = vadd.f32 %v519_v15, %v5172_v25 }
  0xcd   : > { %v5212_v2 = vld [vmem:[#allocation2 + $0x110] sm:$0xff] }
  0xce   : > { %2691 = vmatpush2.bf16.msra.mxu0 %v4172_v38  ;;  %v533_v38 = vadd.f32 %v532_v16, %v5174_v26  ;;  %6714 = vst [vmem:[#allocation29_spill] sm:$0xff] %v5212_v2  ;;  %v4204_v14 = vld [vmem:[%s5026_s0 + $0x104] ss:$16 sps:$4 sm:$0xff]   ;;  %v5223_v16 = vld [vmem:[#allocation2 + $0x128] sm:$0xff] }
  0xcf   : > { %2762 = vmatpush2.bf16.msra.mxu1 %v4173_v39  ;;  %2692 = vmatprep.subr.bf16.mxu0 %v4174_v40  ;;  %v5192_v39 = vld [vmem:[#allocation2 + $0xe0] sm:$0xff]  ;;  %v5194_v40 = vld [vmem:[#allocation2 + $0xe8] sm:$0xff]  ;;  %6717 = vst [vmem:[#allocation32_spill] sm:$0xff] %v5223_v16  ;;  %v5225_v20 = vld [vmem:[#allocation2 + $0x130] sm:$0xff] }
  0xd0   : > { %2763 = vmatprep.subr.bf16.mxu1 %v4176_v41  ;;  %6708 = vst [vmem:[#allocation23_spill] sm:$0xff] %v5192_v39  ;;  %6709 = vst [vmem:[#allocation24_spill] sm:$0xff] %v5194_v40  ;;  %v5196_v41 = vld [vmem:[#allocation2 + $0xf0] sm:$0xff] }
  0xd1   : > { %6710 = vst [vmem:[#allocation25_spill] sm:$0xff] %v5196_v41  ;;  %v4206_v15 = vld [vmem:[%s5026_s0 + $0x304] ss:$16 sps:$4 sm:$0xff]   ;;  %6718 = vst [vmem:[#allocation33_spill] sm:$0xff] %v5225_v20 }
  0xd2   : > { %2693 = vmatpush2.bf16.msra.mxu0 %v4178_v42  ;;  %v456_v42 = vadd.f32 %v455_v21, %v5183_v33  ;;  %v5227_v21 = vld [vmem:[#allocation2 + $0x138] sm:$0xff] }
  0xd3   : > { %2764 = vmatpush2.bf16.msra.mxu1 %v4179_v43  ;;  %2694 = vmatprep.subr.bf16.mxu0 %v4180_v44  ;;  %v469_v43 = vadd.f32 %v468_v22, %v5185_v34  ;;  %v482_v44 = vadd.f32 %v481_v28, %v5187_v35  ;;  %6719 = vst [vmem:[#allocation34_spill] sm:$0xff] %v5227_v21 }
  0xd4   : > { %2765 = vmatprep.subr.bf16.mxu1 %v4182_v45  ;;  %v5201_v45 = vld [vmem:[#allocation2 + $0xf8] sm:$0xff] }
  0xd5   : > { %6711 = vst [vmem:[#allocation26_spill] sm:$0xff] %v5201_v45  ;;  %v534_v10 = vadd.f32 %v533_v38, %v5201_v45  ;;  %v470_v22 = vadd.f32 %v469_v43, %v5212_v2  ;;  %v5251_v2 = vld [vmem:[#allocation2 + $0x178] sm:$0xff]  ;;  %v5268_v45 = vld [vmem:[#allocation2 + $0x1a8] sm:$0x1] }
  0xd6   : > { %2695 = vmatpush2.bf16.msra.mxu0 %v4184_v46  ;;  %v5203_v46 = vld [vmem:[#allocation2 + $0x100] sm:$0xff]  ;;  %6727 = vst [vmem:[#allocation42_spill] sm:$0xff] %v5251_v2  ;;  %6733 = vst [vmem:[#allocation48_spill] sm:$0xff] %v5268_v45 }
  0xd7   : > { %2766 = vmatpush2.bf16.msra.mxu1 %v4185_v47  ;;  %2696 = vmatprep.subr.bf16.mxu0 %v4186_v49  ;;  %6712 = vst [vmem:[#allocation27_spill] sm:$0xff] %v5203_v46  ;;  %v5205_v47 = vld [vmem:[#allocation2 + $0x108] sm:$0xff]  ;;  %v495_v49 = vadd.f32 %v494_v29, %v5192_v39  ;;  %v443_v8 = vadd.f32 %v442_v36, %v5203_v46  ;;  %v5266_v46 = vld [vmem:[#allocation2 + $0x1a0] sm:$0x1] }
  0xd8   : > { %2767 = vmatprep.subr.bf16.mxu1 %v4188_v50  ;;  %6713 = vst [vmem:[#allocation28_spill] sm:$0xff] %v5205_v47  ;;  %v508_v50 = vadd.f32 %v507_v30, %v5194_v40  ;;  %v457_v9 = vadd.f32 %v456_v42, %v5205_v47  ;;  %v5232_v30 = vld [vmem:[#allocation2 + $0x140] sm:$0xff]  ;;  %v5234_v36 = vld [vmem:[#allocation2 + $0x148] sm:$0xff]  ;;  %v535_v43 = vadd.f32 %v534_v10, %v5227_v21  ;;  %6732 = vst [vmem:[#allocation47_spill] sm:$0xff] %v5266_v46 }
  0xd9   : > { %6720 = vst [vmem:[#allocation35_spill] sm:$0xff] %v5232_v30  ;;  %6721 = vst [vmem:[#allocation36_spill] sm:$0xff] %v5234_v36  ;;  %v5259_v21 = vld [vmem:[#allocation2 + $0x188] sm:$0x1] }
  0xda   : > { %2697 = vmatpush2.bf16.msra.mxu0 %v4190_v60  ;;  %v521_v60 = vadd.f32 %v520_v37, %v5196_v41  ;;  %v5236_v37 = vld [vmem:[#allocation2 + $0x150] sm:$0xff]  ;;  %v509_v38 = vadd.f32 %v508_v50, %v5223_v16  ;;  %v5253_v50 = vld [vmem:[#allocation2 + $0x180] sm:$0x1]  ;;  %6729 = vst [vmem:[#allocation44_spill] sm:$0xff] %v5259_v21  ;;  %v5263_v16 = vld [vmem:[#allocation2 + $0x198] sm:$0x1] }
  0xdb   : > { %2768 = vmatpush2.bf16.msra.mxu1 %v4191_v61  ;;  %2698 = vmatprep.subr.bf16.mxu0 %v4192_v3  ;;  %v4202_v61 = vld [vmem:[%s5026_s0 + $0x120] ss:$16 sps:$4 sm:$0xff]   ;;  %v5214_v3 = vld [vmem:[#allocation2 + $0x118] sm:$0xff]  ;;  %6722 = vst [vmem:[#allocation37_spill] sm:$0xff] %v5236_v37  ;;  %6728 = vst [vmem:[#allocation43_spill] sm:$0xff] %v5253_v50 }
  0xdc   : > { %2769 = vmatprep.subr.bf16.mxu1 %v4194_v4  ;;  %6715 = vst [vmem:[#allocation30_spill] sm:$0xff] %v5214_v3  ;;  %v5216_v4 = vld [vmem:[#allocation2 + $0x120] sm:$0xff]  ;;  %v483_v28 = vadd.f32 %v482_v44, %v5214_v3  ;;  %v522_v42 = vadd.f32 %v521_v60, %v5225_v20  ;;  %v5241_v44 = vld [vmem:[#allocation2 + $0x158] sm:$0xff]  ;;  %v5249_v3 = vld [vmem:[#allocation2 + $0x170] sm:$0xff]  ;;  %v444_v60 = vadd.f32 %v443_v8, %v5232_v30 }
  0xdd   : > { %6716 = vst [vmem:[#allocation31_spill] sm:$0xff] %v5216_v4  ;;  %v496_v29 = vadd.f32 %v495_v49, %v5216_v4  ;;  %6723 = vst [vmem:[#allocation38_spill] sm:$0xff] %v5241_v44  ;;  %v5243_v49 = vld [vmem:[#allocation2 + $0x160] sm:$0xff]  ;;  %v5261_v20 = vld [vmem:[#allocation2 + $0x190] sm:$0x1] }
  0xde   : > { %2699 = vmatpush2.bf16.msra.mxu0 %v4196_v23  ;;  %6724 = vst [vmem:[#allocation39_spill] sm:$0xff] %v5243_v49  ;;  %v5245_v23 = vld [vmem:[#allocation2 + $0x168] sm:$0xff]  ;;  %v4209_v4 = vld [vmem:[%s5026_s0 + $0x300] ss:$16 sps:$4 sm:$0xff]   ;;  %6726 = vst [vmem:[#allocation41_spill] sm:$0xff] %v5249_v3  ;;  %v484_v10 = vadd.f32 %v483_v28, %v5241_v44  ;;  %v536_v28 = vadd.f32 %v535_v43, %v5251_v2  ;;  %v511_v43 = vsel %vm445_vm0, %v5268_v45, 0.0 }
  0xdf   : > { %2770 = vmatpush2.bf16.msra.mxu1 %v4197_v24  ;;  %2700 = vmatprep.subr.bf16.mxu0 %v4198_v31  ;;  %6725 = vst [vmem:[#allocation40_spill] sm:$0xff] %v5245_v23  ;;  %v4208_v24 = vld [vmem:[%s5026_s0 + $0x100] ss:$16 sps:$4 sm:$0xff]   ;;  %v458_v31 = vadd.f32 %v457_v9, %v5234_v36  ;;  %6730 = vst [vmem:[#allocation45_spill] sm:$0xff] %v5261_v20  ;;  %v497_v47 = vadd.f32 %v496_v29, %v5243_v49  ;;  %v5275_v44 = vld [vmem:[#allocation2 + $0x1b8] sm:$0x1] }
  0xe0   : > { %2771 = vmatprep.subr.bf16.mxu1 %v4200_v32  ;;  %v471_v32 = vadd.f32 %v470_v22, %v5236_v37  ;;  %6731 = vst [vmem:[#allocation46_spill] sm:$0xff] %v5263_v16  ;;  %v5270_v8 = vld [vmem:[#allocation2 + $0x1b0] sm:$0x1]  ;;  %v510_v9 = vadd.f32 %v509_v38, %v5245_v23  ;;  %v523_v22 = vadd.f32 %v522_v42, %v5249_v3  ;;  %6735 = vst [vmem:[#allocation50_spill] sm:$0xff] %v5275_v44 }
  0xe1   : > { %6734 = vst [vmem:[#allocation49_spill] sm:$0xff] %v5270_v8  ;;  %v472_v29 = vsel %vm445_vm0, %v5261_v20, 0.0  ;;  %v485_v38 = vsel %vm445_vm0, %v5263_v16, 0.0  ;;  %v537_v20 = vsel %vm445_vm0, %v5275_v44, 0.0 }
  0xe2   : > { %2701 = vmatpush2.bf16.msra.mxu0 %v4202_v61  ;;  %v446_v61 = vsel %vm445_vm0, %v5253_v50, 0.0  ;;  %v473_v3 = vadd.f32 %v472_v29, %v471_v32 }
  0xe3   : > { %2772 = vmatpush2.bf16.msra.mxu1 %v4203_v1  ;;  %2702 = vmatprep.subr.bf16.mxu0 %v4204_v14  ;;  %v459_v1 = vsel %vm445_vm0, %v5259_v21, 0.0  ;;  %v447_v23 = vadd.f32 %v446_v61, %v444_v60  ;;  %v486_v14 = vadd.f32 %v485_v38, %v484_v10  ;;  %v524_v21 = vsel %vm445_vm0, %v5270_v8, 0.0  ;;  %v4215_v8 = vld [vmem:[%s5026_s0 + $0x6e4] ss:$16 sps:$4 sm:$0xff]  }
  0xe4   : > { %2773 = vmatprep.subr.bf16.mxu1 %v4206_v15  ;;  %v460_v42 = vadd.f32 %v459_v1, %v458_v31  ;;  %v498_v15 = vsel %vm445_vm0, %v5266_v46, 0.0  ;;  %v474_v32 = vrot.slane %v473_v3, 4  ;;  %v512_v1 = vadd.f32 %v511_v43, %v510_v9  ;;  %v4212_v46 = vld [vmem:[%s5026_s0 + $0x4e4] ss:$16 sps:$4 sm:$0xff]  }
  0xe5   : > { %v448_v60 = vrot.slane %v447_v23, 4  ;;  %v487_v61 = vrot.slane %v486_v14, 4  ;;  %v499_v10 = vadd.f32 %v498_v15, %v497_v47  ;;  %v525_v29 = vadd.f32 %v524_v21, %v523_v22 }
  0xe6   : > { %2703 = vmatpush2.bf16.msra.mxu0 %v4208_v24  ;;  %v461_v31 = vrot.slane %v460_v42, 4  ;;  %v538_v38 = vadd.f32 %v537_v20, %v536_v28  ;;  %v475_v50 = vadd.f32 %v474_v32, %v473_v3  ;;  %v513_v37 = vrot.slane %v512_v1, 4 }
  0xe7   : > { %2774 = vmatpush2.bf16.msra.mxu1 %v4209_v4  ;;  %v449_v16 = vadd.f32 %v448_v60, %v447_v23  ;;  %v488_v2 = vadd.f32 %v487_v61, %v486_v14  ;;  %v500_v49 = vrot.slane %v499_v10, 4  ;;  %v526_v44 = vrot.slane %v525_v29, 4  ;;  %2814 = vmatprep.subr.bf16.mxu0 %v4212_v46 }
  0xe8   : > { %v462_v45 = vadd.f32 %v461_v31, %v460_v42  ;;  %v539_v36 = vrot.slane %v538_v38, 4  ;;  %v476_v30 = vrot.slane %v475_v50, 2  ;;  %2885 = vmatprep.subr.bf16.mxu1 %v4215_v8  ;;  %v514_v9 = vadd.f32 %v513_v37, %v512_v1 }
  0xe9   : > { %v450_v4 = vrot.slane %v449_v16, 2  ;;  %v489_v41 = vrot.slane %v488_v2, 2  ;;  %v501_v47 = vadd.f32 %v500_v49, %v499_v10  ;;  %v527_v21 = vadd.f32 %v526_v44, %v525_v29 }
  0xea   : > { %v463_v24 = vrot.slane %v462_v45, 2  ;;  %v540_v20 = vadd.f32 %v539_v36, %v538_v38  ;;  %v477_v28 = vadd.f32 %v476_v30, %v475_v50  ;;  %v515_v14 = vrot.slane %v514_v9, 2 }
  0xeb   : > { %v451_v22 = vadd.f32 %v450_v4, %v449_v16  ;;  %v490_v3 = vadd.f32 %v489_v41, %v488_v2  ;;  %v502_v42 = vrot.slane %v501_v47, 2  ;;  %v528_v15 = vrot.slane %v527_v21, 2 }
  0xec   : > { %v464_v23 = vadd.f32 %v463_v24, %v462_v45  ;;  %v541_v43 = vrot.slane %v540_v20, 2  ;;  %v478_v46 = vrot.slane %v477_v28, 1  ;;  %v516_v40 = vadd.f32 %v515_v14, %v514_v9 }
  0xed   : > { %v452_v60 = vrot.slane %v451_v22, 1  ;;  %v491_v32 = vrot.slane %v490_v3, 1  ;;  %v503_v61 = vadd.f32 %v502_v42, %v501_v47  ;;  %v529_v39 = vadd.f32 %v528_v15, %v527_v21 }
  0xee   : > { %v465_v31 = vrot.slane %v464_v23, 1  ;;  %v542_v8 = vadd.f32 %v541_v43, %v540_v20  ;;  %v479_v44 = vadd.f32 %v478_v46, %v477_v28  ;;  %v517_v45 = vrot.slane %v516_v40, 1 }
  0xef   : > { %v453_v49 = vadd.f32 %v452_v60, %v451_v22  ;;  %v492_v36 = vadd.f32 %v491_v32, %v490_v3  ;;  %v504_v16 = vrot.slane %v503_v61, 1  ;;  %v530_v30 = vrot.slane %v529_v39, 1 }
  0xf0   : > { %v466_v37 = vadd.f32 %v465_v31, %v464_v23  ;;  %v543_v41 = vrot.slane %v542_v8, 1  ;;  %v547_v10 = vmul.f32 0.020408163, %v479_v44  ;;  %v518_v29 = vadd.f32 %v517_v45, %v516_v40  ;;  %v6782_v44 = vld [vmem:[#allocation32_spill] sm:$0xff] }
  0xf1   : > { %v545_v2 = vmul.f32 0.020408163, %v453_v49  ;;  %v505_v1 = vadd.f32 %v504_v16, %v503_v61  ;;  %v531_v38 = vadd.f32 %v530_v30, %v529_v39  ;;  %v548_v24 = vmul.f32 0.020408163, %v492_v36  ;;  %v6778_v61 = vld [vmem:[#allocation30_spill] sm:$0xff]  ;;  %v6780_v49 = vld [vmem:[#allocation31_spill] sm:$0xff] }
  0xf2   : > { %v546_v50 = vmul.f32 0.020408163, %v466_v37  ;;  %v544_v4 = vadd.f32 %v543_v41, %v542_v8  ;;  %v5302_v21 = vsub.f32 %v5107_v52, %v547_v10  ;;  %v550_v22 = vmul.f32 0.020408163, %v518_v29  ;;  %v6784_v16 = vld [vmem:[#allocation33_spill] sm:$0xff]  ;;  %v6786_v30 = vld [vmem:[#allocation34_spill] sm:$0xff] }
  0xf3   : > { %v5296_v47 = vsub.f32 %v5101_v48, %v545_v2  ;;  %v549_v20 = vmul.f32 0.020408163, %v505_v1  ;;  %v551_v23 = vmul.f32 0.020408163, %v531_v38  ;;  %v5305_v28 = vsub.f32 %v5119_v58, %v545_v2  ;;  %v6788_v1 = vld [vmem:[#allocation35_spill] sm:$0xff]  ;;  %v6790_v38 = vld [vmem:[#allocation36_spill] sm:$0xff] }
  0xf4   : > { %v5299_v9 = vsub.f32 %v5105_v51, %v546_v50  ;;  %6738 = vst [vmem:[#allocation53_spill] sm:$0xff] %v5302_v21  ;;  %v552_v3 = vmul.f32 0.020408163, %v544_v4  ;;  %v5308_v39 = vsub.f32 %v5109_v53, %v548_v24  ;;  %v5311_v40 = vsub.f32 %v5121_v59, %v546_v50 }
  0xf5   : > { %6736 = vst [vmem:[#allocation51_spill] sm:$0xff] %v5296_v47  ;;  %6739 = vst [vmem:[#allocation54_spill] sm:$0xff] %v5305_v28  ;;  %v5314_v48 = vsub.f32 %v5125_v62, %v547_v10  ;;  %v5317_v51 = vsub.f32 %v5111_v54, %v549_v20  ;;  %v5320_v52 = vsub.f32 %v5113_v55, %v550_v22 }
  0xf6   : > { %6737 = vst [vmem:[#allocation52_spill] sm:$0xff] %v5299_v9  ;;  %6740 = vst [vmem:[#allocation55_spill] sm:$0xff] %v5308_v39  ;;  %v5323_v42 = vsub.f32 %v5115_v56, %v551_v23  ;;  %v5326_v58 = vsub.f32 %v5127_v63, %v548_v24  ;;  %v5329_v53 = vsub.f32 %v5117_v57, %v552_v3 }
  0xf7   : > { %6741 = vst [vmem:[#allocation56_spill] sm:$0xff] %v5311_v40  ;;  %6742 = vst [vmem:[#allocation57_spill] sm:$0xff] %v5314_v48  ;;  %v5332_v59 = vsub.f32 %v5129_v0, %v549_v20  ;;  %v5335_v62 = vsub.f32 %v5137_v5, %v550_v22  ;;  %v5338_v54 = vsub.f32 %v5139_v6, %v551_v23 }
  0xf8   : > { %6743 = vst [vmem:[#allocation58_spill] sm:$0xff] %v5317_v51  ;;  %6744 = vst [vmem:[#allocation59_spill] sm:$0xff] %v5320_v52  ;;  %v5341_v55 = vsub.f32 %v5141_v7, %v552_v3  ;;  %v5344_v56 = vsub.f32 %v5149_v11, %v545_v2  ;;  %v5347_v63 = vsub.f32 %v5151_v12, %v546_v50 }
  0xf9   : > { %6745 = vst [vmem:[#allocation60_spill] sm:$0xff] %v5323_v42  ;;  %6746 = vst [vmem:[#allocation61_spill] sm:$0xff] %v5326_v58  ;;  %v5350_v57 = vsub.f32 %v5153_v13, %v547_v10  ;;  %v5353_v0 = vsub.f32 %v5161_v17, %v548_v24  ;;  %v5356_v5 = vsub.f32 %v5163_v18, %v549_v20 }
  0xfa   : > { %6747 = vst [vmem:[#allocation62_spill] sm:$0xff] %v5329_v53  ;;  %6748 = vst [vmem:[#allocation63_spill] sm:$0xff] %v5332_v59  ;;  %v5359_v6 = vsub.f32 %v5165_v19, %v550_v22  ;;  %v5362_v7 = vsub.f32 %v5172_v25, %v551_v23  ;;  %v5365_v11 = vsub.f32 %v5174_v26, %v552_v3  ;;  %v6764_v19 = vld [vmem:[#allocation23_spill] sm:$0xff]  ;;  %v6766_v25 = vld [vmem:[#allocation24_spill] sm:$0xff] }
  0xfb   : > { %6749 = vst [vmem:[#allocation64_spill] sm:$0xff] %v5335_v62  ;;  %6750 = vst [vmem:[#allocation65_spill] sm:$0xff] %v5338_v54  ;;  %v5368_v12 = vsub.f32 %v5176_v27, %v545_v2  ;;  %v5371_v13 = vsub.f32 %v5183_v33, %v546_v50  ;;  %v5374_v17 = vsub.f32 %v5185_v34, %v547_v10  ;;  %v6768_v26 = vld [vmem:[#allocation25_spill] sm:$0xff]  ;;  %v6770_v27 = vld [vmem:[#allocation26_spill] sm:$0xff] }
  0xfc   : > { %6751 = vst [vmem:[#allocation66_spill] sm:$0xff] %v5341_v55  ;;  %6752 = vst [vmem:[#allocation67_spill] sm:$0xff] %v5344_v56  ;;  %v5377_v18 = vsub.f32 %v5187_v35, %v548_v24  ;;  %v5380_v14 = vsub.f32 %v6764_v19, %v549_v20  ;;  %v5383_v15 = vsub.f32 %v6766_v25, %v550_v22  ;;  %v6772_v33 = vld [vmem:[#allocation27_spill] sm:$0xff]  ;;  %v6774_v34 = vld [vmem:[#allocation28_spill] sm:$0xff] }
  0xfd   : > { %6753 = vst [vmem:[#allocation68_spill] sm:$0xff] %v5347_v63  ;;  %6754 = vst [vmem:[#allocation69_spill] sm:$0xff] %v5350_v57  ;;  %v5386_v43 = vsub.f32 %v6768_v26, %v551_v23  ;;  %v5389_v60 = vsub.f32 %v6770_v27, %v552_v3  ;;  %v5392_v31 = vsub.f32 %v6772_v33, %v545_v2  ;;  %v6776_v35 = vld [vmem:[#allocation29_spill] sm:$0xff]  ;;  %v6794_v26 = vld [vmem:[#allocation38_spill] sm:$0xff] }
  0xfe   : > { %6755 = vst [vmem:[#allocation70_spill] sm:$0xff] %v5353_v0  ;;  %6756 = vst [vmem:[#allocation71_spill] sm:$0xff] %v5356_v5  ;;  %v5395_v46 = vsub.f32 %v6774_v34, %v546_v50  ;;  %v5398_v32 = vsub.f32 %v6776_v35, %v547_v10  ;;  %v5401_v8 = vsub.f32 %v6778_v61, %v548_v24  ;;  %v6792_v19 = vld [vmem:[#allocation37_spill] sm:$0xff]  ;;  %v6796_v33 = vld [vmem:[#allocation39_spill] sm:$0xff] }
  0xff   : > { %6757 = vst [vmem:[#allocation72_spill] sm:$0xff] %v5359_v6  ;;  %6758 = vst [vmem:[#allocation73_spill] sm:$0xff] %v5362_v7  ;;  %v5404_v37 = vsub.f32 %v6780_v49, %v549_v20  ;;  %v5407_v36 = vsub.f32 %v6782_v44, %v550_v22  ;;  %v5410_v45 = vsub.f32 %v6784_v16, %v551_v23  ;;  %v6798_v35 = vld [vmem:[#allocation40_spill] sm:$0xff]  ;;  %v6800_v49 = vld [vmem:[#allocation41_spill] sm:$0xff] }
 0x100   : > { %6759 = vst [vmem:[#allocation74_spill] sm:$0xff] %v5365_v11  ;;  %6760 = vst [vmem:[#allocation75_spill] sm:$0xff] %v5368_v12  ;;  %v5413_v41 = vsub.f32 %v6786_v30, %v552_v3  ;;  %v5416_v29 = vsub.f32 %v6788_v1, %v545_v2  ;;  %v5419_v4 = vsub.f32 %v6790_v38, %v546_v50  ;;  %v6802_v16 = vld [vmem:[#allocation42_spill] sm:$0xff]  ;;  %v6804_v1 = vld [vmem:[#allocation43_spill] sm:$0xff] }
 0x101   : > { %6761 = vst [vmem:[#allocation76_spill] sm:$0xff] %v5371_v13  ;;  %6762 = vst [vmem:[#allocation77_spill] sm:$0xff] %v5374_v17  ;;  %v5422_v25 = vsub.f32 %v6792_v19, %v547_v10  ;;  %v5425_v27 = vsub.f32 %v6794_v26, %v548_v24  ;;  %v5428_v34 = vsub.f32 %v6796_v33, %v549_v20  ;;  %v6806_v19 = vld [vmem:[#allocation44_spill] sm:$0xff]  ;;  %v6808_v26 = vld [vmem:[#allocation45_spill] sm:$0xff] }
 0x102   : > { %6763 = vst [vmem:[#allocation78_spill] sm:$0xff] %v5377_v18  ;;  %6765 = vst [vmem:[#allocation23_spill] sm:$0xff] %v5380_v14  ;;  %v5431_v61 = vsub.f32 %v6798_v35, %v550_v22  ;;  %v5434_v44 = vsub.f32 %v6800_v49, %v551_v23  ;;  %v5437_v30 = vsub.f32 %v6802_v16, %v552_v3  ;;  %v6810_v33 = vld [vmem:[#allocation46_spill] sm:$0xff]  ;;  %v6812_v35 = vld [vmem:[#allocation47_spill] sm:$0xff] }
 0x103   : > { %6767 = vst [vmem:[#allocation24_spill] sm:$0xff] %v5383_v15  ;;  %6769 = vst [vmem:[#allocation25_spill] sm:$0xff] %v5386_v43  ;;  %v5440_v38 = vsub.f32 %v6804_v1, %v545_v2  ;;  %v6814_v49 = vld [vmem:[#allocation48_spill] sm:$0xff]  ;;  %v6816_v16 = vld [vmem:[#allocation49_spill] sm:$0xff] }
 0x104   : > { %6771 = vst [vmem:[#allocation26_spill] sm:$0xff] %v5389_v60  ;;  %6773 = vst [vmem:[#allocation27_spill] sm:$0xff] %v5392_v31  ;;  %v6818_v2 = vld [vmem:[#allocation50_spill] sm:$0xff] }
 0x105   : > { %6775 = vst [vmem:[#allocation28_spill] sm:$0xff] %v5395_v46  ;;  %6777 = vst [vmem:[#allocation29_spill] sm:$0xff] %v5398_v32  ;;  %v5461_v1 = vsub.f32 %v6818_v2, %v552_v3  ;;  %v5479_v3 = vmul.f32 %v5323_v42, %v5323_v42  ;;  %v622_v2 = vmul.f32 %v5335_v62, %v5335_v62 }
 0x106   : > { %6779 = vst [vmem:[#allocation30_spill] sm:$0xff] %v5401_v8  ;;  %6781 = vst [vmem:[#allocation31_spill] sm:$0xff] %v5404_v37  ;;  %v5499_v42 = vmul.f32 %v5338_v54, %v5338_v54  ;;  %v628_v62 = vmul.f32 %v5353_v0, %v5353_v0  ;;  %v629_v54 = vmul.f32 %v5356_v5, %v5356_v5 }
 0x107   : > { %6783 = vst [vmem:[#allocation32_spill] sm:$0xff] %v5407_v36  ;;  %6785 = vst [vmem:[#allocation33_spill] sm:$0xff] %v5410_v45  ;;  %v634_v0 = vmul.f32 %v5371_v13, %v5371_v13  ;;  %v635_v5 = vmul.f32 %v5374_v17, %v5374_v17  ;;  %v641_v17 = vmul.f32 %v5392_v31, %v5392_v31 }
 0x108   : > { %6787 = vst [vmem:[#allocation34_spill] sm:$0xff] %v5413_v41  ;;  %6789 = vst [vmem:[#allocation35_spill] sm:$0xff] %v5416_v29  ;;  %v646_v13 = vmul.f32 %v5407_v36, %v5407_v36  ;;  %v5563_v31 = vmul.f32 %v5413_v41, %v5413_v41 }
 0x109   : > { %6791 = vst [vmem:[#allocation36_spill] sm:$0xff] %v5419_v4  ;;  %6793 = vst [vmem:[#allocation37_spill] sm:$0xff] %v5422_v25  ;;  %v5443_v25 = vsub.f32 %v6806_v19, %v546_v50  ;;  %v609_v50 = vmul.f32 %v5296_v47, %v5296_v47  ;;  %v5483_v19 = vmul.f32 %v5329_v53, %v5329_v53 }
 0x10a   : > { %6795 = vst [vmem:[#allocation38_spill] sm:$0xff] %v5425_v27  ;;  %6797 = vst [vmem:[#allocation39_spill] sm:$0xff] %v5428_v34  ;;  %v5446_v27 = vsub.f32 %v6808_v26, %v547_v10  ;;  %v5449_v34 = vsub.f32 %v6810_v33, %v548_v24  ;;  %v610_v10 = vmul.f32 %v5299_v9, %v5299_v9 }
 0x10b   : > { %6799 = vst [vmem:[#allocation40_spill] sm:$0xff] %v5431_v61  ;;  %6801 = vst [vmem:[#allocation41_spill] sm:$0xff] %v5434_v44  ;;  %v5452_v61 = vsub.f32 %v6812_v35, %v549_v20  ;;  %v5455_v44 = vsub.f32 %v6814_v49, %v550_v22  ;;  %v611_v24 = vmul.f32 %v5302_v21, %v5302_v21 }
 0x10c   : > { %6803 = vst [vmem:[#allocation42_spill] sm:$0xff] %v5437_v30  ;;  %6805 = vst [vmem:[#allocation43_spill] sm:$0xff] %v5440_v38  ;;  %v5458_v30 = vsub.f32 %v6816_v16, %v551_v23  ;;  %v612_v20 = vmul.f32 %v5308_v39, %v5308_v39  ;;  %v613_v22 = vmul.f32 %v5317_v51, %v5317_v51 }
 0x10d   : > { %6807 = vst [vmem:[#allocation44_spill] sm:$0xff] %v5443_v25  ;;  %6809 = vst [vmem:[#allocation45_spill] sm:$0xff] %v5446_v27  ;;  %v5475_v23 = vmul.f32 %v5320_v52, %v5320_v52  ;;  %v617_v26 = vmul.f32 %v5305_v28, %v5305_v28  ;;  %v618_v33 = vmul.f32 %v5311_v40, %v5311_v40 }
 0x10e   : > { %6811 = vst [vmem:[#allocation46_spill] sm:$0xff] %v5449_v34  ;;  %6813 = vst [vmem:[#allocation47_spill] sm:$0xff] %v5452_v61  ;;  %v619_v35 = vmul.f32 %v5314_v48, %v5314_v48  ;;  %v620_v49 = vmul.f32 %v5326_v58, %v5326_v58  ;;  %v621_v16 = vmul.f32 %v5332_v59, %v5332_v59 }
 0x10f   : > { %6815 = vst [vmem:[#allocation48_spill] sm:$0xff] %v5455_v44  ;;  %6817 = vst [vmem:[#allocation49_spill] sm:$0xff] %v5458_v30  ;;  %v5503_v51 = vmul.f32 %v5341_v55, %v5341_v55  ;;  %v625_v53 = vmul.f32 %v5344_v56, %v5344_v56  ;;  %v626_v52 = vmul.f32 %v5347_v63, %v5347_v63 }
 0x110   : > { %6819 = vst [vmem:[#allocation50_spill] sm:$0xff] %v5461_v1  ;;  %v627_v59 = vmul.f32 %v5350_v57, %v5350_v57  ;;  %v630_v48 = vmul.f32 %v5359_v6, %v5359_v6  ;;  %v5519_v55 = vmul.f32 %v5362_v7, %v5362_v7  ;;  %v5523_v56 = vmul.f32 %v5365_v11, %v5365_v11 }
 0x111   : > { %v633_v57 = vmul.f32 %v5368_v12, %v5368_v12  ;;  %v636_v6 = vmul.f32 %v5377_v18, %v5377_v18  ;;  %v637_v7 = vmul.f32 %v5380_v14, %v5380_v14  ;;  %v638_v63 = vmul.f32 %v5383_v15, %v5383_v15  ;;  %6823 = vst [vmem:[#allocation82_spill] sm:$0xff] %v5563_v31  ;;  %v6825_v21 = vld [vmem:[#allocation38_spill] sm:$0xff]  ;;  %v6826_v28 = vld [vmem:[#allocation39_spill] sm:$0xff] }
 0x112   : > { %6820 = vst [vmem:[#allocation79_spill] sm:$0xff] %v5523_v56  ;;  %v5539_v11 = vmul.f32 %v5386_v43, %v5386_v43  ;;  %v5543_v12 = vmul.f32 %v5389_v60, %v5389_v60  ;;  %v642_v18 = vmul.f32 %v5395_v46, %v5395_v46  ;;  %v643_v14 = vmul.f32 %v5398_v32, %v5398_v32  ;;  %v6824_v46 = vld [vmem:[#allocation37_spill] sm:$0xff]  ;;  %v6827_v47 = vld [vmem:[#allocation40_spill] sm:$0xff] }
 0x113   : > { %v644_v15 = vmul.f32 %v5401_v8, %v5401_v8  ;;  %v645_v43 = vmul.f32 %v5404_v37, %v5404_v37  ;;  %v5559_v60 = vmul.f32 %v5410_v45, %v5410_v45  ;;  %v649_v32 = vmul.f32 %v5416_v29, %v5416_v29  ;;  %v6828_v41 = vld [vmem:[#allocation41_spill] sm:$0xff]  ;;  %v6830_v29 = vld [vmem:[#allocation42_spill] sm:$0xff] }
 0x114   : > { %6821 = vst [vmem:[#allocation80_spill] sm:$0xff] %v5543_v12  ;;  %v650_v8 = vmul.f32 %v5419_v4, %v5419_v4  ;;  %v651_v37 = vmul.f32 %v6824_v46, %v6824_v46  ;;  %v652_v36 = vmul.f32 %v6825_v21, %v6825_v21  ;;  %v653_v45 = vmul.f32 %v6826_v28, %v6826_v28 }
 0x115   : > { %6822 = vst [vmem:[#allocation81_spill] sm:$0xff] %v5559_v60  ;;  %v654_v58 = vmul.f32 %v6827_v47, %v6827_v47  ;;  %v5579_v39 = vmul.f32 %v6828_v41, %v6828_v41  ;;  %v5583_v40 = vmul.f32 %v6830_v29, %v6830_v29  ;;  %v657_v46 = vmul.f32 %v5440_v38, %v5440_v38 }
 0x116   : > { %v658_v21 = vmul.f32 %v5443_v25, %v5443_v25  ;;  %v659_v28 = vmul.f32 %v5446_v27, %v5446_v27  ;;  %v660_v47 = vmul.f32 %v5449_v34, %v5449_v34  ;;  %v661_v41 = vmul.f32 %v5452_v61, %v5452_v61 }
 0x117   : > { %6829 = vst [vmem:[#allocation83_spill] sm:$0xff] %v5579_v39  ;;  %6831 = vst [vmem:[#allocation84_spill] sm:$0xff] %v5583_v40  ;;  %v662_v4 = vmul.f32 %v5455_v44, %v5455_v44  ;;  %v663_v29 = vmul.f32 %v5458_v30, %v5458_v30  ;;  %v5601_v38 = vmul.f32 %v5461_v1, %v5461_v1  ;;  %v670_v9 = vsel %vm445_vm0, %v657_v46, 0.0 }
 0x118   : > { %v665_v25 = vadd.f32 %v617_v26, %v609_v50  ;;  %v678_v27 = vadd.f32 %v618_v33, %v610_v10  ;;  %v683_v40 = vsel %vm445_vm0, %v658_v21, 0.0  ;;  %v691_v34 = vadd.f32 %v619_v35, %v611_v24 }
 0x119   : > { %v696_v31 = vsel %vm445_vm0, %v659_v28, 0.0  ;;  %v704_v61 = vadd.f32 %v620_v49, %v612_v20  ;;  %v709_v44 = vsel %vm445_vm0, %v660_v47, 0.0  ;;  %v717_v60 = vadd.f32 %v621_v16, %v613_v22 }
 0x11a   : > { %v666_v39 = vadd.f32 %v665_v25, %v625_v53  ;;  %v679_v12 = vadd.f32 %v678_v27, %v626_v52  ;;  %v692_v30 = vadd.f32 %v691_v34, %v627_v59  ;;  %v722_v1 = vsel %vm445_vm0, %v661_v41, 0.0 }
 0x11b   : > { %v705_v56 = vadd.f32 %v704_v61, %v628_v62  ;;  %v730_v50 = vadd.f32 %v622_v2, %v5475_v23  ;;  %v718_v10 = vadd.f32 %v717_v60, %v629_v54  ;;  %v735_v21 = vsel %vm445_vm0, %v662_v4, 0.0  ;;  %v6834_v4 = vld [vmem:[#allocation80_spill] sm:$0xff]  ;;  %v6836_v61 = vld [vmem:[#allocation82_spill] sm:$0xff] }
 0x11c   : > { %v667_v26 = vadd.f32 %v666_v39, %v633_v57  ;;  %v680_v46 = vadd.f32 %v679_v12, %v634_v0  ;;  %v693_v24 = vadd.f32 %v692_v30, %v635_v5  ;;  %v743_v52 = vadd.f32 %v5499_v42, %v5479_v3 }
 0x11d   : > { %v706_v33 = vadd.f32 %v705_v56, %v636_v6  ;;  %v731_v28 = vadd.f32 %v730_v50, %v630_v48  ;;  %v719_v25 = vadd.f32 %v718_v10, %v637_v7  ;;  %v748_v59 = vsel %vm445_vm0, %v663_v29, 0.0 }
 0x11e   : > { %v668_v53 = vadd.f32 %v667_v26, %v641_v17  ;;  %v681_v47 = vadd.f32 %v680_v46, %v642_v18  ;;  %v694_v62 = vadd.f32 %v693_v24, %v643_v14  ;;  %v744_v39 = vadd.f32 %v743_v52, %v5519_v55  ;;  %v6832_v18 = vld [vmem:[#allocation79_spill] sm:$0xff]  ;;  %v6833_v55 = vld [vmem:[#allocation81_spill] sm:$0xff] }
 0x11f   : > { %v707_v41 = vadd.f32 %v706_v33, %v644_v15  ;;  %v732_v27 = vadd.f32 %v731_v28, %v638_v63  ;;  %v720_v0 = vadd.f32 %v719_v25, %v645_v43  ;;  %v756_v56 = vadd.f32 %v5503_v51, %v5483_v19  ;;  %v6835_v34 = vld [vmem:[#allocation83_spill] sm:$0xff] }
 0x120   : > { %v669_v57 = vadd.f32 %v668_v53, %v649_v32  ;;  %v682_v54 = vadd.f32 %v681_v47, %v650_v8  ;;  %v695_v48 = vadd.f32 %v694_v62, %v651_v37  ;;  %v745_v42 = vadd.f32 %v744_v39, %v5539_v11 }
 0x121   : > { %v708_v5 = vadd.f32 %v707_v41, %v652_v36  ;;  %v733_v6 = vadd.f32 %v732_v27, %v646_v13  ;;  %v721_v17 = vadd.f32 %v720_v0, %v653_v45  ;;  %v757_v14 = vadd.f32 %v756_v56, %v6832_v18 }
 0x122   : > { %v671_v12 = vadd.f32 %v670_v9, %v669_v57  ;;  %v684_v7 = vadd.f32 %v683_v40, %v682_v54  ;;  %v697_v15 = vadd.f32 %v696_v31, %v695_v48  ;;  %v746_v32 = vadd.f32 %v745_v42, %v6833_v55 }
 0x123   : > { %v710_v63 = vadd.f32 %v709_v44, %v708_v5  ;;  %v734_v60 = vadd.f32 %v733_v6, %v654_v58  ;;  %v723_v29 = vadd.f32 %v722_v1, %v721_v17  ;;  %v758_v51 = vadd.f32 %v757_v14, %v6834_v4  ;;  %v6837_v1 = vld [vmem:[#allocation84_spill] sm:$0xff] }
 0x124   : > { %v672_v8 = vrot.slane %v671_v12, 4  ;;  %v685_v43 = vrot.slane %v684_v7, 4  ;;  %v698_v37 = vrot.slane %v697_v15, 4  ;;  %v747_v11 = vadd.f32 %v746_v32, %v6835_v34 }
 0x125   : > { %v711_v36 = vrot.slane %v710_v63, 4  ;;  %v736_v13 = vadd.f32 %v735_v21, %v734_v60  ;;  %v724_v45 = vrot.slane %v723_v29, 4  ;;  %v759_v30 = vadd.f32 %v758_v51, %v6836_v61 }
 0x126   : > { %v673_v9 = vadd.f32 %v672_v8, %v671_v12  ;;  %v686_v40 = vadd.f32 %v685_v43, %v684_v7  ;;  %v699_v31 = vadd.f32 %v698_v37, %v697_v15  ;;  %v749_v20 = vadd.f32 %v748_v59, %v747_v11 }
 0x127   : > { %v712_v44 = vadd.f32 %v711_v36, %v710_v63  ;;  %v737_v58 = vrot.slane %v736_v13, 4  ;;  %v725_v3 = vadd.f32 %v724_v45, %v723_v29  ;;  %v760_v19 = vadd.f32 %v759_v30, %v6837_v1 }
 0x128   : > { %v674_v22 = vrot.slane %v673_v9, 2  ;;  %v687_v23 = vrot.slane %v686_v40, 2  ;;  %v700_v35 = vrot.slane %v699_v31, 2  ;;  %v750_v2 = vrot.slane %v749_v20, 4 }
 0x129   : > { %v713_v49 = vrot.slane %v712_v44, 2  ;;  %v738_v16 = vadd.f32 %v737_v58, %v736_v13  ;;  %v726_v46 = vrot.slane %v725_v3, 2  ;;  %v761_v10 = vsel %vm445_vm0, %v5601_v38, 0.0 }
 0x12a   : > { %v675_v50 = vadd.f32 %v674_v22, %v673_v9  ;;  %v688_v26 = vadd.f32 %v687_v23, %v686_v40  ;;  %v701_v21 = vadd.f32 %v700_v35, %v699_v31  ;;  %v751_v28 = vadd.f32 %v750_v2, %v749_v20 }
 0x12b   : > { %v714_v24 = vadd.f32 %v713_v49, %v712_v44  ;;  %v739_v33 = vrot.slane %v738_v16, 2  ;;  %v727_v47 = vadd.f32 %v726_v46, %v725_v3  ;;  %v762_v25 = vadd.f32 %v761_v10, %v760_v19 }
 0x12c   : > { %v676_v52 = vrot.slane %v675_v50, 1  ;;  %v689_v53 = vrot.slane %v688_v26, 1  ;;  %v702_v59 = vrot.slane %v701_v21, 1  ;;  %v752_v27 = vrot.slane %v751_v28, 2 }
 0x12d   : > { %v715_v62 = vrot.slane %v714_v24, 1  ;;  %v740_v41 = vadd.f32 %v739_v33, %v738_v16  ;;  %v728_v54 = vrot.slane %v727_v47, 1  ;;  %v763_v0 = vrot.slane %v762_v25, 4 }
 0x12e   : > { %v677_v39 = vadd.f32 %v676_v52, %v675_v50  ;;  %v690_v57 = vadd.f32 %v689_v53, %v688_v26  ;;  %v703_v56 = vadd.f32 %v702_v59, %v701_v21  ;;  %v753_v38 = vadd.f32 %v752_v27, %v751_v28 }
 0x12f   : > { %v716_v48 = vadd.f32 %v715_v62, %v714_v24  ;;  %v741_v5 = vrot.slane %v740_v41, 1  ;;  %v729_v6 = vadd.f32 %v728_v54, %v727_v47  ;;  %v764_v42 = vadd.f32 %v763_v0, %v762_v25  ;;  %v777_v47 = vld [vmem:[#allocation7] sm:$0xff] }
 0x130   : > { %v769_v12 = vmul.f32 0.020408163, %v677_v39  ;;  %v770_v7 = vmul.f32 0.020408163, %v690_v57  ;;  %v754_v18 = vrot.slane %v753_v38, 1  ;;  %v809_v31 = vlaneseq }
 0x131   : > { %v742_v17 = vadd.f32 %v741_v5, %v740_v41  ;;  %v771_v14 = vmul.f32 0.020408163, %v703_v56  ;;  %v772_v15 = vmul.f32 0.020408163, %v716_v48  ;;  %v765_v63 = vrot.slane %v764_v42, 2  ;;  %v5639_v41 = vld [vmem:[#allocation8] sm:$0xff] }
 0x132   : > { %v773_v60 = vmul.f32 0.020408163, %v729_v6  ;;  %v778_v55 = vadd.f32 1e-05, %v769_v12  ;;  %v755_v32 = vadd.f32 %v754_v18, %v753_v38  ;;  %v779_v43 = vadd.f32 1e-05, %v770_v7 }
 0x133   : > { %v774_v8 = vmul.f32 0.020408163, %v742_v17  ;;  %v780_v29 = vadd.f32 1e-05, %v771_v14  ;;  %v766_v4 = vadd.f32 %v765_v63, %v764_v42  ;;  %v781_v51 = vadd.f32 1e-05, %v772_v15 }
 0x134   : > { %v782_v37 = vadd.f32 1e-05, %v773_v60  ;;  %4498 = vrsqrt.f32 %v778_v55  ;;  %v775_v36 = vmul.f32 0.020408163, %v755_v32  ;;  %v4780_v61 = vmov 1966171168  }
 0x135   : > { %v783_v13 = vadd.f32 1e-05, %v774_v8  ;;  %4500 = vrsqrt.f32 %v779_v43  ;;  %v767_v34 = vrot.slane %v766_v4, 1  ;;  %v807_v30 = vunpack.c.l.s4 %v4780_v61  ;;  %v6838_v60 = vld [vmem:[#allocation52_spill] sm:$0xff]  ;;  %v6840_v43 = vld [vmem:[#allocation55_spill] sm:$0xff] }
 0x136   : > { %4502 = vrsqrt.f32 %v780_v29  ;;  %v784_v9 = vadd.f32 1e-05, %v775_v36  ;;  %v5625_v58 = vshrl.u32 %v809_v31, 7  ;;  %v6839_v32 = vld [vmem:[#allocation56_spill] sm:$0xff] }
 0x137   : > { %4504 = vrsqrt.f32 %v781_v51  ;;  %v768_v11 = vadd.f32 %v767_v34, %v766_v4  ;;  %v808_v44 = vunpack.c.0.s8 %v807_v30  ;;  %v6841_v4 = vld [vmem:[#allocation61_spill] sm:$0xff] }
 0x138   : > { %4506 = vrsqrt.f32 %v782_v37  ;;  %v5637_v59 = vsub.s32 1, %v5625_v58  ;;  %v5642_v27 = vsub.s32 3, %v5625_v58  ;;  %v5645_v39 = vsub.s32 0, %v5625_v58  ;;  %v6842_v37 = vld [vmem:[#allocation51_spill] sm:$0xff] }
 0x139   : > { %4508 = vrsqrt.f32 %v783_v13  ;;  %v776_v40 = vmul.f32 0.020408163, %v768_v11  ;;  %v5628_v19 = vsub.s32 %v808_v44, %v5625_v58  ;;  %v5648_v57 = vsub.s32 2, %v5625_v58  ;;  %v6843_v13 = vld [vmem:[#allocation54_spill] sm:$0xff]  ;;  %v6844_v11 = vld [vmem:[#allocation53_spill] sm:$0xff] }
 0x13a   : > { %4510 = vrsqrt.f32 %v784_v9  ;;  %v876_v54 = vsub.s32 5, %v5625_v58  ;;  %v884_v0 = vsub.s32 7, %v5625_v58  ;;  %v5656_v48 = vrot.slane %v5639_v41, %v5637_v59 }
 0x13b   : > { %v785_v45 = vadd.f32 1e-05, %v776_v40  ;;  %v5660_v5 = vrot.slane %v5639_v41, %v5642_v27  ;;  %v5664_v38 = vrot.slane %v5639_v41, %v5645_v39  ;;  %v5668_v6 = vrot.slane %v5639_v41, %v5648_v57  ;;  %v6845_v40 = vld [vmem:[#allocation57_spill] sm:$0xff] }
 0x13c   : > { %v5690_v14 = vrot.slane %v5639_v41, %v876_v54  ;;  %v5696_v63 = vrot.slane %v5639_v41, %v884_v0 }
 0x13d   : > { %4512 = vrsqrt.f32 %v785_v45 }
 0x141   : > { %v4499_v20 = vpop.eup %4498 }
 0x142   : > { %v4501_v22 = vpop.eup %4500 }
 0x143   : > { %v4503_v23 = vpop.eup %4502  ;;  %v802_v1 = vcombine.low %v4499_v20, %v4501_v22 }
 0x144   : > { %v4505_v3 = vpop.eup %4504 }
 0x145   : > { %v4507_v35 = vpop.eup %4506  ;;  %v803_v49 = vcombine.low %v4503_v23, %v4505_v3  ;;  %v812_v50 = vrot.slane %v802_v1, %v5628_v19 }
 0x146   : > { %v4509_v16 = vpop.eup %4508 }
 0x147   : > { %v804_v2 = vcombine.low %v4507_v35, %v4509_v16  ;;  %v819_v26 = vrot.slane %v803_v49, %v5628_v19  ;;  %v4511_v46 = vpop.eup %4510 }
 0x149   : > { %v826_v24 = vrot.slane %v804_v2, %v5628_v19  ;;  %v834_v33 = vcombine.low %v812_v50, %v819_v26  ;;  %v4210_v2 = vld [vmem:[%s5026_s0 + $0x4e0] ss:$16 sps:$4 sm:$0xff]  }
 0x14a   : > { %v4513_v10 = vpop.eup %4512  ;;  %v4213_v50 = vld [vmem:[%s5026_s0 + $0x6e0] ss:$16 sps:$4 sm:$0xff]  }
 0x14b   : > { %v805_v21 = vcombine.low %v4511_v46, %v4513_v10  ;;  %v842_v53 = vrot.slane %v834_v33, %v5628_v19 }
 0x14d   : > { %v833_v28 = vrot.slane %v805_v21, %v5628_v19 }
 0x14f   : > { %v835_v52 = vcombine.low %v826_v24, %v833_v28  ;;  %v6846_v28 = vld [vmem:[#allocation68_spill] sm:$0xff] }
 0x151   : > { %v849_v25 = vrot.slane %v835_v52, %v5628_v19 }
 0x153   : > { %v850_v62 = vcombine.low %v842_v53, %v849_v25  ;;  %v6847_v53 = vld [vmem:[#allocation76_spill] sm:$0xff] }
 0x155   : > { %v5652_v56 = vmul.f32 %v850_v62, %v777_v47 }
 0x157   : > { %v5672_v42 = vrot.slane %v5652_v56, %v5637_v59  ;;  %v5676_v12 = vrot.slane %v5652_v56, %v5642_v27  ;;  %v5680_v7 = vrot.slane %v5652_v56, %v5645_v39  ;;  %v5684_v17 = vrot.slane %v5652_v56, %v5648_v57 }
 0x158   : > { %v5687_v18 = vrot.slane %v5652_v56, %v876_v54  ;;  %v5693_v15 = vrot.slane %v5652_v56, %v884_v0  ;;  %v4218_v54 = vld [vmem:[%s5026_s0 + $0x4c4] ss:$16 sps:$4 sm:$0xff]  }
 0x159   : > { %v895_v55 = vmul.f32 %v5672_v42, %v6838_v60  ;;  %v903_v8 = vmul.f32 %v5672_v42, %v6839_v32  ;;  %v897_v29 = vmul.f32 %v5676_v12, %v6840_v43  ;;  %v905_v51 = vmul.f32 %v5676_v12, %v6841_v4  ;;  %v4221_v0 = vld [vmem:[%s5026_s0 + $0x6c4] ss:$16 sps:$4 sm:$0xff]   ;;  %v6848_v60 = vld [vmem:[#allocation70_spill] sm:$0xff] }
 0x15a   : > { %v894_v36 = vmul.f32 %v5680_v7, %v6842_v37  ;;  %v902_v34 = vmul.f32 %v5680_v7, %v6843_v13  ;;  %v896_v9 = vmul.f32 %v5684_v17, %v6844_v11  ;;  %v904_v45 = vmul.f32 %v5684_v17, %v6845_v40  ;;  %v6849_v32 = vld [vmem:[#allocation78_spill] sm:$0xff]  ;;  %v6850_v4 = vld [vmem:[#allocation67_spill] sm:$0xff] }
 0x15b   : > { %v993_v61 = vadd.f32 %v5656_v48, %v895_v55  ;;  %v1001_v30 = vadd.f32 %v5656_v48, %v903_v8  ;;  %v995_v31 = vadd.f32 %v5660_v5, %v897_v29  ;;  %v1003_v44 = vadd.f32 %v5660_v5, %v905_v51  ;;  %v6851_v13 = vld [vmem:[#allocation75_spill] sm:$0xff] }
 0x15c   : > { %v992_v20 = vadd.f32 %v5664_v38, %v894_v36  ;;  %v1000_v22 = vadd.f32 %v5664_v38, %v902_v34  ;;  %v994_v23 = vadd.f32 %v5668_v6, %v896_v9  ;;  %v1002_v3 = vadd.f32 %v5668_v6, %v904_v45  ;;  %v4216_v11 = vld [vmem:[%s5026_s0 + $0x4c0] ss:$16 sps:$4 sm:$0xff]  }
 0x15d   : > { %v1049_v1 = vmax.f32 %v993_v61, 0.0  ;;  %v1057_v35 = vmax.f32 %v1001_v30, 0.0  ;;  %v1051_v49 = vmax.f32 %v995_v31, 0.0  ;;  %v1059_v16 = vmax.f32 %v1003_v44, 0.0  ;;  %v4219_v9 = vld [vmem:[%s5026_s0 + $0x6c0] ss:$16 sps:$4 sm:$0xff]  }
 0x15e   : > { %v1048_v26 = vmax.f32 %v992_v20, 0.0  ;;  %v1056_v46 = vmax.f32 %v1000_v22, 0.0  ;;  %v1050_v10 = vmax.f32 %v994_v23, 0.0  ;;  %v1058_v21 = vmax.f32 %v1002_v3, 0.0  ;;  %v6852_v30 = vld [vmem:[#allocation69_spill] sm:$0xff] }
 0x15f   : > { %v5724_v24 = vpack.c.bf16 %v1057_v35, %v1049_v1  ;;  %v5726_v33 = vpack.c.bf16 %v1059_v16, %v1051_v49  ;;  %v911_v52 = vmul.f32 %v5672_v42, %v6846_v28  ;;  %v919_v47 = vmul.f32 %v5672_v42, %v6847_v53  ;;  %v4224_v44 = vld [vmem:[%s5026_s0 + $0x4a4] ss:$16 sps:$4 sm:$0xff]   ;;  %v6855_v28 = vld [vmem:[#allocation36_spill] sm:$0xff]  ;;  %v4222_v53 = vld [vmem:[%s5026_s0 + $0x4a0] ss:$16 sps:$4 sm:$0xff]  }
 0x160   : > { %v5732_v25 = vpack.c.bf16 %v1056_v46, %v1048_v26  ;;  %v5734_v62 = vpack.c.bf16 %v1058_v21, %v1050_v10  ;;  %v913_v55 = vmul.f32 %v5676_v12, %v6848_v60  ;;  %v921_v8 = vmul.f32 %v5676_v12, %v6849_v32  ;;  %v4227_v20 = vld [vmem:[%s5026_s0 + $0x6a4] ss:$16 sps:$4 sm:$0xff]   ;;  %v6856_v60 = vld [vmem:[#allocation30_spill] sm:$0xff] }
 0x161   : > { %2704 = vmatprep.mubr.bf16.mxu0 %v5724_v24  ;;  %2775 = vmatprep.mubr.bf16.mxu1 %v5726_v33  ;;  %v1009_v43 = vadd.f32 %v5656_v48, %v911_v52  ;;  %v1017_v29 = vadd.f32 %v5656_v48, %v919_v47  ;;  %v910_v51 = vmul.f32 %v5680_v7, %v6850_v4  ;;  %v6853_v1 = vld [vmem:[#allocation77_spill] sm:$0xff]  ;;  %v6857_v32 = vld [vmem:[#allocation38_spill] sm:$0xff] }
 0x162   : > { %2705 = vmatmul.mubr.bf16.vlgmr.msra.gmra.mxu0 %v5732_v25  ;;  %2776 = vmatmul.mubr.bf16.vlgmr.msra.gmra.mxu1 %v5734_v62  ;;  %v1011_v37 = vadd.f32 %v5660_v5, %v913_v55  ;;  %v1019_v36 = vadd.f32 %v5660_v5, %v921_v8  ;;  %v918_v34 = vmul.f32 %v5680_v7, %v6851_v13  ;;  %v4225_v47 = vld [vmem:[%s5026_s0 + $0x6a0] ss:$16 sps:$4 sm:$0xff]  }
 0x163   : > { %2815 = vmatpush1.bf16.msra.mxu0 %v4210_v2  ;;  %2886 = vmatpush1.bf16.msra.mxu1 %v4213_v50  ;;  %v1065_v40 = vmax.f32 %v1009_v43, 0.0  ;;  %v1073_v45 = vmax.f32 %v1017_v29, 0.0  ;;  %v1008_v61 = vadd.f32 %v5664_v38, %v910_v51  ;;  %v912_v31 = vmul.f32 %v5684_v17, %v6852_v30  ;;  %v6854_v50 = vld [vmem:[#allocation28_spill] sm:$0xff]  ;;  %v4230_v43 = vld [vmem:[%s5026_s0 + $0x484] ss:$16 sps:$4 sm:$0xff]  }
 0x164   : > { %2816 = vmatprep.subr.bf16.mxu0 %v4218_v54  ;;  %2887 = vmatprep.subr.bf16.mxu1 %v4221_v0  ;;  %v1067_v22 = vmax.f32 %v1011_v37, 0.0  ;;  %v1075_v23 = vmax.f32 %v1019_v36, 0.0  ;;  %v1016_v3 = vadd.f32 %v5664_v38, %v918_v34  ;;  %v920_v35 = vmul.f32 %v5684_v17, %v6853_v1  ;;  %v4233_v29 = vld [vmem:[%s5026_s0 + $0x684] ss:$16 sps:$4 sm:$0xff]  }
 0x165   : > { %v5764_v49 = vpack.c.bf16 %v1073_v45, %v1065_v40  ;;  %v1064_v16 = vmax.f32 %v1008_v61, 0.0  ;;  %v1010_v2 = vadd.f32 %v5668_v6, %v912_v31  ;;  %v927_v26 = vmul.f32 %v5672_v42, %v6854_v50  ;;  %v6858_v36 = vld [vmem:[#allocation27_spill] sm:$0xff] }
 0x166   : > { %v5769_v46 = vpack.c.bf16 %v1075_v23, %v1067_v22  ;;  %v1072_v10 = vmax.f32 %v1016_v3, 0.0  ;;  %v1018_v21 = vadd.f32 %v5668_v6, %v920_v35  ;;  %v935_v52 = vmul.f32 %v5672_v42, %v6855_v28  ;;  %v6859_v40 = vld [vmem:[#allocation35_spill] sm:$0xff] }
 0x167   : > { %2817 = vmatpush1.bf16.msra.mxu0 %v4216_v11  ;;  %2888 = vmatpush1.bf16.msra.mxu1 %v4219_v9  ;;  %v1066_v54 = vmax.f32 %v1010_v2, 0.0  ;;  %v1025_v0 = vadd.f32 %v5656_v48, %v927_v26  ;;  %v929_v55 = vmul.f32 %v5676_v12, %v6856_v60  ;;  %v937_v8 = vmul.f32 %v5676_v12, %v6857_v32  ;;  %v4228_v22 = vld [vmem:[%s5026_s0 + $0x480] ss:$16 sps:$4 sm:$0xff]   ;;  %v4236_v50 = vld [vmem:[%s5026_s0 + $0x464] ss:$16 sps:$4 sm:$0xff]  }
 0x168   : > { %2818 = vmatprep.subr.bf16.mxu0 %v4224_v44  ;;  %2889 = vmatprep.subr.bf16.mxu1 %v4227_v20  ;;  %v5783_v4 = vpack.c.bf16 %v1072_v10, %v1064_v16  ;;  %v1074_v51 = vmax.f32 %v1018_v21, 0.0  ;;  %v1033_v37 = vadd.f32 %v5656_v48, %v935_v52  ;;  %v926_v13 = vmul.f32 %v5680_v7, %v6858_v36  ;;  %v6860_v44 = vld [vmem:[#allocation29_spill] sm:$0xff]  ;;  %v6862_v52 = vld [vmem:[#allocation44_spill] sm:$0xff]  ;;  %v6863_v60 = vld [vmem:[#allocation43_spill] sm:$0xff] }
 0x169   : > { %2714 = vmatprep.mubr.bf16.mxu0 %v5764_v49  ;;  %2785 = vmatprep.mubr.bf16.mxu1 %v5769_v46  ;;  %v1081_v34 = vmax.f32 %v1025_v0, 0.0  ;;  %v1027_v11 = vadd.f32 %v5660_v5, %v929_v55  ;;  %v1035_v9 = vadd.f32 %v5660_v5, %v937_v8  ;;  %v934_v45 = vmul.f32 %v5680_v7, %v6859_v40  ;;  %v4231_v23 = vld [vmem:[%s5026_s0 + $0x680] ss:$16 sps:$4 sm:$0xff]   ;;  %v4239_v26 = vld [vmem:[%s5026_s0 + $0x664] ss:$16 sps:$4 sm:$0xff]  }
 0x16a   : > { %2715 = vmatmul.mubr.bf16.gmra.mxu0 %v5783_v4  ;;  %v5795_v61 = vpack.c.bf16 %v1074_v51, %v1066_v54  ;;  %v1089_v30 = vmax.f32 %v1033_v37, 0.0  ;;  %v1024_v31 = vadd.f32 %v5664_v38, %v926_v13  ;;  %v928_v20 = vmul.f32 %v5684_v17, %v6860_v44  ;;  %v6861_v16 = vld [vmem:[#allocation37_spill] sm:$0xff] }
 0x16b   : > { %2819 = vmatpush1.bf16.msra.mxu0 %v4222_v53  ;;  %2890 = vmatpush1.bf16.msra.mxu1 %v4225_v47  ;;  %v1083_v3 = vmax.f32 %v1027_v11, 0.0  ;;  %v1091_v1 = vmax.f32 %v1035_v9, 0.0  ;;  %v1032_v35 = vadd.f32 %v5664_v38, %v934_v45  ;;  %v936_v2 = vmul.f32 %v5684_v17, %v6861_v16  ;;  %v4234_v37 = vld [vmem:[%s5026_s0 + $0x460] ss:$16 sps:$4 sm:$0xff]   ;;  %v4245_v40 = vld [vmem:[%s5026_s0 + $0x644] ss:$16 sps:$4 sm:$0xff]  }
 0x16c   : > { %2820 = vmatprep.subr.bf16.mxu0 %v4230_v43  ;;  %2891 = vmatprep.subr.bf16.mxu1 %v4233_v29  ;;  %v5807_v10 = vpack.c.bf16 %v1089_v30, %v1081_v34  ;;  %v1080_v21 = vmax.f32 %v1024_v31, 0.0  ;;  %v1026_v28 = vadd.f32 %v5668_v6, %v928_v20  ;;  %v943_v53 = vmul.f32 %v5672_v42, %v6862_v52  ;;  %v6864_v43 = vld [vmem:[#allocation46_spill] sm:$0xff]  ;;  %v6865_v29 = vld [vmem:[#allocation45_spill] sm:$0xff]  ;;  %v6866_v11 = vld [vmem:[#allocation59_spill] sm:$0xff] }
 0x16d   : > { %2786 = vmatmul.mubr.bf16.gmra.mxu1 %v5795_v61  ;;  %v5813_v47 = vpack.c.bf16 %v1091_v1, %v1083_v3  ;;  %v1088_v54 = vmax.f32 %v1032_v35, 0.0  ;;  %v1034_v0 = vadd.f32 %v5668_v6, %v936_v2  ;;  %v942_v55 = vmul.f32 %v5680_v7, %v6863_v60  ;;  %v4237_v36 = vld [vmem:[%s5026_s0 + $0x660] ss:$16 sps:$4 sm:$0xff]   ;;  %v6867_v45 = vld [vmem:[#allocation64_spill] sm:$0xff]  ;;  %v6868_v20 = vld [vmem:[#allocation62_spill] sm:$0xff] }
 0x16e   : > { %2724 = vmatprep.mubr.bf16.mxu0 %v5807_v10  ;;  %v1082_v32 = vmax.f32 %v1026_v28, 0.0  ;;  %v1041_v8 = vadd.f32 %v5656_v48, %v943_v53  ;;  %v945_v42 = vmul.f32 %v5676_v12, %v6864_v43  ;;  %v944_v51 = vmul.f32 %v5684_v17, %v6865_v29  ;;  %v4242_v48 = vld [vmem:[%s5026_s0 + $0x444] ss:$16 sps:$4 sm:$0xff]   ;;  %v4240_v35 = vld [vmem:[%s5026_s0 + $0x440] ss:$16 sps:$4 sm:$0xff]  }
 0x16f   : > { %2821 = vmatpush1.bf16.msra.mxu0 %v4228_v22  ;;  %2892 = vmatpush1.bf16.msra.mxu1 %v4231_v23  ;;  %v5826_v13 = vpack.c.bf16 %v1088_v54, %v1080_v21  ;;  %v1090_v7 = vmax.f32 %v1034_v0, 0.0  ;;  %v1040_v34 = vadd.f32 %v5664_v38, %v942_v55  ;;  %v899_v9 = vmul.f32 %v5687_v18, %v6866_v11  ;;  %v4243_v16 = vld [vmem:[%s5026_s0 + $0x640] ss:$16 sps:$4 sm:$0xff]   ;;  %v4251_v21 = vld [vmem:[%s5026_s0 + $0x624] ss:$16 sps:$4 sm:$0xff]  }
 0x170   : > { %2822 = vmatprep.subr.bf16.mxu0 %v4236_v50  ;;  %2893 = vmatprep.subr.bf16.mxu1 %v4239_v26  ;;  %v1097_v12 = vmax.f32 %v1041_v8, 0.0  ;;  %v1043_v17 = vadd.f32 %v5660_v5, %v945_v42  ;;  %v907_v30 = vmul.f32 %v5687_v18, %v6867_v45  ;;  %v1042_v38 = vadd.f32 %v5668_v6, %v944_v51  ;;  %v6869_v6 = vld [vmem:[#allocation66_spill] sm:$0xff]  ;;  %v4248_v26 = vld [vmem:[%s5026_s0 + $0x424] ss:$16 sps:$4 sm:$0xff]   ;;  %v4249_v8 = vld [vmem:[%s5026_s0 + $0x620] ss:$16 sps:$4 sm:$0xff]  }
 0x171   : > { %2795 = vmatprep.mubr.bf16.mxu1 %v5813_v47  ;;  %v5837_v31 = vpack.c.bf16 %v1090_v7, %v1082_v32  ;;  %v997_v44 = vadd.f32 %v5690_v14, %v899_v9  ;;  %v901_v22 = vmul.f32 %v5693_v15, %v6868_v20  ;;  %v1096_v5 = vmax.f32 %v1040_v34, 0.0  ;;  %v4246_v32 = vld [vmem:[%s5026_s0 + $0x420] ss:$16 sps:$4 sm:$0xff]   ;;  %v4254_v42 = vld [vmem:[%s5026_s0 + $0x404] ss:$16 sps:$4 sm:$0xff]  }
 0x172   : > { %2725 = vmatmul.mubr.bf16.gmra.mxu0 %v5826_v13  ;;  %v5844_v23 = vpack.c.bf16 %v1097_v12, %v1097_v12  ;;  %v1099_v3 = vmax.f32 %v1043_v17, 0.0  ;;  %v1005_v1 = vadd.f32 %v5690_v14, %v907_v30  ;;  %v909_v2 = vmul.f32 %v5693_v15, %v6869_v6  ;;  %v4257_v29 = vld [vmem:[%s5026_s0 + $0x604] ss:$16 sps:$4 sm:$0xff]   ;;  %v4252_v7 = vld [vmem:[%s5026_s0 + $0x400] ss:$16 sps:$4 sm:$0xff]  }
 0x173   : > { %2823 = vmatpush1.bf16.msra.mxu0 %v4234_v37  ;;  %2894 = vmatpush1.bf16.msra.mxu1 %v4237_v36  ;;  %v999_v50 = vadd.f32 %v5696_v63, %v901_v22  ;;  %v1098_v52 = vmax.f32 %v1042_v38, 0.0  ;;  %v1053_v53 = vmax.f32 %v997_v44, 0.0  ;;  %v5859_v60 = vpack.c.bf16 %v1096_v5, %v1096_v5  ;;  %v4255_v34 = vld [vmem:[%s5026_s0 + $0x600] ss:$16 sps:$4 sm:$0xff]   ;;  %v4260_v11 = vld [vmem:[%s5026_s0 + $0x5e4] ss:$16 sps:$4 sm:$0xff]  }
 0x174   : > { %2824 = vmatprep.subr.bf16.mxu0 %v4242_v48  ;;  %2895 = vmatprep.subr.bf16.mxu1 %v4245_v40  ;;  %v5854_v28 = vpack.c.bf16 %v1099_v3, %v1099_v3  ;;  %v1061_v54 = vmax.f32 %v1005_v1, 0.0  ;;  %v1007_v0 = vadd.f32 %v5696_v63, %v909_v2  ;;  %v4263_v9 = vld [vmem:[%s5026_s0 + $0x7e4] ss:$16 sps:$4 sm:$0xff]   ;;  %v4258_v48 = vld [vmem:[%s5026_s0 + $0x5e0] ss:$16 sps:$4 sm:$0xff]   ;;  %v872_v1 = vsub.s32 4, %v5625_v58 }
 0x175   : > { %2796 = vmatmul.mubr.bf16.gmra.mxu1 %v5837_v31  ;;  %2734 = vmatprep.mubr.bf16.mxu0 %v5844_v23  ;;  %v1055_v55 = vmax.f32 %v999_v50, 0.0  ;;  %v5866_v51 = vpack.c.bf16 %v1098_v52, %v1098_v52  ;;  %v4261_v40 = vld [vmem:[%s5026_s0 + $0x7e0] ss:$16 sps:$4 sm:$0xff]   ;;  %v4266_v12 = vld [vmem:[%s5026_s0 + $0x5c4] ss:$16 sps:$4 sm:$0xff]  }
 0x176   : > { %2805 = vmatprep.mubr.bf16.mxu1 %v5854_v28  ;;  %v1063_v43 = vmax.f32 %v1007_v0, 0.0  ;;  %v5868_v37 = vpack.c.bf16 %v1061_v54, %v1053_v53  ;;  %v4269_v17 = vld [vmem:[%s5026_s0 + $0x7c4] ss:$16 sps:$4 sm:$0xff]   ;;  %v4264_v45 = vld [vmem:[%s5026_s0 + $0x5c0] ss:$16 sps:$4 sm:$0xff]   ;;  %v6870_v0 = vld [vmem:[#allocation58_spill] sm:$0xff] }
 0x177   : > { %2825 = vmatpush1.bf16.msra.mxu0 %v4240_v35  ;;  %2896 = vmatpush1.bf16.msra.mxu1 %v4243_v16  ;;  %v4267_v30 = vld [vmem:[%s5026_s0 + $0x7c0] ss:$16 sps:$4 sm:$0xff]   ;;  %v4272_v38 = vld [vmem:[%s5026_s0 + $0x5a4] ss:$16 sps:$4 sm:$0xff]   ;;  %v880_v35 = vsub.s32 6, %v5625_v58 }
 0x178   : > { %2826 = vmatprep.subr.bf16.mxu0 %v4248_v26  ;;  %2897 = vmatprep.subr.bf16.mxu1 %v4251_v21  ;;  %v5871_v36 = vpack.c.bf16 %v1063_v43, %v1055_v55  ;;  %v4275_v44 = vld [vmem:[%s5026_s0 + $0x7a4] ss:$16 sps:$4 sm:$0xff]   ;;  %v4270_v20 = vld [vmem:[%s5026_s0 + $0x5a0] ss:$16 sps:$4 sm:$0xff]   ;;  %v5899_v26 = vrot.slane %v5652_v56, %v872_v1  ;;  %v6872_v43 = vld [vmem:[#allocation60_spill] sm:$0xff] }
 0x179   : > { %v4273_v22 = vld [vmem:[%s5026_s0 + $0x7a0] ss:$16 sps:$4 sm:$0xff]   ;;  %v4278_v5 = vld [vmem:[%s5026_s0 + $0x584] ss:$16 sps:$4 sm:$0xff]   ;;  %v5902_v21 = vrot.slane %v5652_v56, %v880_v35  ;;  %v5913_v56 = vrot.slane %v5639_v41, %v872_v1 }
 0x17a   : > { %2735 = vmatmul.mubr.bf16.gmra.mxu0 %v5859_v60  ;;  %v4281_v3 = vld [vmem:[%s5026_s0 + $0x784] ss:$16 sps:$4 sm:$0xff]   ;;  %v4276_v16 = vld [vmem:[%s5026_s0 + $0x580] ss:$16 sps:$4 sm:$0xff]   ;;  %v898_v55 = vmul.f32 %v5899_v26, %v6870_v0 }
 0x17b   : > { %2827 = vmatpush1.bf16.msra.mxu0 %v4246_v32  ;;  %2898 = vmatpush1.bf16.msra.mxu1 %v4249_v8  ;;  %v4279_v6 = vld [vmem:[%s5026_s0 + $0x780] ss:$16 sps:$4 sm:$0xff]   ;;  %v4284_v2 = vld [vmem:[%s5026_s0 + $0x564] ss:$16 sps:$4 sm:$0xff]  }
 0x17c   : > { %2828 = vmatprep.subr.bf16.mxu0 %v4254_v42  ;;  %2899 = vmatprep.subr.bf16.mxu1 %v4257_v29  ;;  %v4287_v50 = vld [vmem:[%s5026_s0 + $0x764] ss:$16 sps:$4 sm:$0xff]   ;;  %v4282_v58 = vld [vmem:[%s5026_s0 + $0x560] ss:$16 sps:$4 sm:$0xff]   ;;  %v900_v42 = vmul.f32 %v5902_v21, %v6872_v43 }
 0x17d   : > { %2806 = vmatmul.mubr.bf16.gmra.mxu1 %v5866_v51  ;;  %2846 = vmatprep.mubr.bf16.mxu0 %v5868_v37  ;;  %v4285_v52 = vld [vmem:[%s5026_s0 + $0x760] ss:$16 sps:$4 sm:$0xff]   ;;  %v4290_v53 = vld [vmem:[%s5026_s0 + $0x544] ss:$16 sps:$4 sm:$0xff]  }
 0x17e   : > { %2917 = vmatprep.mubr.bf16.mxu1 %v5871_v36  ;;  %v4293_v54 = vld [vmem:[%s5026_s0 + $0x744] ss:$16 sps:$4 sm:$0xff]  }
 0x17f   : > { %2829 = vmatpush1.bf16.msra.mxu0 %v4252_v7  ;;  %2900 = vmatpush1.bf16.msra.mxu1 %v4255_v34  ;;  %v6871_v32 = vld [vmem:[#allocation63_spill] sm:$0xff]  ;;  %v6873_v29 = vld [vmem:[#allocation65_spill] sm:$0xff]  ;;  %v5920_v34 = vrot.slane %v5639_v41, %v880_v35  ;;  %v996_v41 = vadd.f32 %v5913_v56, %v898_v55 }
 0x180   : > { %2830 = vmatprep.subr.bf16.mxu0 %v4260_v11  ;;  %2901 = vmatprep.subr.bf16.mxu1 %v4263_v9  ;;  %v906_v8 = vmul.f32 %v5899_v26, %v6871_v32  ;;  %v908_v7 = vmul.f32 %v5902_v21, %v6873_v29  ;;  %v4288_v11 = vld [vmem:[%s5026_s0 + $0x540] ss:$16 sps:$4 sm:$0xff]  }
 0x181   : > { %v4291_v9 = vld [vmem:[%s5026_s0 + $0x740] ss:$16 sps:$4 sm:$0xff]   ;;  %v1052_v55 = vmax.f32 %v996_v41, 0.0  ;;  %v4308_v41 = vld [vmem:[%s5026_s0 + $0xec] ss:$16 sps:$4 sm:$0xff]  }
 0x182   : > { %v1006_v1 = vadd.f32 %v5920_v34, %v908_v7  ;;  %v4294_v35 = vld [vmem:[%s5026_s0 + $0x520] ss:$16 sps:$4 sm:$0xff]  }
 0x183   : > { %2831 = vmatpush2.bf16.msra.mxu0 %v4258_v48  ;;  %2902 = vmatpush2.bf16.msra.mxu1 %v4261_v40  ;;  %v6874_v48 = vld [vmem:[#allocation72_spill] sm:$0xff]  ;;  %v6880_v7 = vld [vmem:[#allocation73_spill] sm:$0xff] }
 0x184   : > { %2832 = vmatprep.subr.bf16.mxu0 %v4266_v12  ;;  %2903 = vmatprep.subr.bf16.mxu1 %v4269_v17  ;;  %v915_v40 = vmul.f32 %v5687_v18, %v6874_v48  ;;  %v6875_v12 = vld [vmem:[#allocation24_spill] sm:$0xff]  ;;  %v1062_v29 = vmax.f32 %v1006_v1, 0.0 }
 0x185   : > { %v923_v17 = vmul.f32 %v5687_v18, %v6875_v12  ;;  %v4303_v12 = vld [vmem:[%s5026_s0 + $0x700] ss:$16 sps:$4 sm:$0xff]  }
 0x187   : > { %2833 = vmatpush2.bf16.msra.mxu0 %v4264_v45  ;;  %2904 = vmatpush2.bf16.msra.mxu1 %v4267_v30  ;;  %v4296_v45 = vld [vmem:[%s5026_s0 + $0x524] ss:$16 sps:$4 sm:$0xff]  }
 0x188   : > { %2834 = vmatprep.subr.bf16.mxu0 %v4272_v38  ;;  %2905 = vmatprep.subr.bf16.mxu1 %v4275_v44  ;;  %v4299_v30 = vld [vmem:[%s5026_s0 + $0x724] ss:$16 sps:$4 sm:$0xff]   ;;  %v1004_v38 = vadd.f32 %v5913_v56, %v906_v8  ;;  %v6876_v44 = vld [vmem:[#allocation74_spill] sm:$0xff] }
 0x18a   : > { %v1060_v32 = vmax.f32 %v1004_v38, 0.0  ;;  %v4311_v38 = vld [vmem:[%s5026_s0 + $0x2ec] ss:$16 sps:$4 sm:$0xff]  }
 0x18b   : > { %2835 = vmatpush2.bf16.msra.mxu0 %v4270_v20  ;;  %2906 = vmatpush2.bf16.msra.mxu1 %v4273_v22  ;;  %v917_v20 = vmul.f32 %v5693_v15, %v6876_v44  ;;  %v6877_v22 = vld [vmem:[#allocation26_spill] sm:$0xff] }
 0x18c   : > { %2836 = vmatprep.subr.bf16.mxu0 %v4278_v5  ;;  %2907 = vmatprep.subr.bf16.mxu1 %v4281_v3  ;;  %v925_v5 = vmul.f32 %v5693_v15, %v6877_v22  ;;  %v998_v3 = vadd.f32 %v5920_v34, %v900_v42 }
 0x18d   : > { %v1015_v8 = vadd.f32 %v5696_v63, %v917_v20  ;;  %v6882_v20 = vld [vmem:[#allocation32_spill] sm:$0xff] }
 0x18e   : > { %v1023_v43 = vadd.f32 %v5696_v63, %v925_v5  ;;  %v1054_v42 = vmax.f32 %v998_v3, 0.0  ;;  %v931_v22 = vmul.f32 %v5687_v18, %v6882_v20  ;;  %v6883_v5 = vld [vmem:[#allocation40_spill] sm:$0xff] }
 0x18f   : > { %2837 = vmatpush2.bf16.msra.mxu0 %v4276_v16  ;;  %2908 = vmatpush2.bf16.msra.mxu1 %v4279_v6  ;;  %v4297_v16 = vld [vmem:[%s5026_s0 + $0x720] ss:$16 sps:$4 sm:$0xff]   ;;  %v1013_v6 = vadd.f32 %v5690_v14, %v915_v40  ;;  %v939_v3 = vmul.f32 %v5687_v18, %v6883_v5  ;;  %v1071_v1 = vmax.f32 %v1015_v8, 0.0  ;;  %v4309_v8 = vld [vmem:[%s5026_s0 + $0x2e8] ss:$16 sps:$4 sm:$0xff]  }
 0x190   : > { %2838 = vmatprep.subr.bf16.mxu0 %v4284_v2  ;;  %2909 = vmatprep.subr.bf16.mxu1 %v4287_v50  ;;  %v1021_v2 = vadd.f32 %v5690_v14, %v923_v17  ;;  %v6878_v50 = vld [vmem:[#allocation71_spill] sm:$0xff]  ;;  %v4314_v20 = vld [vmem:[%s5026_s0 + $0xcc] ss:$16 sps:$4 sm:$0xff]   ;;  %v6889_v5 = vld [vmem:[#allocation41_spill] sm:$0xff] }
 0x191   : > { %v4300_v40 = vld [vmem:[%s5026_s0 + $0x500] ss:$16 sps:$4 sm:$0xff]   ;;  %v1069_v17 = vmax.f32 %v1013_v6, 0.0 }
 0x193   : > { %2839 = vmatpush2.bf16.msra.mxu0 %v4282_v58  ;;  %2910 = vmatpush2.bf16.msra.mxu1 %v4285_v52  ;;  %v914_v58 = vmul.f32 %v5899_v26, %v6878_v50  ;;  %v4302_v52 = vld [vmem:[%s5026_s0 + $0x504] ss:$16 sps:$4 sm:$0xff]  }
 0x194   : > { %2840 = vmatprep.subr.bf16.mxu0 %v4290_v53  ;;  %2911 = vmatprep.subr.bf16.mxu1 %v4293_v54  ;;  %v4305_v53 = vld [vmem:[%s5026_s0 + $0x704] ss:$16 sps:$4 sm:$0xff]  }
 0x195   : > { %v6879_v54 = vld [vmem:[#allocation23_spill] sm:$0xff] }
 0x196   : > { %v922_v0 = vmul.f32 %v5899_v26, %v6879_v54 }
 0x197   : > { %2841 = vmatpush2.bf16.msra.mxu0 %v4288_v11  ;;  %2912 = vmatpush2.bf16.msra.mxu1 %v4291_v9  ;;  %v916_v11 = vmul.f32 %v5902_v21, %v6880_v7  ;;  %v6881_v9 = vld [vmem:[#allocation25_spill] sm:$0xff]  ;;  %v6886_v7 = vld [vmem:[#allocation31_spill] sm:$0xff] }
 0x198   : > { %2842 = vmatprep.subr.bf16.mxu0 %v4296_v45  ;;  %2913 = vmatprep.subr.bf16.mxu1 %v4299_v30  ;;  %v924_v48 = vmul.f32 %v5902_v21, %v6881_v9  ;;  %v1077_v45 = vmax.f32 %v1021_v2, 0.0  ;;  %v1012_v30 = vadd.f32 %v5913_v56, %v914_v58  ;;  %v1020_v44 = vadd.f32 %v5913_v56, %v922_v0  ;;  %v6885_v2 = vld [vmem:[#allocation42_spill] sm:$0xff] }
 0x199   : > { %v941_v50 = vmul.f32 %v5693_v15, %v6885_v2  ;;  %v5968_v58 = vpack.c.bf16 %v1060_v32, %v1052_v55  ;;  %v4306_v0 = vld [vmem:[%s5026_s0 + $0xe8] ss:$16 sps:$4 sm:$0xff]   ;;  %v930_v9 = vmul.f32 %v5899_v26, %v6886_v7  ;;  %v4317_v55 = vld [vmem:[%s5026_s0 + $0x2cc] ss:$16 sps:$4 sm:$0xff]  }
 0x19a   : > { %v1022_v54 = vadd.f32 %v5920_v34, %v924_v48  ;;  %v1068_v32 = vmax.f32 %v1012_v30, 0.0 }
 0x19b   : > { %2843 = vmatpush2.bf16.msra.mxu0 %v4294_v35  ;;  %2914 = vmatpush2.bf16.msra.mxu1 %v4297_v16  ;;  %v1079_v35 = vmax.f32 %v1023_v43, 0.0  ;;  %v6884_v16 = vld [vmem:[#allocation34_spill] sm:$0xff]  ;;  %v5976_v43 = vpack.c.bf16 %v1077_v45, %v1069_v17  ;;  %v1039_v45 = vadd.f32 %v5696_v63, %v941_v50  ;;  %v1028_v50 = vadd.f32 %v5913_v56, %v930_v9 }
 0x19c   : > { %2844 = vmatprep.subr.bf16.mxu0 %v4302_v52  ;;  %2915 = vmatprep.subr.bf16.mxu1 %v4305_v53  ;;  %v933_v6 = vmul.f32 %v5693_v15, %v6884_v16  ;;  %v5970_v52 = vpack.c.bf16 %v1062_v29, %v1054_v42  ;;  %v1014_v53 = vadd.f32 %v5920_v34, %v916_v11  ;;  %v6887_v11 = vld [vmem:[#allocation39_spill] sm:$0xff]  ;;  %v4323_v16 = vld [vmem:[%s5026_s0 + $0x2ac] ss:$16 sps:$4 sm:$0xff]  }
 0x19d   : > { %v1029_v42 = vadd.f32 %v5690_v14, %v931_v22  ;;  %v1037_v29 = vadd.f32 %v5690_v14, %v939_v3  ;;  %v938_v48 = vmul.f32 %v5899_v26, %v6887_v11  ;;  %v4312_v3 = vld [vmem:[%s5026_s0 + $0xc8] ss:$16 sps:$4 sm:$0xff]  }
 0x19e   : > { %v1031_v17 = vadd.f32 %v5696_v63, %v933_v6  ;;  %v1070_v30 = vmax.f32 %v1014_v53, 0.0 }
 0x19f   : > { %2845 = vmatpush2.bf16.msra.mxu0 %v4300_v40  ;;  %2916 = vmatpush2.bf16.msra.mxu1 %v4303_v12  ;;  %v1076_v40 = vmax.f32 %v1020_v44, 0.0  ;;  %v5986_v12 = vpack.c.bf16 %v1079_v35, %v1071_v1  ;;  %v940_v44 = vmul.f32 %v5902_v21, %v6889_v5  ;;  %v4315_v1 = vld [vmem:[%s5026_s0 + $0x2c8] ss:$16 sps:$4 sm:$0xff]   ;;  %v4320_v35 = vld [vmem:[%s5026_s0 + $0xac] ss:$16 sps:$4 sm:$0xff]   ;;  %v1085_v6 = vmax.f32 %v1029_v42, 0.0 }
 0x1a0   : > { %2956 = vmatprep.subr.bf16.mxu0 %v4308_v41  ;;  %3027 = vmatprep.subr.bf16.mxu1 %v4311_v38  ;;  %v1078_v41 = vmax.f32 %v1022_v54, 0.0  ;;  %v6888_v38 = vld [vmem:[#allocation33_spill] sm:$0xff]  ;;  %v1093_v2 = vmax.f32 %v1037_v29, 0.0  ;;  %v1036_v53 = vadd.f32 %v5913_v56, %v938_v48  ;;  %v1087_v54 = vmax.f32 %v1031_v17, 0.0  ;;  %v4318_v48 = vld [vmem:[%s5026_s0 + $0xa8] ss:$16 sps:$4 sm:$0xff]  }
 0x1a1   : > { %v932_v22 = vmul.f32 %v5902_v21, %v6888_v38  ;;  %v6008_v42 = vpack.c.bf16 %v1076_v40, %v1068_v32  ;;  %v1038_v11 = vadd.f32 %v5920_v34, %v940_v44  ;;  %v4321_v38 = vld [vmem:[%s5026_s0 + $0x2a8] ss:$16 sps:$4 sm:$0xff]   ;;  %v4326_v17 = vld [vmem:[%s5026_s0 + $0x8c] ss:$16 sps:$4 sm:$0xff]   ;;  %v6892_v44 = vld [vmem:[#allocation47_spill] sm:$0xff] }
 0x1a2   : > { %2847 = vmatmul.mubr.bf16.vlgmr.msra.gmra.mxu0 %v5968_v58  ;;  %2918 = vmatmul.mubr.bf16.vlgmr.msra.gmra.mxu1 %v5970_v52  ;;  %v6010_v29 = vpack.c.bf16 %v1078_v41, %v1070_v30  ;;  %v1092_v32 = vmax.f32 %v1036_v53, 0.0 }
 0x1a3   : > { %2957 = vmatpush1.bf16.msra.mxu0 %v4306_v0  ;;  %3028 = vmatpush1.bf16.msra.mxu1 %v4309_v8  ;;  %v1095_v0 = vmax.f32 %v1039_v45, 0.0  ;;  %v6890_v8 = vld [vmem:[#allocation48_spill] sm:$0xff]  ;;  %v1030_v9 = vadd.f32 %v5920_v34, %v932_v22  ;;  %v6018_v45 = vpack.c.bf16 %v1093_v2, %v1085_v6  ;;  %v1094_v5 = vmax.f32 %v1038_v11, 0.0 }
 0x1a4   : > { %2958 = vmatprep.subr.bf16.mxu0 %v4314_v20  ;;  %3029 = vmatprep.subr.bf16.mxu1 %v4317_v55  ;;  %v947_v7 = vmul.f32 %v5687_v18, %v6890_v8  ;;  %v6891_v20 = vld [vmem:[#allocation50_spill] sm:$0xff] }
 0x1a5   : > { %2856 = vmatprep.mubr.bf16.mxu0 %v5976_v43  ;;  %2927 = vmatprep.mubr.bf16.mxu1 %v5986_v12  ;;  %v949_v55 = vmul.f32 %v5693_v15, %v6891_v20  ;;  %v4329_v18 = vld [vmem:[%s5026_s0 + $0x28c] ss:$16 sps:$4 sm:$0xff]   ;;  %v1084_v15 = vmax.f32 %v1028_v50, 0.0  ;;  %v6020_v40 = vpack.c.bf16 %v1095_v0, %v1087_v54  ;;  %v1086_v22 = vmax.f32 %v1030_v9, 0.0  ;;  %v4327_v6 = vld [vmem:[%s5026_s0 + $0x288] ss:$16 sps:$4 sm:$0xff]  }
 0x1a6   : > { %v1045_v30 = vadd.f32 %v5690_v14, %v947_v7  ;;  %v4332_v14 = vld [vmem:[%s5026_s0 + $0x6c] ss:$16 sps:$4 sm:$0xff]   ;;  %v4330_v0 = vld [vmem:[%s5026_s0 + $0x68] ss:$16 sps:$4 sm:$0xff]  }
 0x1a7   : > { %2959 = vmatpush1.bf16.msra.mxu0 %v4312_v3  ;;  %3030 = vmatpush1.bf16.msra.mxu1 %v4315_v1  ;;  %v1047_v41 = vadd.f32 %v5696_v63, %v949_v55  ;;  %v946_v3 = vmul.f32 %v5899_v26, %v6892_v44  ;;  %v6893_v1 = vld [vmem:[#allocation49_spill] sm:$0xff]  ;;  %v4335_v63 = vld [vmem:[%s5026_s0 + $0x26c] ss:$16 sps:$4 sm:$0xff]   ;;  %v6036_v50 = vpack.c.bf16 %v1092_v32, %v1084_v15  ;;  %v4333_v8 = vld [vmem:[%s5026_s0 + $0x268] ss:$16 sps:$4 sm:$0xff]  }
 0x1a8   : > { %2960 = vmatprep.subr.bf16.mxu0 %v4320_v35  ;;  %3031 = vmatprep.subr.bf16.mxu1 %v4323_v16  ;;  %v948_v35 = vmul.f32 %v5902_v21, %v6893_v1  ;;  %v4324_v16 = vld [vmem:[%s5026_s0 + $0x88] ss:$16 sps:$4 sm:$0xff]   ;;  %v1101_v26 = vmax.f32 %v1045_v30, 0.0  ;;  %v6038_v21 = vpack.c.bf16 %v1094_v5, %v1086_v22  ;;  %v4338_v7 = vld [vmem:[%s5026_s0 + $0x4c] ss:$16 sps:$4 sm:$0xff]  }
 0x1a9   : > { %v1103_v2 = vmax.f32 %v1047_v41, 0.0  ;;  %v1044_v53 = vadd.f32 %v5913_v56, %v946_v3  ;;  %v4341_v20 = vld [vmem:[%s5026_s0 + $0x24c] ss:$16 sps:$4 sm:$0xff]   ;;  %v4336_v11 = vld [vmem:[%s5026_s0 + $0x48] ss:$16 sps:$4 sm:$0xff]  }
 0x1aa   : > { %2857 = vmatmul.mubr.bf16.gmra.mxu0 %v6008_v42  ;;  %2928 = vmatmul.mubr.bf16.gmra.mxu1 %v6010_v29  ;;  %v1046_v54 = vadd.f32 %v5920_v34, %v948_v35  ;;  %v6046_v55 = vpack.c.bf16 %v1101_v26, %v1101_v26  ;;  %v4342_v32 = vld [vmem:[%s5026_s0 + $0x28] ss:$16 sps:$4 sm:$0xff]   ;;  %v4350_v41 = vld [vmem:[%s5026_s0 + $0xc] ss:$16 sps:$4 sm:$0xff]  }
 0x1ab   : > { %2961 = vmatpush1.bf16.msra.mxu0 %v4318_v48  ;;  %3032 = vmatpush1.bf16.msra.mxu1 %v4321_v38  ;;  %v6048_v9 = vpack.c.bf16 %v1103_v2, %v1103_v2  ;;  %v1100_v56 = vmax.f32 %v1044_v53, 0.0  ;;  %v4339_v48 = vld [vmem:[%s5026_s0 + $0x248] ss:$16 sps:$4 sm:$0xff]   ;;  %v4344_v38 = vld [vmem:[%s5026_s0 + $0x2c] ss:$16 sps:$4 sm:$0xff]  }
 0x1ac   : > { %2962 = vmatprep.subr.bf16.mxu0 %v4326_v17  ;;  %3033 = vmatprep.subr.bf16.mxu1 %v4329_v18  ;;  %v1102_v34 = vmax.f32 %v1046_v54, 0.0  ;;  %v4347_v17 = vld [vmem:[%s5026_s0 + $0x22c] ss:$16 sps:$4 sm:$0xff]   ;;  %v4345_v30 = vld [vmem:[%s5026_s0 + $0x228] ss:$16 sps:$4 sm:$0xff]  }
 0x1ad   : > { %2866 = vmatprep.mubr.bf16.mxu0 %v6018_v45  ;;  %2937 = vmatprep.mubr.bf16.mxu1 %v6020_v40  ;;  %v6058_v18 = vpack.c.bf16 %v1100_v56, %v1100_v56  ;;  %v4353_v22 = vld [vmem:[%s5026_s0 + $0x20c] ss:$16 sps:$4 sm:$0xff]   ;;  %v4348_v5 = vld [vmem:[%s5026_s0 + $0x8] ss:$16 sps:$4 sm:$0xff]  }
 0x1ae   : > { %v6060_v15 = vpack.c.bf16 %v1102_v34, %v1102_v34  ;;  %v4351_v44 = vld [vmem:[%s5026_s0 + $0x208] ss:$16 sps:$4 sm:$0xff]   ;;  %v4356_v3 = vld [vmem:[%s5026_s0 + $0x1ec] ss:$16 sps:$4 sm:$0xff]  }
 0x1af   : > { %2963 = vmatpush1.bf16.msra.mxu0 %v4324_v16  ;;  %3034 = vmatpush1.bf16.msra.mxu1 %v4327_v6  ;;  %v4359_v1 = vld [vmem:[%s5026_s0 + $0x3ec] ss:$16 sps:$4 sm:$0xff]   ;;  %v4354_v35 = vld [vmem:[%s5026_s0 + $0x1e8] ss:$16 sps:$4 sm:$0xff]  }
 0x1b0   : > { %2964 = vmatprep.subr.bf16.mxu0 %v4332_v14  ;;  %3035 = vmatprep.subr.bf16.mxu1 %v4335_v63  ;;  %v4357_v16 = vld [vmem:[%s5026_s0 + $0x3e8] ss:$16 sps:$4 sm:$0xff]   ;;  %v4362_v6 = vld [vmem:[%s5026_s0 + $0x1cc] ss:$16 sps:$4 sm:$0xff]  }
 0x1b1   : > { %v4365_v14 = vld [vmem:[%s5026_s0 + $0x3cc] ss:$16 sps:$4 sm:$0xff]   ;;  %v4360_v63 = vld [vmem:[%s5026_s0 + $0x1c8] ss:$16 sps:$4 sm:$0xff]  }
 0x1b2   : > { %2867 = vmatmul.mubr.bf16.gmra.mxu0 %v6036_v50  ;;  %2938 = vmatmul.mubr.bf16.gmra.mxu1 %v6038_v21  ;;  %v4371_v26 = vld [vmem:[%s5026_s0 + $0x3ac] ss:$16 sps:$4 sm:$0xff]   ;;  %v4366_v2 = vld [vmem:[%s5026_s0 + $0x1a8] ss:$16 sps:$4 sm:$0xff]  }
 0x1b3   : > { %2965 = vmatpush1.bf16.msra.mxu0 %v4330_v0  ;;  %3036 = vmatpush1.bf16.msra.mxu1 %v4333_v8  ;;  %v4369_v53 = vld [vmem:[%s5026_s0 + $0x3a8] ss:$16 sps:$4 sm:$0xff]   ;;  %v4374_v54 = vld [vmem:[%s5026_s0 + $0x18c] ss:$16 sps:$4 sm:$0xff]  }
 0x1b4   : > { %2966 = vmatprep.subr.bf16.mxu0 %v4338_v7  ;;  %3037 = vmatprep.subr.bf16.mxu1 %v4341_v20  ;;  %v4377_v0 = vld [vmem:[%s5026_s0 + $0x38c] ss:$16 sps:$4 sm:$0xff]   ;;  %v4372_v8 = vld [vmem:[%s5026_s0 + $0x188] ss:$16 sps:$4 sm:$0xff]  }
 0x1b5   : > { %2876 = vmatprep.mubr.bf16.mxu0 %v6046_v55  ;;  %2947 = vmatprep.mubr.bf16.mxu1 %v6048_v9  ;;  %v4375_v7 = vld [vmem:[%s5026_s0 + $0x388] ss:$16 sps:$4 sm:$0xff]   ;;  %v4380_v20 = vld [vmem:[%s5026_s0 + $0x16c] ss:$16 sps:$4 sm:$0xff]  }
 0x1b6   : > { %v4383_v56 = vld [vmem:[%s5026_s0 + $0x36c] ss:$16 sps:$4 sm:$0xff]   ;;  %v4378_v34 = vld [vmem:[%s5026_s0 + $0x168] ss:$16 sps:$4 sm:$0xff]  }
 0x1b7   : > { %2967 = vmatpush1.bf16.msra.mxu0 %v4336_v11  ;;  %3038 = vmatpush1.bf16.msra.mxu1 %v4339_v48  ;;  %v4381_v11 = vld [vmem:[%s5026_s0 + $0x368] ss:$16 sps:$4 sm:$0xff]   ;;  %v4386_v48 = vld [vmem:[%s5026_s0 + $0x14c] ss:$16 sps:$4 sm:$0xff]  }
 0x1b8   : > { %2968 = vmatprep.subr.bf16.mxu0 %v4344_v38  ;;  %3039 = vmatprep.subr.bf16.mxu1 %v4347_v17  ;;  %v4389_v38 = vld [vmem:[%s5026_s0 + $0x34c] ss:$16 sps:$4 sm:$0xff]   ;;  %v4384_v17 = vld [vmem:[%s5026_s0 + $0x148] ss:$16 sps:$4 sm:$0xff]  }
 0x1ba   : > { %2877 = vmatmul.mubr.bf16.gmra.mxu0 %v6058_v18  ;;  %2948 = vmatmul.mubr.bf16.gmra.mxu1 %v6060_v15 }
 0x1bb   : > { %2969 = vmatpush1.bf16.msra.mxu0 %v4342_v32  ;;  %3040 = vmatpush1.bf16.msra.mxu1 %v4345_v30  ;;  %v4387_v32 = vld [vmem:[%s5026_s0 + $0x348] ss:$16 sps:$4 sm:$0xff]   ;;  %v4392_v30 = vld [vmem:[%s5026_s0 + $0x12c] ss:$16 sps:$4 sm:$0xff]  }
 0x1bc   : > { %2970 = vmatprep.subr.bf16.mxu0 %v4350_v41  ;;  %3041 = vmatprep.subr.bf16.mxu1 %v4353_v22  ;;  %v4395_v41 = vld [vmem:[%s5026_s0 + $0x32c] ss:$16 sps:$4 sm:$0xff]   ;;  %v4390_v22 = vld [vmem:[%s5026_s0 + $0x128] ss:$16 sps:$4 sm:$0xff]  }
 0x1bd   : > { %2988 = vmatprep.mubr.bf16.mxu0 %v5724_v24  ;;  %3059 = vmatprep.mubr.bf16.mxu1 %v5726_v33  ;;  %v4363_v24 = vld [vmem:[%s5026_s0 + $0x3c8] ss:$16 sps:$4 sm:$0xff]   ;;  %v4368_v33 = vld [vmem:[%s5026_s0 + $0x1ac] ss:$16 sps:$4 sm:$0xff]  }
 0x1bf   : > { %2971 = vmatpush1.bf16.msra.mxu0 %v4348_v5  ;;  %3042 = vmatpush1.bf16.msra.mxu1 %v4351_v44  ;;  %v4393_v5 = vld [vmem:[%s5026_s0 + $0x328] ss:$16 sps:$4 sm:$0xff]   ;;  %v4398_v44 = vld [vmem:[%s5026_s0 + $0x10c] ss:$16 sps:$4 sm:$0xff]  }
 0x1c0   : > { %2972 = vmatprep.subr.bf16.mxu0 %v4356_v3  ;;  %3043 = vmatprep.subr.bf16.mxu1 %v4359_v1  ;;  %v4401_v3 = vld [vmem:[%s5026_s0 + $0x30c] ss:$16 sps:$4 sm:$0xff]   ;;  %v4396_v1 = vld [vmem:[%s5026_s0 + $0x108] ss:$16 sps:$4 sm:$0xff]  }
 0x1c3   : > { %2973 = vmatpush2.bf16.msra.mxu0 %v4354_v35  ;;  %3044 = vmatpush2.bf16.msra.mxu1 %v4357_v16  ;;  %v4399_v35 = vld [vmem:[%s5026_s0 + $0x308] ss:$16 sps:$4 sm:$0xff]   ;;  %v4404_v16 = vld [vmem:[%s5026_s0 + $0x4ec] ss:$16 sps:$4 sm:$0xff]  }
 0x1c4   : > { %2974 = vmatprep.subr.bf16.mxu0 %v4362_v6  ;;  %3045 = vmatprep.subr.bf16.mxu1 %v4365_v14  ;;  %v4407_v6 = vld [vmem:[%s5026_s0 + $0x6ec] ss:$16 sps:$4 sm:$0xff]   ;;  %v4402_v14 = vld [vmem:[%s5026_s0 + $0x4e8] ss:$16 sps:$4 sm:$0xff]  }
 0x1c7   : > { %2975 = vmatpush2.bf16.msra.mxu0 %v4360_v63  ;;  %3046 = vmatpush2.bf16.msra.mxu1 %v4363_v24  ;;  %v4405_v63 = vld [vmem:[%s5026_s0 + $0x6e8] ss:$16 sps:$4 sm:$0xff]   ;;  %v4410_v24 = vld [vmem:[%s5026_s0 + $0x4cc] ss:$16 sps:$4 sm:$0xff]  }
 0x1c8   : > { %2976 = vmatprep.subr.bf16.mxu0 %v4368_v33  ;;  %3047 = vmatprep.subr.bf16.mxu1 %v4371_v26  ;;  %v4413_v33 = vld [vmem:[%s5026_s0 + $0x6cc] ss:$16 sps:$4 sm:$0xff]   ;;  %v4408_v26 = vld [vmem:[%s5026_s0 + $0x4c8] ss:$16 sps:$4 sm:$0xff]  }
 0x1cb   : > { %2977 = vmatpush2.bf16.msra.mxu0 %v4366_v2  ;;  %3048 = vmatpush2.bf16.msra.mxu1 %v4369_v53  ;;  %v4411_v2 = vld [vmem:[%s5026_s0 + $0x6c8] ss:$16 sps:$4 sm:$0xff]   ;;  %v4416_v53 = vld [vmem:[%s5026_s0 + $0x4ac] ss:$16 sps:$4 sm:$0xff]  }
 0x1cc   : > { %2978 = vmatprep.subr.bf16.mxu0 %v4374_v54  ;;  %3049 = vmatprep.subr.bf16.mxu1 %v4377_v0  ;;  %v4419_v54 = vld [vmem:[%s5026_s0 + $0x6ac] ss:$16 sps:$4 sm:$0xff]  }
 0x1cd   : > { %v4422_v0 = vld [vmem:[%s5026_s0 + $0x48c] ss:$16 sps:$4 sm:$0xff]  }
 0x1cf   : > { %2979 = vmatpush2.bf16.msra.mxu0 %v4372_v8  ;;  %3050 = vmatpush2.bf16.msra.mxu1 %v4375_v7  ;;  %v4425_v8 = vld [vmem:[%s5026_s0 + $0x68c] ss:$16 sps:$4 sm:$0xff]  }
 0x1d0   : > { %2980 = vmatprep.subr.bf16.mxu0 %v4380_v20  ;;  %3051 = vmatprep.subr.bf16.mxu1 %v4383_v56  ;;  %v4428_v7 = vld [vmem:[%s5026_s0 + $0x46c] ss:$16 sps:$4 sm:$0xff]  }
 0x1d1   : > { %v4431_v20 = vld [vmem:[%s5026_s0 + $0x66c] ss:$16 sps:$4 sm:$0xff]  }
 0x1d2   : > { %v4434_v56 = vld [vmem:[%s5026_s0 + $0x44c] ss:$16 sps:$4 sm:$0xff]  }
 0x1d3   : > { %2981 = vmatpush2.bf16.msra.mxu0 %v4378_v34  ;;  %3052 = vmatpush2.bf16.msra.mxu1 %v4381_v11  ;;  %v4437_v34 = vld [vmem:[%s5026_s0 + $0x64c] ss:$16 sps:$4 sm:$0xff]  }
 0x1d4   : > { %2982 = vmatprep.subr.bf16.mxu0 %v4386_v48  ;;  %3053 = vmatprep.subr.bf16.mxu1 %v4389_v38  ;;  %v4440_v11 = vld [vmem:[%s5026_s0 + $0x42c] ss:$16 sps:$4 sm:$0xff]  }
 0x1d5   : > { %v4443_v48 = vld [vmem:[%s5026_s0 + $0x62c] ss:$16 sps:$4 sm:$0xff]  }
 0x1d6   : > { %v4446_v38 = vld [vmem:[%s5026_s0 + $0x40c] ss:$16 sps:$4 sm:$0xff]  }
 0x1d7   : > { %2983 = vmatpush2.bf16.msra.mxu0 %v4384_v17  ;;  %3054 = vmatpush2.bf16.msra.mxu1 %v4387_v32  ;;  %v4449_v17 = vld [vmem:[%s5026_s0 + $0x60c] ss:$16 sps:$4 sm:$0xff]  }
 0x1d8   : > { %2984 = vmatprep.subr.bf16.mxu0 %v4392_v30  ;;  %3055 = vmatprep.subr.bf16.mxu1 %v4395_v41  ;;  %v4452_v32 = vld [vmem:[%s5026_s0 + $0x5ec] ss:$16 sps:$4 sm:$0xff]  }
 0x1d9   : > { %v4455_v30 = vld [vmem:[%s5026_s0 + $0x7ec] ss:$16 sps:$4 sm:$0xff]  }
 0x1da   : > { %v4458_v41 = vld [vmem:[%s5026_s0 + $0x5cc] ss:$16 sps:$4 sm:$0xff]  }
 0x1db   : > { %2985 = vmatpush2.bf16.msra.mxu0 %v4390_v22  ;;  %3056 = vmatpush2.bf16.msra.mxu1 %v4393_v5  ;;  %v4461_v22 = vld [vmem:[%s5026_s0 + $0x7cc] ss:$16 sps:$4 sm:$0xff]   ;;  %v4456_v5 = vld [vmem:[%s5026_s0 + $0x5c8] ss:$16 sps:$4 sm:$0xff]  }
 0x1dc   : > { %2986 = vmatprep.subr.bf16.mxu0 %v4398_v44  ;;  %3057 = vmatprep.subr.bf16.mxu1 %v4401_v3  ;;  %v4467_v44 = vld [vmem:[%s5026_s0 + $0x7ac] ss:$16 sps:$4 sm:$0xff]   ;;  %v4462_v3 = vld [vmem:[%s5026_s0 + $0x5a8] ss:$16 sps:$4 sm:$0xff]  }
 0x1df   : > { %2987 = vmatpush2.bf16.msra.mxu0 %v4396_v1  ;;  %3058 = vmatpush2.bf16.msra.mxu1 %v4399_v35  ;;  %v4465_v1 = vld [vmem:[%s5026_s0 + $0x7a8] ss:$16 sps:$4 sm:$0xff]   ;;  %v4470_v35 = vld [vmem:[%s5026_s0 + $0x58c] ss:$16 sps:$4 sm:$0xff]  }
 0x1e0   : > { %3098 = vmatprep.subr.bf16.mxu0 %v4404_v16  ;;  %3169 = vmatprep.subr.bf16.mxu1 %v4407_v6  ;;  %v4473_v16 = vld [vmem:[%s5026_s0 + $0x78c] ss:$16 sps:$4 sm:$0xff]   ;;  %v4468_v6 = vld [vmem:[%s5026_s0 + $0x588] ss:$16 sps:$4 sm:$0xff]  }
 0x1e2   : > { %2989 = vmatmul.mubr.bf16.vlgmr.msra.gmra.mxu0 %v5732_v25  ;;  %3060 = vmatmul.mubr.bf16.vlgmr.msra.gmra.mxu1 %v5734_v62  ;;  %v4414_v25 = vld [vmem:[%s5026_s0 + $0x4a8] ss:$16 sps:$4 sm:$0xff]  }
 0x1e3   : > { %3099 = vmatpush1.bf16.msra.mxu0 %v4402_v14  ;;  %3170 = vmatpush1.bf16.msra.mxu1 %v4405_v63  ;;  %v4417_v62 = vld [vmem:[%s5026_s0 + $0x6a8] ss:$16 sps:$4 sm:$0xff]   ;;  %v4476_v63 = vld [vmem:[%s5026_s0 + $0x56c] ss:$16 sps:$4 sm:$0xff]  }
 0x1e4   : > { %3100 = vmatprep.subr.bf16.mxu0 %v4410_v24  ;;  %3171 = vmatprep.subr.bf16.mxu1 %v4413_v33  ;;  %v4471_v14 = vld [vmem:[%s5026_s0 + $0x788] ss:$16 sps:$4 sm:$0xff]   ;;  %v4479_v24 = vld [vmem:[%s5026_s0 + $0x76c] ss:$16 sps:$4 sm:$0xff]  }
 0x1e5   : > { %2998 = vmatprep.mubr.bf16.mxu0 %v5764_v49  ;;  %3069 = vmatprep.mubr.bf16.mxu1 %v5769_v46  ;;  %v4420_v49 = vld [vmem:[%s5026_s0 + $0x488] ss:$16 sps:$4 sm:$0xff]  }
 0x1e6   : > { %v4423_v46 = vld [vmem:[%s5026_s0 + $0x688] ss:$16 sps:$4 sm:$0xff]  }
 0x1e7   : > { %3101 = vmatpush1.bf16.msra.mxu0 %v4408_v26  ;;  %3172 = vmatpush1.bf16.msra.mxu1 %v4411_v2  ;;  %v4474_v33 = vld [vmem:[%s5026_s0 + $0x568] ss:$16 sps:$4 sm:$0xff]   ;;  %v4482_v2 = vld [vmem:[%s5026_s0 + $0x54c] ss:$16 sps:$4 sm:$0xff]  }
 0x1e8   : > { %3102 = vmatprep.subr.bf16.mxu0 %v4416_v53  ;;  %3173 = vmatprep.subr.bf16.mxu1 %v4419_v54  ;;  %v4477_v26 = vld [vmem:[%s5026_s0 + $0x768] ss:$16 sps:$4 sm:$0xff]   ;;  %v4485_v53 = vld [vmem:[%s5026_s0 + $0x74c] ss:$16 sps:$4 sm:$0xff]  }
 0x1e9   : > { %v4480_v54 = vld [vmem:[%s5026_s0 + $0x548] ss:$16 sps:$4 sm:$0xff]  }
 0x1ea   : > { %2999 = vmatmul.mubr.bf16.gmra.mxu0 %v5783_v4  ;;  %3070 = vmatmul.mubr.bf16.gmra.mxu1 %v5795_v61  ;;  %v4426_v4 = vld [vmem:[%s5026_s0 + $0x468] ss:$16 sps:$4 sm:$0xff]  }
 0x1eb   : > { %3103 = vmatpush1.bf16.msra.mxu0 %v4414_v25  ;;  %3174 = vmatpush1.bf16.msra.mxu1 %v4417_v62  ;;  %v4429_v61 = vld [vmem:[%s5026_s0 + $0x668] ss:$16 sps:$4 sm:$0xff]   ;;  %v4488_v62 = vld [vmem:[%s5026_s0 + $0x52c] ss:$16 sps:$4 sm:$0xff]  }
 0x1ec   : > { %3104 = vmatprep.subr.bf16.mxu0 %v4422_v0  ;;  %3175 = vmatprep.subr.bf16.mxu1 %v4425_v8  ;;  %v4483_v25 = vld [vmem:[%s5026_s0 + $0x748] ss:$16 sps:$4 sm:$0xff]   ;;  %v4491_v0 = vld [vmem:[%s5026_s0 + $0x72c] ss:$16 sps:$4 sm:$0xff]  }
 0x1ed   : > { %3008 = vmatprep.mubr.bf16.mxu0 %v5807_v10  ;;  %3079 = vmatprep.mubr.bf16.mxu1 %v5813_v47  ;;  %v4432_v10 = vld [vmem:[%s5026_s0 + $0x448] ss:$16 sps:$4 sm:$0xff]  }
 0x1ee   : > { %v4435_v47 = vld [vmem:[%s5026_s0 + $0x648] ss:$16 sps:$4 sm:$0xff]  }
 0x1ef   : > { %3105 = vmatpush1.bf16.msra.mxu0 %v4420_v49  ;;  %3176 = vmatpush1.bf16.msra.mxu1 %v4423_v46  ;;  %v4486_v8 = vld [vmem:[%s5026_s0 + $0x528] ss:$16 sps:$4 sm:$0xff]   ;;  %v4494_v46 = vld [vmem:[%s5026_s0 + $0x50c] ss:$16 sps:$4 sm:$0xff]  }
 0x1f0   : > { %3106 = vmatprep.subr.bf16.mxu0 %v4428_v7  ;;  %3177 = vmatprep.subr.bf16.mxu1 %v4431_v20  ;;  %v4489_v49 = vld [vmem:[%s5026_s0 + $0x728] ss:$16 sps:$4 sm:$0xff]   ;;  %v4497_v7 = vld [vmem:[%s5026_s0 + $0x70c] ss:$16 sps:$4 sm:$0xff]  }
 0x1f1   : > { %v4492_v20 = vld [vmem:[%s5026_s0 + $0x508] ss:$16 sps:$4 sm:$0xff]  }
 0x1f2   : > { %3009 = vmatmul.mubr.bf16.gmra.mxu0 %v5826_v13  ;;  %3080 = vmatmul.mubr.bf16.gmra.mxu1 %v5837_v31  ;;  %v4438_v13 = vld [vmem:[%s5026_s0 + $0x428] ss:$16 sps:$4 sm:$0xff]  }
 0x1f3   : > { %3107 = vmatpush1.bf16.msra.mxu0 %v4426_v4  ;;  %3178 = vmatpush1.bf16.msra.mxu1 %v4429_v61  ;;  %v4441_v31 = vld [vmem:[%s5026_s0 + $0x628] ss:$16 sps:$4 sm:$0xff]  }
 0x1f4   : > { %3108 = vmatprep.subr.bf16.mxu0 %v4434_v56  ;;  %3179 = vmatprep.subr.bf16.mxu1 %v4437_v34  ;;  %v4495_v4 = vld [vmem:[%s5026_s0 + $0x708] ss:$16 sps:$4 sm:$0xff]  }
 0x1f5   : > { %3018 = vmatprep.mubr.bf16.mxu0 %v5844_v23  ;;  %3089 = vmatprep.mubr.bf16.mxu1 %v5854_v28  ;;  %v4444_v23 = vld [vmem:[%s5026_s0 + $0x408] ss:$16 sps:$4 sm:$0xff]  }
 0x1f6   : > { %v4447_v28 = vld [vmem:[%s5026_s0 + $0x608] ss:$16 sps:$4 sm:$0xff]  }
 0x1f7   : > { %3109 = vmatpush1.bf16.msra.mxu0 %v4432_v10  ;;  %3180 = vmatpush1.bf16.msra.mxu1 %v4435_v47 }
 0x1f8   : > { %3110 = vmatprep.subr.bf16.mxu0 %v4440_v11  ;;  %3181 = vmatprep.subr.bf16.mxu1 %v4443_v48 }
 0x1fa   : > { %3019 = vmatmul.mubr.bf16.gmra.mxu0 %v5859_v60  ;;  %3090 = vmatmul.mubr.bf16.gmra.mxu1 %v5866_v51  ;;  %v4450_v60 = vld [vmem:[%s5026_s0 + $0x5e8] ss:$16 sps:$4 sm:$0xff]  }
 0x1fb   : > { %3111 = vmatpush1.bf16.msra.mxu0 %v4438_v13  ;;  %3182 = vmatpush1.bf16.msra.mxu1 %v4441_v31  ;;  %v4453_v51 = vld [vmem:[%s5026_s0 + $0x7e8] ss:$16 sps:$4 sm:$0xff]  }
 0x1fc   : > { %3112 = vmatprep.subr.bf16.mxu0 %v4446_v38  ;;  %3183 = vmatprep.subr.bf16.mxu1 %v4449_v17 }
 0x1fd   : > { %3130 = vmatprep.mubr.bf16.mxu0 %v5868_v37  ;;  %3201 = vmatprep.mubr.bf16.mxu1 %v5871_v36  ;;  %v4459_v37 = vld [vmem:[%s5026_s0 + $0x7c8] ss:$16 sps:$4 sm:$0xff]   ;;  %v4464_v36 = vld [vmem:[%s5026_s0 + $0x5ac] ss:$16 sps:$4 sm:$0xff]  }
 0x1ff   : > { %3113 = vmatpush1.bf16.msra.mxu0 %v4444_v23  ;;  %3184 = vmatpush1.bf16.msra.mxu1 %v4447_v28 }
 0x200   : > { %3114 = vmatprep.subr.bf16.mxu0 %v4452_v32  ;;  %3185 = vmatprep.subr.bf16.mxu1 %v4455_v30 }
 0x203   : > { %3115 = vmatpush2.bf16.msra.mxu0 %v4450_v60  ;;  %3186 = vmatpush2.bf16.msra.mxu1 %v4453_v51 }
 0x204   : > { %3116 = vmatprep.subr.bf16.mxu0 %v4458_v41  ;;  %3187 = vmatprep.subr.bf16.mxu1 %v4461_v22 }
 0x207   : > { %3117 = vmatpush2.bf16.msra.mxu0 %v4456_v5  ;;  %3188 = vmatpush2.bf16.msra.mxu1 %v4459_v37 }
 0x208   : > { %3118 = vmatprep.subr.bf16.mxu0 %v4464_v36  ;;  %3189 = vmatprep.subr.bf16.mxu1 %v4467_v44 }
 0x20b   : > { %3119 = vmatpush2.bf16.msra.mxu0 %v4462_v3  ;;  %3190 = vmatpush2.bf16.msra.mxu1 %v4465_v1 }
 0x20c   : > { %3120 = vmatprep.subr.bf16.mxu0 %v4470_v35  ;;  %3191 = vmatprep.subr.bf16.mxu1 %v4473_v16 }
 0x20f   : > { %3121 = vmatpush2.bf16.msra.mxu0 %v4468_v6  ;;  %3192 = vmatpush2.bf16.msra.mxu1 %v4471_v14 }
 0x210   : > { %3122 = vmatprep.subr.bf16.mxu0 %v4476_v63  ;;  %3193 = vmatprep.subr.bf16.mxu1 %v4479_v24 }
 0x213   : > { %3123 = vmatpush2.bf16.msra.mxu0 %v4474_v33  ;;  %3194 = vmatpush2.bf16.msra.mxu1 %v4477_v26 }
 0x214   : > { %3124 = vmatprep.subr.bf16.mxu0 %v4482_v2  ;;  %3195 = vmatprep.subr.bf16.mxu1 %v4485_v53 }
 0x217   : > { %3125 = vmatpush2.bf16.msra.mxu0 %v4480_v54  ;;  %3196 = vmatpush2.bf16.msra.mxu1 %v4483_v25 }
 0x218   : > { %3126 = vmatprep.subr.bf16.mxu0 %v4488_v62  ;;  %3197 = vmatprep.subr.bf16.mxu1 %v4491_v0 }
 0x21b   : > { %3127 = vmatpush2.bf16.msra.mxu0 %v4486_v8  ;;  %3198 = vmatpush2.bf16.msra.mxu1 %v4489_v49 }
 0x21c   : > { %3128 = vmatprep.subr.bf16.mxu0 %v4494_v46  ;;  %3199 = vmatprep.subr.bf16.mxu1 %v4497_v7 }
 0x21f   : > { %3129 = vmatpush2.bf16.msra.mxu0 %v4492_v20  ;;  %3200 = vmatpush2.bf16.msra.mxu1 %v4495_v4 }
 0x222   : > { %3131 = vmatmul.mubr.bf16.vlgmr.msra.gmra.mxu0 %v5968_v58  ;;  %3202 = vmatmul.mubr.bf16.vlgmr.msra.gmra.mxu1 %v5970_v52  ;;  %v2706_v61 = vpop.f32.mrf.mxu0  ;;  %v2777_v56 = vpop.f32.mrf.mxu1 }
 0x223   : > { %v2778_v34 = vadd.f32 %v2777_v56, %v2706_v61  ;;  %3140 = vmatprep.mubr.bf16.mxu0 %v5976_v43  ;;  %3211 = vmatprep.mubr.bf16.mxu1 %v5986_v12 }
 0x224   : > { %v2708_v10 = vpop.f32.mrf.mxu0  ;;  %v2779_v47 = vpop.f32.mrf.mxu1 }
 0x225   : > { %v2780_v11 = vadd.f32 %v2779_v47, %v2708_v10 }
 0x226   : > { %v2710_v48 = vpop.f32.mrf.mxu0  ;;  %v2781_v13 = vpop.f32.mrf.mxu1 }
 0x227   : > { %v2782_v31 = vadd.f32 %v2781_v13, %v2710_v48 }
 0x228   : > { %v2712_v38 = vpop.f32.mrf.mxu0  ;;  %v2783_v17 = vpop.f32.mrf.mxu1 }
 0x229   : > { %v2784_v23 = vadd.f32 %v2783_v17, %v2712_v38 }
 0x22a   : > { %3141 = vmatmul.mubr.bf16.gmra.mxu0 %v6008_v42  ;;  %3212 = vmatmul.mubr.bf16.gmra.mxu1 %v6010_v29  ;;  %v2716_v58 = vpop.f32.mrf.mxu0 }
 0x22b   : > { %3150 = vmatprep.mubr.bf16.mxu0 %v6018_v45  ;;  %3221 = vmatprep.mubr.bf16.mxu1 %v6020_v40 }
 0x22c   : > { %v2718_v52 = vpop.f32.mrf.mxu0 }
 0x22d   : > { %v2787_v43 = vpop.f32.mrf.mxu1 }
 0x22e   : > { %v2788_v12 = vadd.f32 %v2787_v43, %v2716_v58  ;;  %v2720_v28 = vpop.f32.mrf.mxu0 }
 0x22f   : > { %v2789_v32 = vpop.f32.mrf.mxu1 }
 0x230   : > { %v2790_v30 = vadd.f32 %v2789_v32, %v2718_v52  ;;  %v2722_v60 = vpop.f32.mrf.mxu0 }
 0x231   : > { %v2791_v51 = vpop.f32.mrf.mxu1 }
 0x232   : > { %3151 = vmatmul.mubr.bf16.gmra.mxu0 %v6036_v50  ;;  %3222 = vmatmul.mubr.bf16.gmra.mxu1 %v6038_v21  ;;  %v2792_v42 = vadd.f32 %v2791_v51, %v2720_v28  ;;  %v2726_v41 = vpop.f32.mrf.mxu0 }
 0x233   : > { %3160 = vmatprep.mubr.bf16.mxu0 %v6046_v55  ;;  %3231 = vmatprep.mubr.bf16.mxu1 %v6048_v9  ;;  %v2793_v29 = vpop.f32.mrf.mxu1 }
 0x234   : > { %v2794_v45 = vadd.f32 %v2793_v29, %v2722_v60  ;;  %v2728_v40 = vpop.f32.mrf.mxu0 }
 0x235   : > { %v2797_v22 = vpop.f32.mrf.mxu1 }
 0x236   : > { %v2798_v5 = vadd.f32 %v2797_v22, %v2726_v41  ;;  %v2730_v37 = vpop.f32.mrf.mxu0 }
 0x237   : > { %v2799_v36 = vpop.f32.mrf.mxu1 }
 0x238   : > { %v2800_v44 = vadd.f32 %v2799_v36, %v2728_v40  ;;  %v2732_v3 = vpop.f32.mrf.mxu0 }
 0x239   : > { %v2801_v1 = vpop.f32.mrf.mxu1 }
 0x23a   : > { %3161 = vmatmul.mubr.bf16.gmra.mxu0 %v6058_v18  ;;  %3232 = vmatmul.mubr.bf16.gmra.mxu1 %v6060_v15  ;;  %v2802_v50 = vadd.f32 %v2801_v1, %v2730_v37  ;;  %v2736_v21 = vpop.f32.mrf.mxu0 }
 0x23b   : > { %v2803_v35 = vpop.f32.mrf.mxu1 }
 0x23c   : > { %v6198_v55 = vadd.f32 %v2803_v35, %v2732_v3  ;;  %v2738_v9 = vpop.f32.mrf.mxu0 }
 0x23d   : > { %v2807_v16 = vpop.f32.mrf.mxu1 }
 0x23e   : > { %v6200_v6 = vadd.f32 %v2807_v16, %v2736_v21  ;;  %v2740_v14 = vpop.f32.mrf.mxu0 }
 0x23f   : > { %v2809_v63 = vpop.f32.mrf.mxu1 }
 0x240   : > { %v6202_v24 = vadd.f32 %v2809_v63, %v2738_v9  ;;  %v2741_v33 = vpop.f32.mrf.mxu0 }
 0x241   : > { %v2811_v26 = vpop.f32.mrf.mxu1 }
 0x243   : > { %v2812_v2 = vpop.f32.mrf.mxu1 }
 0x262   : > { %v2848_v53 = vpop.f32.mrf.mxu0  ;;  %v2919_v18 = vpop.f32.mrf.mxu1 }
 0x263   : > { %v2849_v54 = vadd.f32 %v2848_v53, %v2778_v34 }
 0x264   : > { %v2850_v15 = vpop.f32.mrf.mxu0  ;;  %v2921_v25 = vpop.f32.mrf.mxu1 }
 0x265   : > { %v6204_v62 = vadd.f32 %v2919_v18, %v2849_v54  ;;  %v2851_v0 = vadd.f32 %v2850_v15, %v2780_v11 }
 0x266   : > { %v2852_v8 = vpop.f32.mrf.mxu0  ;;  %v2923_v49 = vpop.f32.mrf.mxu1 }
 0x267   : > { %v6206_v46 = vadd.f32 %v2921_v25, %v2851_v0  ;;  %v2853_v7 = vadd.f32 %v2852_v8, %v2782_v31 }
 0x268   : > { %v2854_v20 = vpop.f32.mrf.mxu0  ;;  %v2925_v4 = vpop.f32.mrf.mxu1 }
 0x269   : > { %v6208_v61 = vadd.f32 %v2923_v49, %v2853_v7  ;;  %v2855_v56 = vadd.f32 %v2854_v20, %v2784_v23 }
 0x26a   : > { %v2858_v10 = vpop.f32.mrf.mxu0  ;;  %v2929_v47 = vpop.f32.mrf.mxu1 }
 0x26b   : > { %v3240_v34 = vadd.f32 %v6208_v61, %v6204_v62  ;;  %v6212_v48 = vadd.f32 %v2925_v4, %v2855_v56  ;;  %v2859_v13 = vadd.f32 %v2858_v10, %v2788_v12 }
 0x26c   : > { %v2860_v38 = vpop.f32.mrf.mxu0  ;;  %v2931_v11 = vpop.f32.mrf.mxu1 }
 0x26d   : > { %v3253_v17 = vadd.f32 %v6212_v48, %v6206_v46  ;;  %v2861_v58 = vadd.f32 %v2860_v38, %v2790_v30  ;;  %v6216_v31 = vadd.f32 %v2929_v47, %v2859_v13 }
 0x26e   : > { %v2862_v52 = vpop.f32.mrf.mxu0  ;;  %v2933_v43 = vpop.f32.mrf.mxu1 }
 0x26f   : > { %v3241_v23 = vadd.f32 %v3240_v34, %v6216_v31  ;;  %v2863_v28 = vadd.f32 %v2862_v52, %v2792_v42  ;;  %v6219_v32 = vadd.f32 %v2931_v11, %v2861_v58 }
 0x270   : > { %v2864_v60 = vpop.f32.mrf.mxu0  ;;  %v2935_v51 = vpop.f32.mrf.mxu1 }
 0x271   : > { %v3254_v41 = vadd.f32 %v3253_v17, %v6219_v32  ;;  %v2865_v12 = vadd.f32 %v2864_v60, %v2794_v45  ;;  %v2934_v29 = vadd.f32 %v2933_v43, %v2863_v28 }
 0x272   : > { %v2868_v40 = vpop.f32.mrf.mxu0  ;;  %v2939_v22 = vpop.f32.mrf.mxu1 }
 0x273   : > { %v3242_v37 = vadd.f32 %v3241_v23, %v2934_v29  ;;  %v2869_v36 = vadd.f32 %v2868_v40, %v2798_v5  ;;  %v6222_v30 = vadd.f32 %v2935_v51, %v2865_v12 }
 0x274   : > { %v2870_v3 = vpop.f32.mrf.mxu0  ;;  %v2941_v1 = vpop.f32.mrf.mxu1 }
 0x275   : > { %v3255_v21 = vadd.f32 %v3254_v41, %v6222_v30  ;;  %v2871_v35 = vadd.f32 %v2870_v3, %v2800_v44  ;;  %v2940_v42 = vadd.f32 %v2939_v22, %v2869_v36 }
 0x276   : > { %v2872_v9 = vpop.f32.mrf.mxu0  ;;  %v2943_v16 = vpop.f32.mrf.mxu1 }
 0x277   : > { %v3243_v14 = vadd.f32 %v3242_v37, %v2940_v42  ;;  %v2873_v63 = vadd.f32 %v2872_v9, %v2802_v50  ;;  %v2942_v33 = vadd.f32 %v2941_v1, %v2871_v35 }
 0x278   : > { %v2874_v26 = vpop.f32.mrf.mxu0  ;;  %v2945_v45 = vpop.f32.mrf.mxu1 }
 0x279   : > { %v3256_v2 = vadd.f32 %v3255_v21, %v2942_v33  ;;  %v2875_v53 = vadd.f32 %v2874_v26, %v6198_v55  ;;  %v2944_v18 = vadd.f32 %v2943_v16, %v2873_v63 }
 0x27a   : > { %v2878_v5 = vpop.f32.mrf.mxu0  ;;  %v2949_v54 = vpop.f32.mrf.mxu1 }
 0x27b   : > { %v3244_v15 = vadd.f32 %v3243_v14, %v2944_v18  ;;  %v2879_v25 = vadd.f32 %v2878_v5, %v6200_v6  ;;  %v2946_v0 = vadd.f32 %v2945_v45, %v2875_v53 }
 0x27c   : > { %v2880_v8 = vpop.f32.mrf.mxu0  ;;  %v2951_v44 = vpop.f32.mrf.mxu1 }
 0x27d   : > { %v3257_v49 = vadd.f32 %v3256_v2, %v2946_v0  ;;  %v2881_v7 = vadd.f32 %v2880_v8, %v6202_v24  ;;  %v2950_v20 = vadd.f32 %v2949_v54, %v2879_v25 }
 0x27e   : > { %v2882_v50 = vpop.f32.mrf.mxu0  ;;  %v2953_v4 = vpop.f32.mrf.mxu1 }
 0x27f   : > { %v3245_v56 = vsel %vm445_vm0, %v2950_v20, 0.0  ;;  %v2952_v10 = vadd.f32 %v2951_v44, %v2881_v7 }
 0x280   : > { %v3246_v47 = vadd.f32 %v3245_v56, %v3244_v15  ;;  %v2883_v55 = vpop.f32.mrf.mxu0  ;;  %v2954_v34 = vpop.f32.mrf.mxu1 }
 0x281   : > { %v3258_v13 = vsel %vm445_vm0, %v2952_v10, 0.0 }
 0x282   : > { %v3247_v38 = vrot.slane %v3246_v47, 4  ;;  %v3259_v11 = vadd.f32 %v3258_v13, %v3257_v49 }
 0x284   : > { %v3248_v6 = vadd.f32 %v3247_v38, %v3246_v47  ;;  %v3260_v17 = vrot.slane %v3259_v11, 4 }
 0x286   : > { %v3249_v58 = vrot.slane %v3248_v6, 2  ;;  %v3261_v52 = vadd.f32 %v3260_v17, %v3259_v11 }
 0x288   : > { %v3250_v43 = vadd.f32 %v3249_v58, %v3248_v6  ;;  %v3262_v23 = vrot.slane %v3261_v52, 2 }
 0x28a   : > { %v3251_v24 = vrot.slane %v3250_v43, 1  ;;  %v3263_v28 = vadd.f32 %v3262_v23, %v3261_v52 }
 0x28c   : > { %v3252_v60 = vadd.f32 %v3251_v24, %v3250_v43  ;;  %v3264_v51 = vrot.slane %v3263_v28, 1 }
 0x28e   : > { %v3292_v41 = vmul.f32 0.020408163, %v3252_v60  ;;  %v3265_v12 = vadd.f32 %v3264_v51, %v3263_v28 }
 0x290   : > { %v6231_v40 = vsub.f32 %v6204_v62, %v3292_v41  ;;  %v6234_v22 = vsub.f32 %v6208_v61, %v3292_v41  ;;  %v6237_v37 = vsub.f32 %v6216_v31, %v3292_v41  ;;  %v6239_v36 = vsub.f32 %v2934_v29, %v3292_v41 }
 0x291   : > { %v6241_v3 = vsub.f32 %v2940_v42, %v3292_v41  ;;  %v6243_v1 = vsub.f32 %v2944_v18, %v3292_v41  ;;  %v6245_v21 = vsub.f32 %v2950_v20, %v3292_v41  ;;  %v3293_v35 = vmul.f32 0.020408163, %v3265_v12 }
 0x292   : > { %v3324_v9 = vmul.f32 %v6231_v40, %v6231_v40  ;;  %v3328_v62 = vmul.f32 %v6234_v22, %v6234_v22  ;;  %v3332_v61 = vmul.f32 %v6237_v37, %v6237_v37 }
 0x293   : > { %v6254_v31 = vsub.f32 %v6206_v46, %v3293_v35  ;;  %v6257_v42 = vsub.f32 %v6212_v48, %v3293_v35  ;;  %v6260_v16 = vsub.f32 %v6219_v32, %v3293_v35  ;;  %v6263_v14 = vsub.f32 %v6222_v30, %v3293_v35 }
 0x294   : > { %v3352_v29 = vadd.f32 %v3328_v62, %v3324_v9  ;;  %v6265_v63 = vsub.f32 %v2942_v33, %v3293_v35  ;;  %v6267_v26 = vsub.f32 %v2946_v0, %v3293_v35  ;;  %v6269_v45 = vsub.f32 %v2952_v10, %v3293_v35 }
 0x295   : > { %v3336_v46 = vmul.f32 %v6239_v36, %v6239_v36  ;;  %v3325_v48 = vmul.f32 %v6254_v31, %v6254_v31  ;;  %v3329_v32 = vmul.f32 %v6257_v42, %v6257_v42  ;;  %v3340_v30 = vmul.f32 %v6241_v3, %v6241_v3 }
 0x296   : > { %v3353_v2 = vadd.f32 %v3352_v29, %v3332_v61  ;;  %v3333_v33 = vmul.f32 %v6260_v16, %v6260_v16  ;;  %v3348_v5 = vmul.f32 %v6245_v21, %v6245_v21  ;;  %v3344_v54 = vmul.f32 %v6243_v1, %v6243_v1 }
 0x297   : > { %v3365_v18 = vadd.f32 %v3329_v32, %v3325_v48  ;;  %v3337_v25 = vmul.f32 %v6263_v14, %v6263_v14  ;;  %v3341_v44 = vmul.f32 %v6265_v63, %v6265_v63  ;;  %v3349_v20 = vmul.f32 %v6269_v45, %v6269_v45 }
 0x298   : > { %v3354_v53 = vadd.f32 %v3353_v2, %v3336_v46  ;;  %v3357_v7 = vsel %vm445_vm0, %v3348_v5, 0.0  ;;  %v3345_v4 = vmul.f32 %v6267_v26, %v6267_v26 }
 0x299   : > { %v3366_v0 = vadd.f32 %v3365_v18, %v3333_v33  ;;  %v3370_v55 = vsel %vm445_vm0, %v3349_v20, 0.0 }
 0x29a   : > { %v3355_v15 = vadd.f32 %v3354_v53, %v3340_v30 }
 0x29b   : > { %v3367_v49 = vadd.f32 %v3366_v0, %v3337_v25 }
 0x29c   : > { %v3356_v8 = vadd.f32 %v3355_v15, %v3344_v54 }
 0x29d   : > { %v3368_v56 = vadd.f32 %v3367_v49, %v3341_v44 }
 0x29e   : > { %v3358_v50 = vadd.f32 %v3357_v7, %v3356_v8 }
 0x29f   : > { %v3369_v47 = vadd.f32 %v3368_v56, %v3345_v4 }
 0x2a0   : > { %v3359_v10 = vrot.slane %v3358_v50, 4 }
 0x2a1   : > { %v3371_v13 = vadd.f32 %v3370_v55, %v3369_v47 }
 0x2a2   : > { %v3360_v34 = vadd.f32 %v3359_v10, %v3358_v50  ;;  %v2990_v38 = vpop.f32.mrf.mxu0  ;;  %v3061_v11 = vpop.f32.mrf.mxu1 }
 0x2a3   : > { %v6295_v6 = vadd.f32 %v3061_v11, %v2990_v38  ;;  %v3372_v58 = vrot.slane %v3371_v13, 4 }
 0x2a4   : > { %v3361_v17 = vrot.slane %v3360_v34, 2  ;;  %v2992_v52 = vpop.f32.mrf.mxu0  ;;  %v3063_v43 = vpop.f32.mrf.mxu1 }
 0x2a5   : > { %v6297_v23 = vadd.f32 %v3063_v43, %v2992_v52  ;;  %v3373_v28 = vadd.f32 %v3372_v58, %v3371_v13 }
 0x2a6   : > { %v3362_v24 = vadd.f32 %v3361_v17, %v3360_v34  ;;  %v2994_v60 = vpop.f32.mrf.mxu0  ;;  %v3065_v51 = vpop.f32.mrf.mxu1 }
 0x2a7   : > { %v3066_v41 = vadd.f32 %v3065_v51, %v2994_v60  ;;  %v3374_v35 = vrot.slane %v3373_v28, 2 }
 0x2a8   : > { %v3363_v12 = vrot.slane %v3362_v24, 1  ;;  %v2996_v9 = vpop.f32.mrf.mxu0  ;;  %v3067_v62 = vpop.f32.mrf.mxu1 }
 0x2a9   : > { %v3068_v61 = vadd.f32 %v3067_v62, %v2996_v9  ;;  %v3375_v46 = vadd.f32 %v3374_v35, %v3373_v28 }
 0x2aa   : > { %v3364_v29 = vadd.f32 %v3363_v12, %v3362_v24  ;;  %v3000_v2 = vpop.f32.mrf.mxu0  ;;  %v3071_v48 = vpop.f32.mrf.mxu1 }
 0x2ab   : > { %v3072_v32 = vadd.f32 %v3071_v48, %v3000_v2  ;;  %v3376_v53 = vrot.slane %v3375_v46, 1 }
 0x2ac   : > { %v3404_v30 = vmul.f32 0.020408163, %v3364_v29  ;;  %v3002_v33 = vpop.f32.mrf.mxu0  ;;  %v3073_v18 = vpop.f32.mrf.mxu1 }
 0x2ad   : > { %v3074_v5 = vadd.f32 %v3073_v18, %v3002_v33  ;;  %v3377_v54 = vadd.f32 %v3376_v53, %v3375_v46 }
 0x2ae   : > { %v3004_v15 = vpop.f32.mrf.mxu0  ;;  %v3075_v25 = vpop.f32.mrf.mxu1  ;;  %v3409_v0 = vadd.f32 1e-05, %v3404_v30 }
 0x2af   : > { %v3076_v8 = vadd.f32 %v3075_v25, %v3004_v15  ;;  %v3405_v44 = vmul.f32 0.020408163, %v3377_v54 }
 0x2b0   : > { %v3006_v49 = vpop.f32.mrf.mxu0  ;;  %v3077_v7 = vpop.f32.mrf.mxu1  ;;  %4514 = vrsqrt.f32 %v3409_v0 }
 0x2b1   : > { %v6299_v20 = vadd.f32 %v3077_v7, %v3006_v49  ;;  %v3410_v50 = vadd.f32 1e-05, %v3405_v44 }
 0x2b2   : > { %v3010_v4 = vpop.f32.mrf.mxu0  ;;  %v3081_v56 = vpop.f32.mrf.mxu1 }
 0x2b3   : > { %v6301_v10 = vadd.f32 %v3081_v56, %v3010_v4  ;;  %4516 = vrsqrt.f32 %v3410_v50 }
 0x2b4   : > { %v3012_v47 = vpop.f32.mrf.mxu0  ;;  %v3083_v55 = vpop.f32.mrf.mxu1 }
 0x2b5   : > { %v6303_v34 = vadd.f32 %v3083_v55, %v3012_v47 }
 0x2b6   : > { %v3014_v13 = vpop.f32.mrf.mxu0  ;;  %v3085_v38 = vpop.f32.mrf.mxu1 }
 0x2b7   : > { %v6305_v11 = vadd.f32 %v3085_v38, %v3014_v13 }
 0x2b8   : > { %v3016_v17 = vpop.f32.mrf.mxu0  ;;  %v3087_v58 = vpop.f32.mrf.mxu1 }
 0x2b9   : > { %v6307_v52 = vadd.f32 %v3087_v58, %v3016_v17 }
 0x2ba   : > { %v3020_v43 = vpop.f32.mrf.mxu0  ;;  %v3091_v24 = vpop.f32.mrf.mxu1 }
 0x2bb   : > { %v6309_v28 = vadd.f32 %v3091_v24, %v3020_v43 }
 0x2bc   : > { %v3022_v60 = vpop.f32.mrf.mxu0  ;;  %v3093_v51 = vpop.f32.mrf.mxu1 }
 0x2bd   : > { %v6311_v12 = vadd.f32 %v3093_v51, %v3022_v60  ;;  %v6313_v62 = vpop.eup %4514 }
 0x2be   : > { %v3024_v35 = vpop.f32.mrf.mxu0  ;;  %v3095_v9 = vpop.f32.mrf.mxu1 }
 0x2c0   : > { %v3025_v29 = vpop.f32.mrf.mxu0  ;;  %v3096_v46 = vpop.f32.mrf.mxu1 }
 0x2c1   : > { %v6315_v2 = vpop.eup %4516 }
 0x2c2   : > { %v3421_v48 = vcombine.low %v6313_v62, %v6315_v2 }
 0x2e2   : > { %v3132_v30 = vpop.f32.mrf.mxu0  ;;  %v3203_v53 = vpop.f32.mrf.mxu1 }
 0x2e3   : > { %v3133_v54 = vadd.f32 %v3132_v30, %v6295_v6 }
 0x2e4   : > { %v3134_v33 = vpop.f32.mrf.mxu0  ;;  %v3205_v18 = vpop.f32.mrf.mxu1 }
 0x2e5   : > { %v3135_v0 = vadd.f32 %v3134_v33, %v6297_v23  ;;  %v6321_v50 = vadd.f32 %v3203_v53, %v3133_v54 }
 0x2e6   : > { %v3136_v15 = vpop.f32.mrf.mxu0  ;;  %v3207_v25 = vpop.f32.mrf.mxu1 }
 0x2e7   : > { %v3137_v44 = vadd.f32 %v3136_v15, %v3066_v41  ;;  %v6325_v13 = vadd.f32 %v3205_v18, %v3135_v0 }
 0x2e8   : > { %v3138_v49 = vpop.f32.mrf.mxu0  ;;  %v3209_v7 = vpop.f32.mrf.mxu1 }
 0x2e9   : > { %v6323_v4 = vadd.f32 %v3207_v25, %v3137_v44  ;;  %v3139_v56 = vadd.f32 %v3138_v49, %v3068_v61 }
 0x2ea   : > { %v3142_v47 = vpop.f32.mrf.mxu0  ;;  %v3213_v55 = vpop.f32.mrf.mxu1 }
 0x2eb   : > { %v3266_v38 = vadd.f32 %v6323_v4, %v6321_v50  ;;  %v6329_v6 = vadd.f32 %v3209_v7, %v3139_v56  ;;  %v3143_v17 = vadd.f32 %v3142_v47, %v3072_v32 }
 0x2ec   : > { %v3144_v58 = vpop.f32.mrf.mxu0  ;;  %v3215_v23 = vpop.f32.mrf.mxu1 }
 0x2ed   : > { %v3279_v41 = vadd.f32 %v6329_v6, %v6325_v13  ;;  %v6333_v43 = vadd.f32 %v3213_v55, %v3143_v17  ;;  %v3145_v24 = vadd.f32 %v3144_v58, %v3074_v5 }
 0x2ee   : > { %v3146_v60 = vpop.f32.mrf.mxu0  ;;  %v3217_v61 = vpop.f32.mrf.mxu1 }
 0x2ef   : > { %v3267_v51 = vadd.f32 %v3266_v38, %v6333_v43  ;;  %v6336_v35 = vadd.f32 %v3215_v23, %v3145_v24  ;;  %v3147_v9 = vadd.f32 %v3146_v60, %v3076_v8 }
 0x2f0   : > { %v3148_v29 = vpop.f32.mrf.mxu0  ;;  %v3219_v46 = vpop.f32.mrf.mxu1 }
 0x2f1   : > { %v3280_v30 = vadd.f32 %v3279_v41, %v6336_v35  ;;  %v3218_v32 = vadd.f32 %v3217_v61, %v3147_v9  ;;  %v3149_v53 = vadd.f32 %v3148_v29, %v6299_v20 }
 0x2f2   : > { %v3152_v33 = vpop.f32.mrf.mxu0  ;;  %v3223_v18 = vpop.f32.mrf.mxu1 }
 0x2f3   : > { %v3268_v54 = vadd.f32 %v3267_v51, %v3218_v32  ;;  %v6340_v15 = vadd.f32 %v3219_v46, %v3149_v53  ;;  %v3153_v5 = vadd.f32 %v3152_v33, %v6301_v10 }
 0x2f4   : > { %v3154_v25 = vpop.f32.mrf.mxu0  ;;  %v3225_v0 = vpop.f32.mrf.mxu1 }
 0x2f5   : > { %v3281_v44 = vadd.f32 %v3280_v30, %v6340_v15  ;;  %v3224_v49 = vadd.f32 %v3223_v18, %v3153_v5  ;;  %v3155_v8 = vadd.f32 %v3154_v25, %v6303_v34 }
 0x2f6   : > { %v3156_v7 = vpop.f32.mrf.mxu0  ;;  %v3227_v56 = vpop.f32.mrf.mxu1 }
 0x2f7   : > { %v3269_v47 = vadd.f32 %v3268_v54, %v3224_v49  ;;  %v3226_v55 = vadd.f32 %v3225_v0, %v3155_v8  ;;  %v3157_v20 = vadd.f32 %v3156_v7, %v6305_v11 }
 0x2f8   : > { %v3158_v38 = vpop.f32.mrf.mxu0  ;;  %v3229_v17 = vpop.f32.mrf.mxu1 }
 0x2f9   : > { %v3282_v58 = vadd.f32 %v3281_v44, %v3226_v55  ;;  %v3228_v23 = vadd.f32 %v3227_v56, %v3157_v20  ;;  %v3159_v41 = vadd.f32 %v3158_v38, %v6307_v52 }
 0x2fa   : > { %v3162_v10 = vpop.f32.mrf.mxu0  ;;  %v3233_v24 = vpop.f32.mrf.mxu1 }
 0x2fb   : > { %v3270_v60 = vadd.f32 %v3269_v47, %v3228_v23  ;;  %v3230_v61 = vadd.f32 %v3229_v17, %v3159_v41  ;;  %v3163_v51 = vadd.f32 %v3162_v10, %v6309_v28 }
 0x2fc   : > { %v3164_v9 = vpop.f32.mrf.mxu0  ;;  %v3235_v34 = vpop.f32.mrf.mxu1 }
 0x2fd   : > { %v3283_v29 = vadd.f32 %v3282_v58, %v3230_v61  ;;  %v3234_v46 = vadd.f32 %v3233_v24, %v3163_v51  ;;  %v3165_v30 = vadd.f32 %v3164_v9, %v6311_v12 }
 0x2fe   : > { %v3166_v53 = vpop.f32.mrf.mxu0  ;;  %v3237_v11 = vpop.f32.mrf.mxu1 }
 0x2ff   : > { %v3271_v33 = vsel %vm445_vm0, %v3234_v46, 0.0  ;;  %v3236_v18 = vadd.f32 %v3235_v34, %v3165_v30 }
 0x300   : > { %v3272_v54 = vadd.f32 %v3271_v33, %v3270_v60  ;;  %v3167_v5 = vpop.f32.mrf.mxu0  ;;  %v3238_v52 = vpop.f32.mrf.mxu1 }
 0x301   : > { %v3284_v25 = vsel %vm445_vm0, %v3236_v18, 0.0 }
 0x302   : > { %v3273_v0 = vrot.slane %v3272_v54, 4  ;;  %v3285_v44 = vadd.f32 %v3284_v25, %v3283_v29 }
 0x304   : > { %v3274_v8 = vadd.f32 %v3273_v0, %v3272_v54  ;;  %v3286_v28 = vrot.slane %v3285_v44, 4 }
 0x306   : > { %v3275_v7 = vrot.slane %v3274_v8, 2  ;;  %v3287_v56 = vadd.f32 %v3286_v28, %v3285_v44 }
 0x308   : > { %v3276_v47 = vadd.f32 %v3275_v7, %v3274_v8  ;;  %v3288_v20 = vrot.slane %v3287_v56, 2 }
 0x30a   : > { %v3277_v38 = vrot.slane %v3276_v47, 1  ;;  %v3289_v12 = vadd.f32 %v3288_v20, %v3287_v56 }
 0x30c   : > { %v3278_v17 = vadd.f32 %v3277_v38, %v3276_v47  ;;  %v3290_v58 = vrot.slane %v3289_v12, 1 }
 0x30e   : > { %v3294_v41 = vmul.f32 0.020408163, %v3278_v17  ;;  %v3291_v10 = vadd.f32 %v3290_v58, %v3289_v12 }
 0x310   : > { %v6352_v24 = vsub.f32 %v6321_v50, %v3294_v41  ;;  %v6355_v60 = vsub.f32 %v6323_v4, %v3294_v41  ;;  %v6358_v51 = vsub.f32 %v6333_v43, %v3294_v41  ;;  %v6360_v9 = vsub.f32 %v3218_v32, %v3294_v41 }
 0x311   : > { %v6362_v34 = vsub.f32 %v3224_v49, %v3294_v41  ;;  %v6364_v29 = vsub.f32 %v3228_v23, %v3294_v41  ;;  %v6366_v30 = vsub.f32 %v3234_v46, %v3294_v41  ;;  %v3295_v53 = vmul.f32 0.020408163, %v3291_v10 }
 0x312   : > { %v3326_v11 = vmul.f32 %v6352_v24, %v6352_v24  ;;  %v3330_v50 = vmul.f32 %v6355_v60, %v6355_v60  ;;  %v3334_v4 = vmul.f32 %v6358_v51, %v6358_v51 }
 0x313   : > { %v6375_v43 = vsub.f32 %v6325_v13, %v3295_v53  ;;  %v6378_v49 = vsub.f32 %v6329_v6, %v3295_v53  ;;  %v6381_v23 = vsub.f32 %v6336_v35, %v3295_v53  ;;  %v6384_v46 = vsub.f32 %v6340_v15, %v3295_v53 }
 0x314   : > { %v3378_v32 = vadd.f32 %v3330_v50, %v3326_v11  ;;  %v6386_v33 = vsub.f32 %v3226_v55, %v3295_v53  ;;  %v6388_v54 = vsub.f32 %v3230_v61, %v3295_v53  ;;  %v6390_v5 = vsub.f32 %v3236_v18, %v3295_v53 }
 0x315   : > { %v3338_v13 = vmul.f32 %v6360_v9, %v6360_v9  ;;  %v3327_v6 = vmul.f32 %v6375_v43, %v6375_v43  ;;  %v3331_v35 = vmul.f32 %v6378_v49, %v6378_v49  ;;  %v3342_v15 = vmul.f32 %v6362_v34, %v6362_v34 }
 0x316   : > { %v3379_v52 = vadd.f32 %v3378_v32, %v3334_v4  ;;  %v3335_v55 = vmul.f32 %v6381_v23, %v6381_v23  ;;  %v3350_v18 = vmul.f32 %v6366_v30, %v6366_v30  ;;  %v3346_v0 = vmul.f32 %v6364_v29, %v6364_v29 }
 0x317   : > { %v3391_v61 = vadd.f32 %v3331_v35, %v3327_v6  ;;  %v3339_v8 = vmul.f32 %v6384_v46, %v6384_v46  ;;  %v3343_v56 = vmul.f32 %v6386_v33, %v6386_v33  ;;  %v3351_v38 = vmul.f32 %v6390_v5, %v6390_v5 }
 0x318   : > { %v3380_v25 = vadd.f32 %v3379_v52, %v3338_v13  ;;  %v3383_v20 = vsel %vm445_vm0, %v3350_v18, 0.0  ;;  %v3347_v17 = vmul.f32 %v6388_v54, %v6388_v54 }
 0x319   : > { %v3392_v28 = vadd.f32 %v3391_v61, %v3335_v55  ;;  %v3396_v53 = vsel %vm445_vm0, %v3351_v38, 0.0 }
 0x31a   : > { %v3381_v44 = vadd.f32 %v3380_v25, %v3342_v15 }
 0x31b   : > { %v3393_v47 = vadd.f32 %v3392_v28, %v3339_v8 }
 0x31c   : > { %v3382_v7 = vadd.f32 %v3381_v44, %v3346_v0 }
 0x31d   : > { %v3394_v58 = vadd.f32 %v3393_v47, %v3343_v56  ;;  %v3429_v47 = vrot.slane %v3421_v48, %v5628_v19 }
 0x31e   : > { %v3384_v12 = vadd.f32 %v3383_v20, %v3382_v7 }
 0x31f   : > { %v3395_v10 = vadd.f32 %v3394_v58, %v3347_v17 }
 0x320   : > { %v3385_v41 = vrot.slane %v3384_v12, 4 }
 0x321   : > { %v3397_v50 = vadd.f32 %v3396_v53, %v3395_v10 }
 0x322   : > { %v3386_v11 = vadd.f32 %v3385_v41, %v3384_v12  ;;  %v3408_v12 = vld [vmem:[%s5041_s2] sm:$0xf]  ;;  %v3496_v41 = vld [vmem:[%s5047_s27] sm:$0xf] }
 0x323   : > { %v3398_v32 = vrot.slane %v3397_v50, 4  ;;  %v6429_v62 = vrot.slane %v3496_v41, %v5645_v39  ;;  %v6432_v2 = vrot.slane %v3496_v41, %v5637_v59  ;;  %v6435_v48 = vrot.slane %v3496_v41, %v5648_v57 }
 0x324   : > { %v3387_v4 = vrot.slane %v3386_v11, 2 }
 0x325   : > { %v3399_v52 = vadd.f32 %v3398_v32, %v3397_v50 }
 0x326   : > { %v3388_v13 = vadd.f32 %v3387_v4, %v3386_v11 }
 0x327   : > { %v3400_v35 = vrot.slane %v3399_v52, 2 }
 0x328   : > { %v3389_v6 = vrot.slane %v3388_v13, 1 }
 0x329   : > { %v3401_v25 = vadd.f32 %v3400_v35, %v3399_v52 }
 0x32a   : > { %v3390_v15 = vadd.f32 %v3389_v6, %v3388_v13 }
 0x32b   : > { %v3402_v61 = vrot.slane %v3401_v25, 1 }
 0x32c   : > { %v3406_v55 = vmul.f32 0.020408163, %v3390_v15 }
 0x32d   : > { %v3403_v18 = vadd.f32 %v3402_v61, %v3401_v25 }
 0x32e   : > { %v3411_v0 = vadd.f32 1e-05, %v3406_v55 }
 0x32f   : > { %v3407_v44 = vmul.f32 0.020408163, %v3403_v18 }
 0x330   : > { %4518 = vrsqrt.f32 %v3411_v0 }
 0x331   : > { %v3412_v8 = vadd.f32 1e-05, %v3407_v44 }
 0x333   : > { %4520 = vrsqrt.f32 %v3412_v8 }
 0x33d   : > { %v4519_v28 = vpop.eup %4518 }
 0x340   : > { %v4521_v7 = vpop.eup %4520 }
 0x341   : > { %v3422_v56 = vcombine.low %v4519_v28, %v4521_v7 }
 0x343   : > { %v3436_v20 = vrot.slane %v3422_v56, %v5628_v19 }
 0x345   : > { %v3437_v38 = vcombine.low %v3429_v47, %v3436_v20 }
 0x347   : > { %v3444_v17 = vrot.slane %v3437_v38, %v5628_v19  ;;  %v6438_v19 = vrot.slane %v3496_v41, %v5642_v27 }
 0x349   : > { %v3446_v58 = vmul.f32 %v3444_v17, %v3408_v12 }
 0x34b   : > { %v3451_v10 = vrot.slane %v3446_v58, %v5645_v39  ;;  %v3455_v53 = vrot.slane %v3446_v58, %v5637_v59  ;;  %v3459_v11 = vrot.slane %v3446_v58, %v5648_v57  ;;  %v3463_v50 = vrot.slane %v3446_v58, %v5642_v27 }
 0x34d   : > { %v3468_v4 = vmul.f32 %v3451_v10, %v6231_v40  ;;  %v3469_v32 = vmul.f32 %v3455_v53, %v6254_v31  ;;  %v3470_v13 = vmul.f32 %v3459_v11, %v6352_v24  ;;  %v3471_v52 = vmul.f32 %v3463_v50, %v6375_v43 }
 0x34e   : > { %v3472_v39 = vmul.f32 %v3451_v10, %v6234_v22  ;;  %v3473_v6 = vmul.f32 %v3455_v53, %v6257_v42  ;;  %v3474_v59 = vmul.f32 %v3459_v11, %v6355_v60  ;;  %v3475_v57 = vmul.f32 %v3463_v50, %v6378_v49 }
 0x34f   : > { %v3476_v27 = vmul.f32 %v3451_v10, %v6237_v37  ;;  %v3477_v35 = vmul.f32 %v3455_v53, %v6260_v16  ;;  %v3478_v40 = vmul.f32 %v3459_v11, %v6358_v51  ;;  %v3479_v31 = vmul.f32 %v3463_v50, %v6381_v23 }
 0x350   : > { %v3480_v24 = vmul.f32 %v3451_v10, %v6239_v36  ;;  %v3481_v43 = vmul.f32 %v3455_v53, %v6263_v14  ;;  %v3482_v22 = vmul.f32 %v3459_v11, %v6360_v9  ;;  %v3483_v42 = vmul.f32 %v3463_v50, %v6384_v46 }
 0x351   : > { %v3484_v60 = vmul.f32 %v3451_v10, %v6241_v3  ;;  %v3485_v49 = vmul.f32 %v3455_v53, %v6265_v63  ;;  %v3486_v37 = vmul.f32 %v3459_v11, %v6362_v34  ;;  %v3487_v16 = vmul.f32 %v3463_v50, %v6386_v33 }
 0x352   : > { %v3488_v51 = vmul.f32 %v3451_v10, %v6243_v1  ;;  %v3489_v23 = vmul.f32 %v3455_v53, %v6267_v26  ;;  %v3490_v36 = vmul.f32 %v3459_v11, %v6364_v29  ;;  %v3491_v14 = vmul.f32 %v3463_v50, %v6388_v54 }
 0x353   : > { %v3492_v9 = vmul.f32 %v3451_v10, %v6245_v21  ;;  %v3493_v46 = vmul.f32 %v3455_v53, %v6269_v45  ;;  %v3494_v3 = vmul.f32 %v3459_v11, %v6366_v30  ;;  %v3495_v63 = vmul.f32 %v3463_v50, %v6390_v5 }
 0x354   : > { %v3518_v34 = vadd.f32 %v6429_v62, %v3468_v4  ;;  %v3519_v1 = vadd.f32 %v6432_v2, %v3469_v32  ;;  %v3520_v33 = vadd.f32 %v6435_v48, %v3470_v13  ;;  %v3521_v26 = vadd.f32 %v6438_v19, %v3471_v52 }
 0x355   : > { %v3522_v29 = vadd.f32 %v6429_v62, %v3472_v39  ;;  %v3523_v54 = vadd.f32 %v6432_v2, %v3473_v6  ;;  %v3524_v21 = vadd.f32 %v6435_v48, %v3474_v59  ;;  %v3525_v45 = vadd.f32 %v6438_v19, %v3475_v57 }
 0x356   : > { %v3526_v30 = vadd.f32 %v6429_v62, %v3476_v27  ;;  %v3527_v5 = vadd.f32 %v6432_v2, %v3477_v35  ;;  %v3528_v15 = vadd.f32 %v6435_v48, %v3478_v40  ;;  %v3529_v25 = vadd.f32 %v6438_v19, %v3479_v31  ;;  %3546 = vst [vmem:[%s6484_s18] sm:$0xff] %v3518_v34 }
 0x357   : > { %3547 = vst [vmem:[%s6484_s18 + $0x8] sm:$0xff] %v3519_v1  ;;  %3548 = vst [vmem:[%s6484_s18 + $0x10] sm:$0xff] %v3520_v33  ;;  %v3530_v55 = vadd.f32 %v6429_v62, %v3480_v24  ;;  %v3531_v61 = vadd.f32 %v6432_v2, %v3481_v43  ;;  %v3532_v18 = vadd.f32 %v6435_v48, %v3482_v22 }
 0x358   : > { %3549 = vst [vmem:[%s6484_s18 + $0x18] sm:$0xff] %v3521_v26  ;;  %v3533_v0 = vadd.f32 %v6438_v19, %v3483_v42  ;;  %3550 = vst [vmem:[%s6484_s18 + $0x20] sm:$0xff] %v3522_v29  ;;  %v3534_v44 = vadd.f32 %v6429_v62, %v3484_v60  ;;  %v3535_v8 = vadd.f32 %v6432_v2, %v3485_v49 }
 0x359   : > { %3551 = vst [vmem:[%s6484_s18 + $0x28] sm:$0xff] %v3523_v54  ;;  %3552 = vst [vmem:[%s6484_s18 + $0x30] sm:$0xff] %v3524_v21  ;;  %v3536_v28 = vadd.f32 %v6435_v48, %v3486_v37  ;;  %v3537_v7 = vadd.f32 %v6438_v19, %v3487_v16  ;;  %v3538_v56 = vadd.f32 %v6429_v62, %v3488_v51 }
 0x35a   : > { %3553 = vst [vmem:[%s6484_s18 + $0x38] sm:$0xff] %v3525_v45  ;;  %3554 = vst [vmem:[%s6484_s18 + $0x40] sm:$0xff] %v3526_v30  ;;  %v3539_v47 = vadd.f32 %v6432_v2, %v3489_v23  ;;  %v3540_v20 = vadd.f32 %v6435_v48, %v3490_v36  ;;  %v3541_v38 = vadd.f32 %v6438_v19, %v3491_v14 }
 0x35b   : > { %3555 = vst [vmem:[%s6484_s18 + $0x48] sm:$0xff] %v3527_v5  ;;  %3556 = vst [vmem:[%s6484_s18 + $0x50] sm:$0xff] %v3528_v15  ;;  %v3542_v12 = vadd.f32 %v6429_v62, %v3492_v9  ;;  %v3543_v17 = vadd.f32 %v6432_v2, %v3493_v46  ;;  %v3544_v58 = vadd.f32 %v6435_v48, %v3494_v3 }
 0x35c   : > { %3557 = vst [vmem:[%s6484_s18 + $0x58] sm:$0xff] %v3529_v25  ;;  %3558 = vst [vmem:[%s6484_s18 + $0x60] sm:$0xff] %v3530_v55  ;;  %v3545_v41 = vadd.f32 %v6438_v19, %v3495_v63 }
 0x35d   : > { %3559 = vst [vmem:[%s6484_s18 + $0x68] sm:$0xff] %v3531_v61  ;;  %3560 = vst [vmem:[%s6484_s18 + $0x70] sm:$0xff] %v3532_v18 }
 0x35e   : > { %3561 = vst [vmem:[%s6484_s18 + $0x78] sm:$0xff] %v3533_v0  ;;  %3562 = vst [vmem:[%s6484_s18 + $0x80] sm:$0xff] %v3534_v44 }
 0x35f   : > { %3563 = vst [vmem:[%s6484_s18 + $0x88] sm:$0xff] %v3535_v8  ;;  %3564 = vst [vmem:[%s6484_s18 + $0x90] sm:$0xff] %v3536_v28 }
 0x360   : > { %3565 = vst [vmem:[%s6484_s18 + $0x98] sm:$0xff] %v3537_v7  ;;  %3566 = vst [vmem:[%s6484_s18 + $0xa0] sm:$0xff] %v3538_v56 }
 0x361   : > { %3567 = vst [vmem:[%s6484_s18 + $0xa8] sm:$0xff] %v3539_v47  ;;  %3568 = vst [vmem:[%s6484_s18 + $0xb0] sm:$0xff] %v3540_v20 }
 0x362   : > { %3569 = vst [vmem:[%s6484_s18 + $0xb8] sm:$0xff] %v3541_v38  ;;  %3570 = vst [vmem:[%s6484_s18 + $0xc0] sm:$0x1] %v3542_v12 }
 0x363   : > { %3571 = vst [vmem:[%s6484_s18 + $0xc8] sm:$0x1] %v3543_v17  ;;  %3572 = vst [vmem:[%s6484_s18 + $0xd0] sm:$0x1] %v3544_v58 }
 0x364   : > { %3573 = vst [vmem:[%s6484_s18 + $0xd8] sm:$0x1] %v3545_v41 }
 0x365   : > { %4697 = shalt.err (!%p4694_p7)
}
 0x366   : > { %s4698_s17 = scalar_lea.hbm %s6510_s28, 3584  ;;  %s4702_s15 = scalar_lea.hbm %s6584_s6, 14336 }
 0x367   : > { %p4699_p11 = scmp.ne.s32.totalorder %s6510_s28, %s4698_s17  ;;  %p4703_p5 = scmp.lt.s32.totalorder %s6510_s28, %s6584_s6 }
 0x368   : > { %p4704_p2 = scmp.lt.s32.totalorder %s4702_s15, %s4698_s17 }
 0x369   : > { %p4700_p3 = pnand %p4699_p11, %p6894_p4 }
 0x36a   : > { %p4705_p8 = por %p4704_p2, %p4703_p5 }
 0x36b   : > { %p4701_p1 = pneg %p4700_p3 }
 0x36d   : > { %p4706_p9 = pnand %p4705_p8, %p4701_p1 }
 0x36f   : > { %4709 = shalt.err (!%p4706_p9)
}
 0x370   : > { %s4782_s11 = smov 512   ;;  %s4783_s2 = smov 2048  }
 0x371   : > { %s4784_s27 = smov 32  }
 0x372   : > { %4037 = dma.vmem_to_hbm [thread:$0]  (%p6894_p4), %s6520_s25, 3584, %s6510_s28, %s3575_s12, %s4782_s11, %s4783_s2, %s4784_s27  }
 0x373 PF: > { %s6895_s8 = sld [smem:[#allocation22_spill]]  ;;  %p4070_p12 = scmp.ge.s32.totalorder %s4768_s24, 2 }
 0x374   : > { %s3603_s30 = sand.u32 1, %s4756_s21  }
 0x375   : > { %s3604_s18 = scalar_lea.sflag [#allocation4], %s3603_s30 }
 0x379   : > { %p6896_p6 = scmp.ne.s32.totalorder %s6895_s8, 0 }
 0x37b   : > { %p4060_p10 = pnand %p4070_p12, %p6896_p6 }
 0x37d   : > { %p4061_p13 = pneg %p4060_p10 }
 0x37f   : > { %4751 = dma.done.wait (%p4061_p13), %s3604_s18, 3584  }
 0x380   : > { %4753 = vsyncadd (%p4061_p13), %s3604_s18, 4294963712  ;;  %s6897_s24 = sld [smem:[#allocation20_spill]]  ;;  %s6899_s21 = smov %s4760_s22 }
 0x381   : > { %s6898_s26 = sld [smem:[#allocation21_spill]]  ;;  %s6900_s22 = smov %s4764_s23 }
 0x386   : > { %p21_p0 = scmp.ge.s32.totalorder %s6897_s24, 6  }
 0x387   : > { %s6901_s23 = smov %s6898_s26 }
 0x388   :  { %23 = sbr.rel (!%p21_p0) target bundleno = 11 (0xb), region = 124 }
 0x38d   :  { %3609 = vsyncpa [#allocation3], 1 }
 0x38e   :  { %3611 = vsyncpa [#allocation3 + $0x1], 1 }
 0x38f   :  { %3612 = vsyncpa [#allocation6], 1 }
 0x390   :  { %3614 = vsyncpa [#allocation6 + $0x1], 1 }
 0x391   :  { %3615 = vsyncpa [#allocation9], 1 }
 0x392   :  { %3616 = vsyncpa [#allocation4], 1 }
 0x393   :  { %3618 = vsyncpa [#allocation4 + $0x1], 1 }

</bundles_post_ra>
